<compile_context>
chip_gen: v5e
topology: v5e:2x2
jax: 0.10.0
libtpu: 0.0.40
codegen_flags: <defaults>
</compile_context>

<pallas_src>
import functools

import jax
import jax.numpy as jnp
from jax.experimental import pallas as pl
from jax.experimental.pallas import tpu as pltpu


# ----------------------------------------------------------------------------
# Pallas kernel: one grid step = one full batch element (all T time steps).
# ----------------------------------------------------------------------------
def _gcru_encoder_kernel(x_ref, a_ref, g_ref, wx_ref, wgh_ref, wuh_ref,
                         bcat_ref, out_ref, xc_scr, *, mxu_dtype):
    f32 = jnp.float32
    Din, N, T = x_ref.shape
    K = g_ref.shape[0]
    H = wuh_ref.shape[-1]

    # -------- once per batch: M = vstack_k(A @ G_k), kept in registers ------
    A = a_ref[...]                                                  # (N, N)
    M = jnp.concatenate(
        [jnp.dot(A, g_ref[k], preferred_element_type=f32) for k in range(K)],
        axis=0)                                                     # (K*N, N)
    Mc = M.astype(mxu_dtype)

    # -------- once per batch: x-path (+bias) contributions for all T --------
    # xc[t] = [bg|bu] + sum_k sum_d (M_k @ x_t[:, d]) * Wx[k, d, :]  -> (N, 3H)
    bcat = bcat_ref[...]                                            # (1, 3H)
    U = [jnp.dot(Mc, x_ref[d], preferred_element_type=f32)          # (K*N, T)
         for d in range(Din)]
    for t in range(T):
        acc = None
        for k in range(K):
            wxk = wx_ref[k]                                         # (Din, 3H)
            for d in range(Din):
                # tiny Din: VPU outer-product instead of a degenerate matmul
                term = U[d][k * N:(k + 1) * N, t:t + 1] * wxk[d:d + 1, :]
                acc = term if acc is None else acc + term
        xc_scr[t] = acc + bcat

    # -------- recurrent loop (T is small & static: full unroll) -------------
    def diffuse(v):
        # [M_0 v | M_1 v | ...] : one stacked matmul + lane concat -> (N, K*H)
        s = jnp.dot(Mc, v.astype(mxu_dtype), preferred_element_type=f32)
        return jnp.concatenate(
            [s[k * N:(k + 1) * N, :] for k in range(K)], axis=-1)

    h = jnp.zeros((N, H), f32)
    for t in range(T):
        xc = xc_scr[t]                                              # (N, 3H)

        # gate GCN: sigmoid( sum_k (M_k h) Wgh_k + x-contrib + bg )
        gate = jax.nn.sigmoid(
            jnp.dot(diffuse(h).astype(mxu_dtype), wgh_ref[...],
                    preferred_element_type=f32) + xc[:, :2 * H])    # (N, 2H)
        z = gate[:, :H]
        r = gate[:, H:]

        # candidate GCN: tanh( sum_k (M_k (r*h)) Wuh_k + x-contrib + bu )
        hc = jnp.tanh(
            jnp.dot(diffuse(r * h).astype(mxu_dtype), wuh_ref[...],
                    preferred_element_type=f32) + xc[:, 2 * H:])    # (N, H)

        h = z * hc + (1.0 - z) * h
        # lane-dense output slab: column block t of the (N, T*H) output
        out_ref[:, t * H:(t + 1) * H] = h.astype(out_ref.dtype)


# ----------------------------------------------------------------------------
# Wrapper: parameter re-layout + pallas_call.
# ----------------------------------------------------------------------------
def stmeta_gcru_encoder(x, G, A, Wg, bg, Wu, bu, gru_hidden_dim,
                        mxu_dtype=jnp.float32):
    """Pallas implementation of STMetaGCRUEncoder.forward (meta_adj=None path).

    x : (B, T, N, Din)   G : (K, N, N)   A : (B, N, N)
    Wg: (K*(Din+H), 2H)  bg: (2H,)       Wu: (K*(Din+H), H)  bu: (H,)
    Returns (h_each_step (B,T,N,H), h_last (B,N,H)).
    """
    B, T, N, Din = x.shape
    K = G.shape[0]
    H = gru_hidden_dim
    Dtot = Din + H

    # Block-decompose W along its input rows ("x rows" vs "h rows"); fuse the
    # gate/candidate x-weights into one (K, Din, 3H) slab; row-stack the
    # h-weights so the per-step weight matmul is a single (K*H)-deep contraction.
    Wg3 = Wg.reshape(K, Dtot, 2 * H)
    Wu3 = Wu.reshape(K, Dtot, H)
    wx = jnp.concatenate([Wg3[:, :Din, :], Wu3[:, :Din, :]], axis=-1)  # (K,Din,3H)
    wgh = Wg3[:, Din:, :].reshape(K * H, 2 * H).astype(mxu_dtype)      # (K*H,2H)
    wuh = Wu3[:, Din:, :].reshape(K * H, H).astype(mxu_dtype)          # (K*H,H)
    bcat = jnp.concatenate([bg, bu]).reshape(1, 3 * H).astype(jnp.float32)

    # Drop the (possibly size-1) Din lane dim; make T the contiguous minor dim.
    x_perm = jnp.transpose(x, (0, 3, 2, 1)).astype(mxu_dtype)          # (B,Din,N,T)
    A_c = A.astype(mxu_dtype)
    G_c = G.astype(mxu_dtype)

    grid_spec = pltpu.PrefetchScalarGridSpec(
        num_scalar_prefetch=0,
        grid=(B,),
        in_specs=[
            pl.BlockSpec((None, Din, N, T), lambda b: (b, 0, 0, 0)),   # x
            pl.BlockSpec((None, N, N),      lambda b: (b, 0, 0)),      # A
            pl.BlockSpec((K, N, N),         lambda b: (0, 0, 0)),      # G
            pl.BlockSpec((K, Din, 3 * H),   lambda b: (0, 0, 0)),      # Wx (gate|cand)
            pl.BlockSpec((K * H, 2 * H),    lambda b: (0, 0)),         # Wgh stacked
            pl.BlockSpec((K * H, H),        lambda b: (0, 0)),         # Wuh stacked
            pl.BlockSpec((1, 3 * H),        lambda b: (0, 0)),         # [bg|bu]
        ],
        out_specs=pl.BlockSpec((None, N, T * H), lambda b: (b, 0, 0)),
        scratch_shapes=[pltpu.VMEM((T, N, 3 * H), jnp.float32)],       # x-path contribs
    )

    out_flat = pl.pallas_call(
        functools.partial(_gcru_encoder_kernel, mxu_dtype=mxu_dtype),
        out_shape=jax.ShapeDtypeStruct((B, N, T * H), jnp.float32),
        grid_spec=grid_spec,
        compiler_params=pltpu.CompilerParams(
            # Batch elements are fully independent (h never crosses grid
            # steps), so B shards across v7x's two TensorCores.
            dimension_semantics=("parallel",)),
    )(x_perm, A_c, G_c, wx, wgh, wuh, bcat)

    # Lane-dense (B, N, T*H) -> (B, T, N, H): layout plumbing only.
    h_each_step = jnp.transpose(out_flat.reshape(B, N, T, H), (0, 2, 1, 3))
    return h_each_step, h_each_step[:, -1]


# ----------------------------------------------------------------------------
# Pure-JAX reference (mirrors the PyTorch code, meta_adj=None path).
# ----------------------------------------------------------------------------
def _ref_encoder(x, G, A, Wg, bg, Wu, bu, H):
    B, T, N, Din = x.shape
    K = G.shape[0]

    def gcn(W, b, inp):
        sups = []
        for k in range(K):
            s = jnp.einsum('ij,bjp->bip', G[k], inp)
            s = jnp.einsum('bij,bjp->bip', A, s)
            sups.append(s)
        cat = jnp.concatenate(sups, axis=-1)
        return jnp.einsum('bip,pq->biq', cat, W) + b

    h = jnp.zeros((B, N, H), jnp.float32)
    outs = []
    for t in range(T):
        xt = x[:, t]
        combined = jnp.concatenate([xt, h], axis=-1)
        gates = jax.nn.sigmoid(gcn(Wg, bg, combined))
        z, r = gates[..., :H], gates[..., H:]
        cand = jnp.concatenate([xt, r * h], axis=-1)
        hc = jnp.tanh(gcn(Wu, bu, cand))
        h = z * hc + (1.0 - z) * h
        outs.append(h)
    return jnp.stack(outs, axis=1), h


# ----------------------------------------------------------------------------
# Deterministic setup + run.
# ----------------------------------------------------------------------------
def _xavier_normal(key, shape):
    fan_out, fan_in = shape[0], shape[1]
    std = (2.0 / (fan_in + fan_out)) ** 0.5
    return std * jax.random.normal(key, shape, dtype=jnp.float32)


if __name__ == "__main__":
    # Small shapes consistent with the module.
    B, T, N = 2, 8, 16
    Din, H, K = 1, 32, 3          # input_dim, gru_hidden_dim, cheb_k

    key = jax.random.PRNGKey(0)
    k_x, k_g, k_a, k_wg, k_wu = jax.random.split(key, 5)

    x = jax.random.normal(k_x, (B, T, N, Din), dtype=jnp.float32)

    # Chebyshev-style supports (K, N, N), row-normalized for stability.
    G_raw = jax.random.uniform(k_g, (K, N, N), dtype=jnp.float32)
    G = G_raw / jnp.sum(G_raw, axis=-1, keepdims=True)

    # Per-batch meta attention (B, N, N), row-softmaxed (as set via set_attention).
    A = jax.nn.softmax(jax.random.normal(k_a, (B, N, N), dtype=jnp.float32), axis=-1)

    # STMetaGCN parameters (xavier_normal W, zero bias), as in __init__.
    Wg = _xavier_normal(k_wg, (K * (Din + H), 2 * H))   # conv_gate.W
    bg = jnp.zeros((2 * H,), jnp.float32)               # conv_gate.b
    Wu = _xavier_normal(k_wu, (K * (Din + H), H))       # update.W
    bu = jnp.zeros((H,), jnp.float32)                   # update.b

    ref_steps, ref_last = _ref_encoder(x, G, A, Wg, bg, Wu, bu, H)

    # --- f32 MXU operands (default): tight tolerance ------------------------
    run = jax.jit(functools.partial(stmeta_gcru_encoder, gru_hidden_dim=H))
    h_steps, h_last = run(x, G, A, Wg, bg, Wu, bu)
    jax.block_until_ready((h_steps, h_last))

    assert h_steps.shape == (B, T, N, H)
    assert h_last.shape == (B, N, H)
    # Summation order differs from the reference (A@G precompute, stacked
    # contractions), so allow a slightly looser fp32 tolerance.
    assert jnp.allclose(h_steps, ref_steps, atol=1e-4, rtol=1e-4)
    assert jnp.allclose(h_last, ref_last, atol=1e-4, rtol=1e-4)

    # --- bf16 MXU operands, f32 accumulation (v6e/v7x native): loose tol ----
    run_bf16 = jax.jit(functools.partial(
        stmeta_gcru_encoder, gru_hidden_dim=H, mxu_dtype=jnp.bfloat16))
    hb_steps, hb_last = run_bf16(x, G, A, Wg, bg, Wu, bu)
    jax.block_until_ready((hb_steps, hb_last))
    assert jnp.allclose(hb_steps, ref_steps, atol=5e-2, rtol=5e-2)
    assert jnp.allclose(hb_last, ref_last, atol=5e-2, rtol=5e-2)

    print("KERNEL_OK")
</pallas_src>

<mosaic_0001>
module attributes {stable_mosaic.version = 11 : i64} {
  func.func @_gcru_encoder_kernel(%arg0: i32, %arg1: memref<1x1x16x8xf32, #tpu.memory_space<vmem>>, %arg2: memref<1x16x16xf32, #tpu.memory_space<vmem>>, %arg3: memref<3x16x16xf32, #tpu.memory_space<vmem>>, %arg4: memref<3x1x96xf32, #tpu.memory_space<vmem>>, %arg5: memref<96x64xf32, #tpu.memory_space<vmem>>, %arg6: memref<96x32xf32, #tpu.memory_space<vmem>>, %arg7: memref<1x96xf32, #tpu.memory_space<vmem>>, %arg8: memref<1x16x256xf32, #tpu.memory_space<vmem>>, %arg9: memref<8x16x96xf32, #tpu.memory_space<vmem>>) attributes {dimension_semantics = [#tpu.dimension_semantics<parallel>], iteration_bounds = array<i64: 2>, scalar_prefetch = 0 : i64, scratch_operands = 1 : i64, tpu.core_type = #tpu.core_type<tc>, window_params = [{transform_indices = @transform_0, window_bounds = array<i64: 1, 1, 16, 8>}, {transform_indices = @transform_1, window_bounds = array<i64: 1, 16, 16>}, {pipeline_mode = #tpu.pipeline_mode<synchronous>, transform_indices = @transform_2, window_bounds = array<i64: 3, 16, 16>}, {pipeline_mode = #tpu.pipeline_mode<synchronous>, transform_indices = @transform_3, window_bounds = array<i64: 3, 1, 96>}, {pipeline_mode = #tpu.pipeline_mode<synchronous>, transform_indices = @transform_4, window_bounds = array<i64: 96, 64>}, {pipeline_mode = #tpu.pipeline_mode<synchronous>, transform_indices = @transform_5, window_bounds = array<i64: 96, 32>}, {pipeline_mode = #tpu.pipeline_mode<synchronous>, transform_indices = @transform_6, window_bounds = array<i64: 1, 96>}, {transform_indices = @transform_7, window_bounds = array<i64: 1, 16, 256>}]} {
    %c0 = arith.constant 0 : index
    %c0_0 = arith.constant 0 : index
    %c0_1 = arith.constant 0 : index
    %0 = vector.load %arg2[%c0, %c0_0, %c0_1] : memref<1x16x16xf32, #tpu.memory_space<vmem>>, vector<1x16x16xf32>
    %1 = vector.shape_cast %0 : vector<1x16x16xf32> to vector<16x16xf32>
    %c0_2 = arith.constant 0 : index
    %c0_3 = arith.constant 0 : index
    %c0_4 = arith.constant 0 : index
    %2 = vector.load %arg3[%c0_2, %c0_3, %c0_4] : memref<3x16x16xf32, #tpu.memory_space<vmem>>, vector<1x16x16xf32>
    %3 = vector.shape_cast %2 : vector<1x16x16xf32> to vector<16x16xf32>
    %cst = arith.constant dense<0.000000e+00> : vector<16x16xf32>
    %4 = tpu.matmul %1, %3, %cst {dimension_numbers = #tpu.dot_dimension_numbers<[1], [0], [0], [1], [0, 0, 1, 1], [], []>} : vector<16x16xf32>, vector<16x16xf32>, vector<16x16xf32> -> vector<16x16xf32>
    %c1 = arith.constant 1 : index
    %c0_5 = arith.constant 0 : index
    %c0_6 = arith.constant 0 : index
    %5 = vector.load %arg3[%c1, %c0_5, %c0_6] : memref<3x16x16xf32, #tpu.memory_space<vmem>>, vector<1x16x16xf32>
    %6 = vector.shape_cast %5 : vector<1x16x16xf32> to vector<16x16xf32>
    %cst_7 = arith.constant dense<0.000000e+00> : vector<16x16xf32>
    %7 = tpu.matmul %1, %6, %cst_7 {dimension_numbers = #tpu.dot_dimension_numbers<[1], [0], [0], [1], [0, 0, 1, 1], [], []>} : vector<16x16xf32>, vector<16x16xf32>, vector<16x16xf32> -> vector<16x16xf32>
    %c2 = arith.constant 2 : index
    %c0_8 = arith.constant 0 : index
    %c0_9 = arith.constant 0 : index
    %8 = vector.load %arg3[%c2, %c0_8, %c0_9] : memref<3x16x16xf32, #tpu.memory_space<vmem>>, vector<1x16x16xf32>
    %9 = vector.shape_cast %8 : vector<1x16x16xf32> to vector<16x16xf32>
    %cst_10 = arith.constant dense<0.000000e+00> : vector<16x16xf32>
    %10 = tpu.matmul %1, %9, %cst_10 {dimension_numbers = #tpu.dot_dimension_numbers<[1], [0], [0], [1], [0, 0, 1, 1], [], []>} : vector<16x16xf32>, vector<16x16xf32>, vector<16x16xf32> -> vector<16x16xf32>
    %11 = tpu.concatenate %4, %7, %10 in 0 : vector<16x16xf32>, vector<16x16xf32>, vector<16x16xf32> -> vector<48x16xf32>
    %c0_11 = arith.constant 0 : index
    %c0_12 = arith.constant 0 : index
    %12 = vector.load %arg7[%c0_11, %c0_12] : memref<1x96xf32, #tpu.memory_space<vmem>>, vector<1x96xf32>
    %c0_13 = arith.constant 0 : index
    %c0_14 = arith.constant 0 : index
    %c0_15 = arith.constant 0 : index
    %c0_16 = arith.constant 0 : index
    %13 = vector.load %arg1[%c0_13, %c0_14, %c0_15, %c0_16] : memref<1x1x16x8xf32, #tpu.memory_space<vmem>>, vector<1x1x16x8xf32>
    %14 = vector.shape_cast %13 : vector<1x1x16x8xf32> to vector<16x8xf32>
    %cst_17 = arith.constant dense<0.000000e+00> : vector<48x8xf32>
    %15 = tpu.matmul %11, %14, %cst_17 {dimension_numbers = #tpu.dot_dimension_numbers<[1], [0], [0], [1], [0, 0, 1, 1], [], []>} : vector<48x16xf32>, vector<16x8xf32>, vector<48x8xf32> -> vector<48x8xf32>
    %c0_18 = arith.constant 0 : index
    %c0_19 = arith.constant 0 : index
    %c0_20 = arith.constant 0 : index
    %16 = vector.load %arg4[%c0_18, %c0_19, %c0_20] : memref<3x1x96xf32, #tpu.memory_space<vmem>>, vector<1x1x96xf32>
    %17 = vector.shape_cast %16 : vector<1x1x96xf32> to vector<1x96xf32>
    %18 = vector.extract_strided_slice %15 {offsets = [0, 0], sizes = [16, 1], strides = [1, 1]} : vector<48x8xf32> to vector<16x1xf32>
    %19 = vector.broadcast %18 : vector<16x1xf32> to vector<16x96xf32>
    %20 = vector.broadcast %17 : vector<1x96xf32> to vector<16x96xf32>
    %21 = arith.mulf %19, %20 : vector<16x96xf32>
    %c1_21 = arith.constant 1 : index
    %c0_22 = arith.constant 0 : index
    %c0_23 = arith.constant 0 : index
    %22 = vector.load %arg4[%c1_21, %c0_22, %c0_23] : memref<3x1x96xf32, #tpu.memory_space<vmem>>, vector<1x1x96xf32>
    %23 = vector.shape_cast %22 : vector<1x1x96xf32> to vector<1x96xf32>
    %24 = vector.extract_strided_slice %15 {offsets = [16, 0], sizes = [16, 1], strides = [1, 1]} : vector<48x8xf32> to vector<16x1xf32>
    %25 = vector.broadcast %24 : vector<16x1xf32> to vector<16x96xf32>
    %26 = vector.broadcast %23 : vector<1x96xf32> to vector<16x96xf32>
    %27 = arith.mulf %25, %26 : vector<16x96xf32>
    %28 = arith.addf %21, %27 : vector<16x96xf32>
    %c2_24 = arith.constant 2 : index
    %c0_25 = arith.constant 0 : index
    %c0_26 = arith.constant 0 : index
    %29 = vector.load %arg4[%c2_24, %c0_25, %c0_26] : memref<3x1x96xf32, #tpu.memory_space<vmem>>, vector<1x1x96xf32>
    %30 = vector.shape_cast %29 : vector<1x1x96xf32> to vector<1x96xf32>
    %31 = vector.extract_strided_slice %15 {offsets = [32, 0], sizes = [16, 1], strides = [1, 1]} : vector<48x8xf32> to vector<16x1xf32>
    %32 = vector.broadcast %31 : vector<16x1xf32> to vector<16x96xf32>
    %33 = vector.broadcast %30 : vector<1x96xf32> to vector<16x96xf32>
    %34 = arith.mulf %32, %33 : vector<16x96xf32>
    %35 = arith.addf %28, %34 : vector<16x96xf32>
    %36 = vector.broadcast %12 : vector<1x96xf32> to vector<16x96xf32>
    %37 = arith.addf %35, %36 : vector<16x96xf32>
    %c0_27 = arith.constant 0 : index
    %c0_28 = arith.constant 0 : index
    %c0_29 = arith.constant 0 : index
    %38 = vector.load %arg9[%c0_27, %c0_28, %c0_29] : memref<8x16x96xf32, #tpu.memory_space<vmem>>, vector<1x16x96xf32>
    %39 = vector.shape_cast %38 : vector<1x16x96xf32> to vector<16x96xf32>
    %40 = vector.shape_cast %37 : vector<16x96xf32> to vector<1x16x96xf32>
    tpu.vector_store %arg9[%c0_27, %c0_28, %c0_29], %40 {strides = array<i32>} : memref<8x16x96xf32, #tpu.memory_space<vmem>>, vector<1x16x96xf32>,
    %c0_30 = arith.constant 0 : index
    %c0_31 = arith.constant 0 : index
    %c0_32 = arith.constant 0 : index
    %41 = vector.load %arg4[%c0_30, %c0_31, %c0_32] : memref<3x1x96xf32, #tpu.memory_space<vmem>>, vector<1x1x96xf32>
    %42 = vector.shape_cast %41 : vector<1x1x96xf32> to vector<1x96xf32>
    %43 = vector.extract_strided_slice %15 {offsets = [0, 1], sizes = [16, 1], strides = [1, 1]} : vector<48x8xf32> to vector<16x1xf32>
    %44 = vector.broadcast %43 : vector<16x1xf32> to vector<16x96xf32>
    %45 = vector.broadcast %42 : vector<1x96xf32> to vector<16x96xf32>
    %46 = arith.mulf %44, %45 : vector<16x96xf32>
    %c1_33 = arith.constant 1 : index
    %c0_34 = arith.constant 0 : index
    %c0_35 = arith.constant 0 : index
    %47 = vector.load %arg4[%c1_33, %c0_34, %c0_35] : memref<3x1x96xf32, #tpu.memory_space<vmem>>, vector<1x1x96xf32>
    %48 = vector.shape_cast %47 : vector<1x1x96xf32> to vector<1x96xf32>
    %49 = vector.extract_strided_slice %15 {offsets = [16, 1], sizes = [16, 1], strides = [1, 1]} : vector<48x8xf32> to vector<16x1xf32>
    %50 = vector.broadcast %49 : vector<16x1xf32> to vector<16x96xf32>
    %51 = vector.broadcast %48 : vector<1x96xf32> to vector<16x96xf32>
    %52 = arith.mulf %50, %51 : vector<16x96xf32>
    %53 = arith.addf %46, %52 : vector<16x96xf32>
    %c2_36 = arith.constant 2 : index
    %c0_37 = arith.constant 0 : index
    %c0_38 = arith.constant 0 : index
    %54 = vector.load %arg4[%c2_36, %c0_37, %c0_38] : memref<3x1x96xf32, #tpu.memory_space<vmem>>, vector<1x1x96xf32>
    %55 = vector.shape_cast %54 : vector<1x1x96xf32> to vector<1x96xf32>
    %56 = vector.extract_strided_slice %15 {offsets = [32, 1], sizes = [16, 1], strides = [1, 1]} : vector<48x8xf32> to vector<16x1xf32>
    %57 = vector.broadcast %56 : vector<16x1xf32> to vector<16x96xf32>
    %58 = vector.broadcast %55 : vector<1x96xf32> to vector<16x96xf32>
    %59 = arith.mulf %57, %58 : vector<16x96xf32>
    %60 = arith.addf %53, %59 : vector<16x96xf32>
    %61 = vector.broadcast %12 : vector<1x96xf32> to vector<16x96xf32>
    %62 = arith.addf %60, %61 : vector<16x96xf32>
    %c1_39 = arith.constant 1 : index
    %c0_40 = arith.constant 0 : index
    %c0_41 = arith.constant 0 : index
    %63 = vector.load %arg9[%c1_39, %c0_40, %c0_41] : memref<8x16x96xf32, #tpu.memory_space<vmem>>, vector<1x16x96xf32>
    %64 = vector.shape_cast %63 : vector<1x16x96xf32> to vector<16x96xf32>
    %65 = vector.shape_cast %62 : vector<16x96xf32> to vector<1x16x96xf32>
    tpu.vector_store %arg9[%c1_39, %c0_40, %c0_41], %65 {strides = array<i32>} : memref<8x16x96xf32, #tpu.memory_space<vmem>>, vector<1x16x96xf32>,
    %c0_42 = arith.constant 0 : index
    %c0_43 = arith.constant 0 : index
    %c0_44 = arith.constant 0 : index
    %66 = vector.load %arg4[%c0_42, %c0_43, %c0_44] : memref<3x1x96xf32, #tpu.memory_space<vmem>>, vector<1x1x96xf32>
    %67 = vector.shape_cast %66 : vector<1x1x96xf32> to vector<1x96xf32>
    %68 = vector.extract_strided_slice %15 {offsets = [0, 2], sizes = [16, 1], strides = [1, 1]} : vector<48x8xf32> to vector<16x1xf32>
    %69 = vector.broadcast %68 : vector<16x1xf32> to vector<16x96xf32>
    %70 = vector.broadcast %67 : vector<1x96xf32> to vector<16x96xf32>
    %71 = arith.mulf %69, %70 : vector<16x96xf32>
    %c1_45 = arith.constant 1 : index
    %c0_46 = arith.constant 0 : index
    %c0_47 = arith.constant 0 : index
    %72 = vector.load %arg4[%c1_45, %c0_46, %c0_47] : memref<3x1x96xf32, #tpu.memory_space<vmem>>, vector<1x1x96xf32>
    %73 = vector.shape_cast %72 : vector<1x1x96xf32> to vector<1x96xf32>
    %74 = vector.extract_strided_slice %15 {offsets = [16, 2], sizes = [16, 1], strides = [1, 1]} : vector<48x8xf32> to vector<16x1xf32>
    %75 = vector.broadcast %74 : vector<16x1xf32> to vector<16x96xf32>
    %76 = vector.broadcast %73 : vector<1x96xf32> to vector<16x96xf32>
    %77 = arith.mulf %75, %76 : vector<16x96xf32>
    %78 = arith.addf %71, %77 : vector<16x96xf32>
    %c2_48 = arith.constant 2 : index
    %c0_49 = arith.constant 0 : index
    %c0_50 = arith.constant 0 : index
    %79 = vector.load %arg4[%c2_48, %c0_49, %c0_50] : memref<3x1x96xf32, #tpu.memory_space<vmem>>, vector<1x1x96xf32>
    %80 = vector.shape_cast %79 : vector<1x1x96xf32> to vector<1x96xf32>
    %81 = vector.extract_strided_slice %15 {offsets = [32, 2], sizes = [16, 1], strides = [1, 1]} : vector<48x8xf32> to vector<16x1xf32>
    %82 = vector.broadcast %81 : vector<16x1xf32> to vector<16x96xf32>
    %83 = vector.broadcast %80 : vector<1x96xf32> to vector<16x96xf32>
    %84 = arith.mulf %82, %83 : vector<16x96xf32>
    %85 = arith.addf %78, %84 : vector<16x96xf32>
    %86 = vector.broadcast %12 : vector<1x96xf32> to vector<16x96xf32>
    %87 = arith.addf %85, %86 : vector<16x96xf32>
    %c2_51 = arith.constant 2 : index
    %c0_52 = arith.constant 0 : index
    %c0_53 = arith.constant 0 : index
    %88 = vector.load %arg9[%c2_51, %c0_52, %c0_53] : memref<8x16x96xf32, #tpu.memory_space<vmem>>, vector<1x16x96xf32>
    %89 = vector.shape_cast %88 : vector<1x16x96xf32> to vector<16x96xf32>
    %90 = vector.shape_cast %87 : vector<16x96xf32> to vector<1x16x96xf32>
    tpu.vector_store %arg9[%c2_51, %c0_52, %c0_53], %90 {strides = array<i32>} : memref<8x16x96xf32, #tpu.memory_space<vmem>>, vector<1x16x96xf32>,
    %c0_54 = arith.constant 0 : index
    %c0_55 = arith.constant 0 : index
    %c0_56 = arith.constant 0 : index
    %91 = vector.load %arg4[%c0_54, %c0_55, %c0_56] : memref<3x1x96xf32, #tpu.memory_space<vmem>>, vector<1x1x96xf32>
    %92 = vector.shape_cast %91 : vector<1x1x96xf32> to vector<1x96xf32>
    %93 = vector.extract_strided_slice %15 {offsets = [0, 3], sizes = [16, 1], strides = [1, 1]} : vector<48x8xf32> to vector<16x1xf32>
    %94 = vector.broadcast %93 : vector<16x1xf32> to vector<16x96xf32>
    %95 = vector.broadcast %92 : vector<1x96xf32> to vector<16x96xf32>
    %96 = arith.mulf %94, %95 : vector<16x96xf32>
    %c1_57 = arith.constant 1 : index
    %c0_58 = arith.constant 0 : index
    %c0_59 = arith.constant 0 : index
    %97 = vector.load %arg4[%c1_57, %c0_58, %c0_59] : memref<3x1x96xf32, #tpu.memory_space<vmem>>, vector<1x1x96xf32>
    %98 = vector.shape_cast %97 : vector<1x1x96xf32> to vector<1x96xf32>
    %99 = vector.extract_strided_slice %15 {offsets = [16, 3], sizes = [16, 1], strides = [1, 1]} : vector<48x8xf32> to vector<16x1xf32>
    %100 = vector.broadcast %99 : vector<16x1xf32> to vector<16x96xf32>
    %101 = vector.broadcast %98 : vector<1x96xf32> to vector<16x96xf32>
    %102 = arith.mulf %100, %101 : vector<16x96xf32>
    %103 = arith.addf %96, %102 : vector<16x96xf32>
    %c2_60 = arith.constant 2 : index
    %c0_61 = arith.constant 0 : index
    %c0_62 = arith.constant 0 : index
    %104 = vector.load %arg4[%c2_60, %c0_61, %c0_62] : memref<3x1x96xf32, #tpu.memory_space<vmem>>, vector<1x1x96xf32>
    %105 = vector.shape_cast %104 : vector<1x1x96xf32> to vector<1x96xf32>
    %106 = vector.extract_strided_slice %15 {offsets = [32, 3], sizes = [16, 1], strides = [1, 1]} : vector<48x8xf32> to vector<16x1xf32>
    %107 = vector.broadcast %106 : vector<16x1xf32> to vector<16x96xf32>
    %108 = vector.broadcast %105 : vector<1x96xf32> to vector<16x96xf32>
    %109 = arith.mulf %107, %108 : vector<16x96xf32>
    %110 = arith.addf %103, %109 : vector<16x96xf32>
    %111 = vector.broadcast %12 : vector<1x96xf32> to vector<16x96xf32>
    %112 = arith.addf %110, %111 : vector<16x96xf32>
    %c3 = arith.constant 3 : index
    %c0_63 = arith.constant 0 : index
    %c0_64 = arith.constant 0 : index
    %113 = vector.load %arg9[%c3, %c0_63, %c0_64] : memref<8x16x96xf32, #tpu.memory_space<vmem>>, vector<1x16x96xf32>
    %114 = vector.shape_cast %113 : vector<1x16x96xf32> to vector<16x96xf32>
    %115 = vector.shape_cast %112 : vector<16x96xf32> to vector<1x16x96xf32>
    tpu.vector_store %arg9[%c3, %c0_63, %c0_64], %115 {strides = array<i32>} : memref<8x16x96xf32, #tpu.memory_space<vmem>>, vector<1x16x96xf32>,
    %c0_65 = arith.constant 0 : index
    %c0_66 = arith.constant 0 : index
    %c0_67 = arith.constant 0 : index
    %116 = vector.load %arg4[%c0_65, %c0_66, %c0_67] : memref<3x1x96xf32, #tpu.memory_space<vmem>>, vector<1x1x96xf32>
    %117 = vector.shape_cast %116 : vector<1x1x96xf32> to vector<1x96xf32>
    %118 = vector.extract_strided_slice %15 {offsets = [0, 4], sizes = [16, 1], strides = [1, 1]} : vector<48x8xf32> to vector<16x1xf32>
    %119 = vector.broadcast %118 : vector<16x1xf32> to vector<16x96xf32>
    %120 = vector.broadcast %117 : vector<1x96xf32> to vector<16x96xf32>
    %121 = arith.mulf %119, %120 : vector<16x96xf32>
    %c1_68 = arith.constant 1 : index
    %c0_69 = arith.constant 0 : index
    %c0_70 = arith.constant 0 : index
    %122 = vector.load %arg4[%c1_68, %c0_69, %c0_70] : memref<3x1x96xf32, #tpu.memory_space<vmem>>, vector<1x1x96xf32>
    %123 = vector.shape_cast %122 : vector<1x1x96xf32> to vector<1x96xf32>
    %124 = vector.extract_strided_slice %15 {offsets = [16, 4], sizes = [16, 1], strides = [1, 1]} : vector<48x8xf32> to vector<16x1xf32>
    %125 = vector.broadcast %124 : vector<16x1xf32> to vector<16x96xf32>
    %126 = vector.broadcast %123 : vector<1x96xf32> to vector<16x96xf32>
    %127 = arith.mulf %125, %126 : vector<16x96xf32>
    %128 = arith.addf %121, %127 : vector<16x96xf32>
    %c2_71 = arith.constant 2 : index
    %c0_72 = arith.constant 0 : index
    %c0_73 = arith.constant 0 : index
    %129 = vector.load %arg4[%c2_71, %c0_72, %c0_73] : memref<3x1x96xf32, #tpu.memory_space<vmem>>, vector<1x1x96xf32>
    %130 = vector.shape_cast %129 : vector<1x1x96xf32> to vector<1x96xf32>
    %131 = vector.extract_strided_slice %15 {offsets = [32, 4], sizes = [16, 1], strides = [1, 1]} : vector<48x8xf32> to vector<16x1xf32>
    %132 = vector.broadcast %131 : vector<16x1xf32> to vector<16x96xf32>
    %133 = vector.broadcast %130 : vector<1x96xf32> to vector<16x96xf32>
    %134 = arith.mulf %132, %133 : vector<16x96xf32>
    %135 = arith.addf %128, %134 : vector<16x96xf32>
    %136 = vector.broadcast %12 : vector<1x96xf32> to vector<16x96xf32>
    %137 = arith.addf %135, %136 : vector<16x96xf32>
    %c4 = arith.constant 4 : index
    %c0_74 = arith.constant 0 : index
    %c0_75 = arith.constant 0 : index
    %138 = vector.load %arg9[%c4, %c0_74, %c0_75] : memref<8x16x96xf32, #tpu.memory_space<vmem>>, vector<1x16x96xf32>
    %139 = vector.shape_cast %138 : vector<1x16x96xf32> to vector<16x96xf32>
    %140 = vector.shape_cast %137 : vector<16x96xf32> to vector<1x16x96xf32>
    tpu.vector_store %arg9[%c4, %c0_74, %c0_75], %140 {strides = array<i32>} : memref<8x16x96xf32, #tpu.memory_space<vmem>>, vector<1x16x96xf32>,
    %c0_76 = arith.constant 0 : index
    %c0_77 = arith.constant 0 : index
    %c0_78 = arith.constant 0 : index
    %141 = vector.load %arg4[%c0_76, %c0_77, %c0_78] : memref<3x1x96xf32, #tpu.memory_space<vmem>>, vector<1x1x96xf32>
    %142 = vector.shape_cast %141 : vector<1x1x96xf32> to vector<1x96xf32>
    %143 = vector.extract_strided_slice %15 {offsets = [0, 5], sizes = [16, 1], strides = [1, 1]} : vector<48x8xf32> to vector<16x1xf32>
    %144 = vector.broadcast %143 : vector<16x1xf32> to vector<16x96xf32>
    %145 = vector.broadcast %142 : vector<1x96xf32> to vector<16x96xf32>
    %146 = arith.mulf %144, %145 : vector<16x96xf32>
    %c1_79 = arith.constant 1 : index
    %c0_80 = arith.constant 0 : index
    %c0_81 = arith.constant 0 : index
    %147 = vector.load %arg4[%c1_79, %c0_80, %c0_81] : memref<3x1x96xf32, #tpu.memory_space<vmem>>, vector<1x1x96xf32>
    %148 = vector.shape_cast %147 : vector<1x1x96xf32> to vector<1x96xf32>
    %149 = vector.extract_strided_slice %15 {offsets = [16, 5], sizes = [16, 1], strides = [1, 1]} : vector<48x8xf32> to vector<16x1xf32>
    %150 = vector.broadcast %149 : vector<16x1xf32> to vector<16x96xf32>
    %151 = vector.broadcast %148 : vector<1x96xf32> to vector<16x96xf32>
    %152 = arith.mulf %150, %151 : vector<16x96xf32>
    %153 = arith.addf %146, %152 : vector<16x96xf32>
    %c2_82 = arith.constant 2 : index
    %c0_83 = arith.constant 0 : index
    %c0_84 = arith.constant 0 : index
    %154 = vector.load %arg4[%c2_82, %c0_83, %c0_84] : memref<3x1x96xf32, #tpu.memory_space<vmem>>, vector<1x1x96xf32>
    %155 = vector.shape_cast %154 : vector<1x1x96xf32> to vector<1x96xf32>
    %156 = vector.extract_strided_slice %15 {offsets = [32, 5], sizes = [16, 1], strides = [1, 1]} : vector<48x8xf32> to vector<16x1xf32>
    %157 = vector.broadcast %156 : vector<16x1xf32> to vector<16x96xf32>
    %158 = vector.broadcast %155 : vector<1x96xf32> to vector<16x96xf32>
    %159 = arith.mulf %157, %158 : vector<16x96xf32>
    %160 = arith.addf %153, %159 : vector<16x96xf32>
    %161 = vector.broadcast %12 : vector<1x96xf32> to vector<16x96xf32>
    %162 = arith.addf %160, %161 : vector<16x96xf32>
    %c5 = arith.constant 5 : index
    %c0_85 = arith.constant 0 : index
    %c0_86 = arith.constant 0 : index
    %163 = vector.load %arg9[%c5, %c0_85, %c0_86] : memref<8x16x96xf32, #tpu.memory_space<vmem>>, vector<1x16x96xf32>
    %164 = vector.shape_cast %163 : vector<1x16x96xf32> to vector<16x96xf32>
    %165 = vector.shape_cast %162 : vector<16x96xf32> to vector<1x16x96xf32>
    tpu.vector_store %arg9[%c5, %c0_85, %c0_86], %165 {strides = array<i32>} : memref<8x16x96xf32, #tpu.memory_space<vmem>>, vector<1x16x96xf32>,
    %c0_87 = arith.constant 0 : index
    %c0_88 = arith.constant 0 : index
    %c0_89 = arith.constant 0 : index
    %166 = vector.load %arg4[%c0_87, %c0_88, %c0_89] : memref<3x1x96xf32, #tpu.memory_space<vmem>>, vector<1x1x96xf32>
    %167 = vector.shape_cast %166 : vector<1x1x96xf32> to vector<1x96xf32>
    %168 = vector.extract_strided_slice %15 {offsets = [0, 6], sizes = [16, 1], strides = [1, 1]} : vector<48x8xf32> to vector<16x1xf32>
    %169 = vector.broadcast %168 : vector<16x1xf32> to vector<16x96xf32>
    %170 = vector.broadcast %167 : vector<1x96xf32> to vector<16x96xf32>
    %171 = arith.mulf %169, %170 : vector<16x96xf32>
    %c1_90 = arith.constant 1 : index
    %c0_91 = arith.constant 0 : index
    %c0_92 = arith.constant 0 : index
    %172 = vector.load %arg4[%c1_90, %c0_91, %c0_92] : memref<3x1x96xf32, #tpu.memory_space<vmem>>, vector<1x1x96xf32>
    %173 = vector.shape_cast %172 : vector<1x1x96xf32> to vector<1x96xf32>
    %174 = vector.extract_strided_slice %15 {offsets = [16, 6], sizes = [16, 1], strides = [1, 1]} : vector<48x8xf32> to vector<16x1xf32>
    %175 = vector.broadcast %174 : vector<16x1xf32> to vector<16x96xf32>
    %176 = vector.broadcast %173 : vector<1x96xf32> to vector<16x96xf32>
    %177 = arith.mulf %175, %176 : vector<16x96xf32>
    %178 = arith.addf %171, %177 : vector<16x96xf32>
    %c2_93 = arith.constant 2 : index
    %c0_94 = arith.constant 0 : index
    %c0_95 = arith.constant 0 : index
    %179 = vector.load %arg4[%c2_93, %c0_94, %c0_95] : memref<3x1x96xf32, #tpu.memory_space<vmem>>, vector<1x1x96xf32>
    %180 = vector.shape_cast %179 : vector<1x1x96xf32> to vector<1x96xf32>
    %181 = vector.extract_strided_slice %15 {offsets = [32, 6], sizes = [16, 1], strides = [1, 1]} : vector<48x8xf32> to vector<16x1xf32>
    %182 = vector.broadcast %181 : vector<16x1xf32> to vector<16x96xf32>
    %183 = vector.broadcast %180 : vector<1x96xf32> to vector<16x96xf32>
    %184 = arith.mulf %182, %183 : vector<16x96xf32>
    %185 = arith.addf %178, %184 : vector<16x96xf32>
    %186 = vector.broadcast %12 : vector<1x96xf32> to vector<16x96xf32>
    %187 = arith.addf %185, %186 : vector<16x96xf32>
    %c6 = arith.constant 6 : index
    %c0_96 = arith.constant 0 : index
    %c0_97 = arith.constant 0 : index
    %188 = vector.load %arg9[%c6, %c0_96, %c0_97] : memref<8x16x96xf32, #tpu.memory_space<vmem>>, vector<1x16x96xf32>
    %189 = vector.shape_cast %188 : vector<1x16x96xf32> to vector<16x96xf32>
    %190 = vector.shape_cast %187 : vector<16x96xf32> to vector<1x16x96xf32>
    tpu.vector_store %arg9[%c6, %c0_96, %c0_97], %190 {strides = array<i32>} : memref<8x16x96xf32, #tpu.memory_space<vmem>>, vector<1x16x96xf32>,
    %c0_98 = arith.constant 0 : index
    %c0_99 = arith.constant 0 : index
    %c0_100 = arith.constant 0 : index
    %191 = vector.load %arg4[%c0_98, %c0_99, %c0_100] : memref<3x1x96xf32, #tpu.memory_space<vmem>>, vector<1x1x96xf32>
    %192 = vector.shape_cast %191 : vector<1x1x96xf32> to vector<1x96xf32>
    %193 = vector.extract_strided_slice %15 {offsets = [0, 7], sizes = [16, 1], strides = [1, 1]} : vector<48x8xf32> to vector<16x1xf32>
    %194 = vector.broadcast %193 : vector<16x1xf32> to vector<16x96xf32>
    %195 = vector.broadcast %192 : vector<1x96xf32> to vector<16x96xf32>
    %196 = arith.mulf %194, %195 : vector<16x96xf32>
    %c1_101 = arith.constant 1 : index
    %c0_102 = arith.constant 0 : index
    %c0_103 = arith.constant 0 : index
    %197 = vector.load %arg4[%c1_101, %c0_102, %c0_103] : memref<3x1x96xf32, #tpu.memory_space<vmem>>, vector<1x1x96xf32>
    %198 = vector.shape_cast %197 : vector<1x1x96xf32> to vector<1x96xf32>
    %199 = vector.extract_strided_slice %15 {offsets = [16, 7], sizes = [16, 1], strides = [1, 1]} : vector<48x8xf32> to vector<16x1xf32>
    %200 = vector.broadcast %199 : vector<16x1xf32> to vector<16x96xf32>
    %201 = vector.broadcast %198 : vector<1x96xf32> to vector<16x96xf32>
    %202 = arith.mulf %200, %201 : vector<16x96xf32>
    %203 = arith.addf %196, %202 : vector<16x96xf32>
    %c2_104 = arith.constant 2 : index
    %c0_105 = arith.constant 0 : index
    %c0_106 = arith.constant 0 : index
    %204 = vector.load %arg4[%c2_104, %c0_105, %c0_106] : memref<3x1x96xf32, #tpu.memory_space<vmem>>, vector<1x1x96xf32>
    %205 = vector.shape_cast %204 : vector<1x1x96xf32> to vector<1x96xf32>
    %206 = vector.extract_strided_slice %15 {offsets = [32, 7], sizes = [16, 1], strides = [1, 1]} : vector<48x8xf32> to vector<16x1xf32>
    %207 = vector.broadcast %206 : vector<16x1xf32> to vector<16x96xf32>
    %208 = vector.broadcast %205 : vector<1x96xf32> to vector<16x96xf32>
    %209 = arith.mulf %207, %208 : vector<16x96xf32>
    %210 = arith.addf %203, %209 : vector<16x96xf32>
    %211 = vector.broadcast %12 : vector<1x96xf32> to vector<16x96xf32>
    %212 = arith.addf %210, %211 : vector<16x96xf32>
    %c7 = arith.constant 7 : index
    %c0_107 = arith.constant 0 : index
    %c0_108 = arith.constant 0 : index
    %213 = vector.load %arg9[%c7, %c0_107, %c0_108] : memref<8x16x96xf32, #tpu.memory_space<vmem>>, vector<1x16x96xf32>
    %214 = vector.shape_cast %213 : vector<1x16x96xf32> to vector<16x96xf32>
    %215 = vector.shape_cast %212 : vector<16x96xf32> to vector<1x16x96xf32>
    tpu.vector_store %arg9[%c7, %c0_107, %c0_108], %215 {strides = array<i32>} : memref<8x16x96xf32, #tpu.memory_space<vmem>>, vector<1x16x96xf32>,
    %cst_109 = arith.constant 0.000000e+00 : f32
    %216 = vector.broadcast %cst_109 : f32 to vector<16x32xf32>
    %c0_110 = arith.constant 0 : index
    %c0_111 = arith.constant 0 : index
    %c0_112 = arith.constant 0 : index
    %217 = vector.load %arg9[%c0_110, %c0_111, %c0_112] : memref<8x16x96xf32, #tpu.memory_space<vmem>>, vector<1x16x96xf32>
    %218 = vector.shape_cast %217 : vector<1x16x96xf32> to vector<16x96xf32>
    %cst_113 = arith.constant dense<0.000000e+00> : vector<48x32xf32>
    %219 = tpu.matmul %11, %216, %cst_113 {dimension_numbers = #tpu.dot_dimension_numbers<[1], [0], [0], [1], [0, 0, 1, 1], [], []>} : vector<48x16xf32>, vector<16x32xf32>, vector<48x32xf32> -> vector<48x32xf32>
    %220 = vector.extract_strided_slice %219 {offsets = [0, 0], sizes = [16, 32], strides = [1, 1]} : vector<48x32xf32> to vector<16x32xf32>
    %221 = vector.extract_strided_slice %219 {offsets = [16, 0], sizes = [16, 32], strides = [1, 1]} : vector<48x32xf32> to vector<16x32xf32>
    %222 = vector.extract_strided_slice %219 {offsets = [32, 0], sizes = [16, 32], strides = [1, 1]} : vector<48x32xf32> to vector<16x32xf32>
    %223 = tpu.concatenate %220, %221, %222 in 1 : vector<16x32xf32>, vector<16x32xf32>, vector<16x32xf32> -> vector<16x96xf32>
    %c0_114 = arith.constant 0 : index
    %c0_115 = arith.constant 0 : index
    %224 = vector.load %arg5[%c0_114, %c0_115] : memref<96x64xf32, #tpu.memory_space<vmem>>, vector<96x64xf32>
    %cst_116 = arith.constant dense<0.000000e+00> : vector<16x64xf32>
    %225 = tpu.matmul %223, %224, %cst_116 {dimension_numbers = #tpu.dot_dimension_numbers<[1], [0], [0], [1], [0, 0, 1, 1], [], []>} : vector<16x96xf32>, vector<96x64xf32>, vector<16x64xf32> -> vector<16x64xf32>
    %226 = vector.extract_strided_slice %218 {offsets = [0, 0], sizes = [16, 64], strides = [1, 1]} : vector<16x96xf32> to vector<16x64xf32>
    %227 = arith.addf %225, %226 : vector<16x64xf32>
    %228 = arith.negf %227 : vector<16x64xf32>
    %229 = math.exp %228 : vector<16x64xf32>
    %cst_117 = arith.constant 1.000000e+00 : f32
    %230 = vector.broadcast %cst_117 : f32 to vector<16x64xf32>
    %231 = arith.addf %230, %229 : vector<16x64xf32>
    %232 = arith.divf %230, %231 : vector<16x64xf32>
    %233 = vector.extract_strided_slice %232 {offsets = [0, 0], sizes = [16, 32], strides = [1, 1]} : vector<16x64xf32> to vector<16x32xf32>
    %234 = vector.extract_strided_slice %232 {offsets = [0, 32], sizes = [16, 32], strides = [1, 1]} : vector<16x64xf32> to vector<16x32xf32>
    %235 = arith.mulf %234, %216 : vector<16x32xf32>
    %cst_118 = arith.constant dense<0.000000e+00> : vector<48x32xf32>
    %236 = tpu.matmul %11, %235, %cst_118 {dimension_numbers = #tpu.dot_dimension_numbers<[1], [0], [0], [1], [0, 0, 1, 1], [], []>} : vector<48x16xf32>, vector<16x32xf32>, vector<48x32xf32> -> vector<48x32xf32>
    %237 = vector.extract_strided_slice %236 {offsets = [0, 0], sizes = [16, 32], strides = [1, 1]} : vector<48x32xf32> to vector<16x32xf32>
    %238 = vector.extract_strided_slice %236 {offsets = [16, 0], sizes = [16, 32], strides = [1, 1]} : vector<48x32xf32> to vector<16x32xf32>
    %239 = vector.extract_strided_slice %236 {offsets = [32, 0], sizes = [16, 32], strides = [1, 1]} : vector<48x32xf32> to vector<16x32xf32>
    %240 = tpu.concatenate %237, %238, %239 in 1 : vector<16x32xf32>, vector<16x32xf32>, vector<16x32xf32> -> vector<16x96xf32>
    %c0_119 = arith.constant 0 : index
    %c0_120 = arith.constant 0 : index
    %241 = vector.load %arg6[%c0_119, %c0_120] : memref<96x32xf32, #tpu.memory_space<vmem>>, vector<96x32xf32>
    %cst_121 = arith.constant dense<0.000000e+00> : vector<16x32xf32>
    %242 = tpu.matmul %240, %241, %cst_121 {dimension_numbers = #tpu.dot_dimension_numbers<[1], [0], [0], [1], [0, 0, 1, 1], [], []>} : vector<16x96xf32>, vector<96x32xf32>, vector<16x32xf32> -> vector<16x32xf32>
    %243 = vector.extract_strided_slice %218 {offsets = [0, 64], sizes = [16, 32], strides = [1, 1]} : vector<16x96xf32> to vector<16x32xf32>
    %244 = arith.addf %242, %243 : vector<16x32xf32>
    %245 = math.tanh %244 : vector<16x32xf32>
    %246 = arith.mulf %233, %245 : vector<16x32xf32>
    %cst_122 = arith.constant 1.000000e+00 : f32
    %247 = vector.broadcast %cst_122 : f32 to vector<16x32xf32>
    %248 = arith.subf %247, %233 : vector<16x32xf32>
    %249 = arith.mulf %248, %216 : vector<16x32xf32>
    %250 = arith.addf %246, %249 : vector<16x32xf32>
    %c0_123 = arith.constant 0 : index
    %c0_124 = arith.constant 0 : index
    %c0_125 = arith.constant 0 : index
    %251 = vector.load %arg8[%c0_123, %c0_124, %c0_125] : memref<1x16x256xf32, #tpu.memory_space<vmem>>, vector<1x16x32xf32>
    %252 = vector.shape_cast %251 : vector<1x16x32xf32> to vector<16x32xf32>
    %253 = vector.shape_cast %250 : vector<16x32xf32> to vector<1x16x32xf32>
    tpu.vector_store %arg8[%c0_123, %c0_124, %c0_125], %253 {strides = array<i32>} : memref<1x16x256xf32, #tpu.memory_space<vmem>>, vector<1x16x32xf32>,
    %c1_126 = arith.constant 1 : index
    %c0_127 = arith.constant 0 : index
    %c0_128 = arith.constant 0 : index
    %254 = vector.load %arg9[%c1_126, %c0_127, %c0_128] : memref<8x16x96xf32, #tpu.memory_space<vmem>>, vector<1x16x96xf32>
    %255 = vector.shape_cast %254 : vector<1x16x96xf32> to vector<16x96xf32>
    %cst_129 = arith.constant dense<0.000000e+00> : vector<48x32xf32>
    %256 = tpu.matmul %11, %250, %cst_129 {dimension_numbers = #tpu.dot_dimension_numbers<[1], [0], [0], [1], [0, 0, 1, 1], [], []>} : vector<48x16xf32>, vector<16x32xf32>, vector<48x32xf32> -> vector<48x32xf32>
    %257 = vector.extract_strided_slice %256 {offsets = [0, 0], sizes = [16, 32], strides = [1, 1]} : vector<48x32xf32> to vector<16x32xf32>
    %258 = vector.extract_strided_slice %256 {offsets = [16, 0], sizes = [16, 32], strides = [1, 1]} : vector<48x32xf32> to vector<16x32xf32>
    %259 = vector.extract_strided_slice %256 {offsets = [32, 0], sizes = [16, 32], strides = [1, 1]} : vector<48x32xf32> to vector<16x32xf32>
    %260 = tpu.concatenate %257, %258, %259 in 1 : vector<16x32xf32>, vector<16x32xf32>, vector<16x32xf32> -> vector<16x96xf32>
    %c0_130 = arith.constant 0 : index
    %c0_131 = arith.constant 0 : index
    %261 = vector.load %arg5[%c0_130, %c0_131] : memref<96x64xf32, #tpu.memory_space<vmem>>, vector<96x64xf32>
    %cst_132 = arith.constant dense<0.000000e+00> : vector<16x64xf32>
    %262 = tpu.matmul %260, %261, %cst_132 {dimension_numbers = #tpu.dot_dimension_numbers<[1], [0], [0], [1], [0, 0, 1, 1], [], []>} : vector<16x96xf32>, vector<96x64xf32>, vector<16x64xf32> -> vector<16x64xf32>
    %263 = vector.extract_strided_slice %255 {offsets = [0, 0], sizes = [16, 64], strides = [1, 1]} : vector<16x96xf32> to vector<16x64xf32>
    %264 = arith.addf %262, %263 : vector<16x64xf32>
    %265 = arith.negf %264 : vector<16x64xf32>
    %266 = math.exp %265 : vector<16x64xf32>
    %cst_133 = arith.constant 1.000000e+00 : f32
    %267 = vector.broadcast %cst_133 : f32 to vector<16x64xf32>
    %268 = arith.addf %267, %266 : vector<16x64xf32>
    %269 = arith.divf %267, %268 : vector<16x64xf32>
    %270 = vector.extract_strided_slice %269 {offsets = [0, 0], sizes = [16, 32], strides = [1, 1]} : vector<16x64xf32> to vector<16x32xf32>
    %271 = vector.extract_strided_slice %269 {offsets = [0, 32], sizes = [16, 32], strides = [1, 1]} : vector<16x64xf32> to vector<16x32xf32>
    %272 = arith.mulf %271, %250 : vector<16x32xf32>
    %cst_134 = arith.constant dense<0.000000e+00> : vector<48x32xf32>
    %273 = tpu.matmul %11, %272, %cst_134 {dimension_numbers = #tpu.dot_dimension_numbers<[1], [0], [0], [1], [0, 0, 1, 1], [], []>} : vector<48x16xf32>, vector<16x32xf32>, vector<48x32xf32> -> vector<48x32xf32>
    %274 = vector.extract_strided_slice %273 {offsets = [0, 0], sizes = [16, 32], strides = [1, 1]} : vector<48x32xf32> to vector<16x32xf32>
    %275 = vector.extract_strided_slice %273 {offsets = [16, 0], sizes = [16, 32], strides = [1, 1]} : vector<48x32xf32> to vector<16x32xf32>
    %276 = vector.extract_strided_slice %273 {offsets = [32, 0], sizes = [16, 32], strides = [1, 1]} : vector<48x32xf32> to vector<16x32xf32>
    %277 = tpu.concatenate %274, %275, %276 in 1 : vector<16x32xf32>, vector<16x32xf32>, vector<16x32xf32> -> vector<16x96xf32>
    %c0_135 = arith.constant 0 : index
    %c0_136 = arith.constant 0 : index
    %278 = vector.load %arg6[%c0_135, %c0_136] : memref<96x32xf32, #tpu.memory_space<vmem>>, vector<96x32xf32>
    %cst_137 = arith.constant dense<0.000000e+00> : vector<16x32xf32>
    %279 = tpu.matmul %277, %278, %cst_137 {dimension_numbers = #tpu.dot_dimension_numbers<[1], [0], [0], [1], [0, 0, 1, 1], [], []>} : vector<16x96xf32>, vector<96x32xf32>, vector<16x32xf32> -> vector<16x32xf32>
    %280 = vector.extract_strided_slice %255 {offsets = [0, 64], sizes = [16, 32], strides = [1, 1]} : vector<16x96xf32> to vector<16x32xf32>
    %281 = arith.addf %279, %280 : vector<16x32xf32>
    %282 = math.tanh %281 : vector<16x32xf32>
    %283 = arith.mulf %270, %282 : vector<16x32xf32>
    %cst_138 = arith.constant 1.000000e+00 : f32
    %284 = vector.broadcast %cst_138 : f32 to vector<16x32xf32>
    %285 = arith.subf %284, %270 : vector<16x32xf32>
    %286 = arith.mulf %285, %250 : vector<16x32xf32>
    %287 = arith.addf %283, %286 : vector<16x32xf32>
    %c0_139 = arith.constant 0 : index
    %c0_140 = arith.constant 0 : index
    %c32 = arith.constant 32 : index
    %288 = vector.load %arg8[%c0_139, %c0_140, %c32] : memref<1x16x256xf32, #tpu.memory_space<vmem>>, vector<1x16x32xf32>
    %289 = vector.shape_cast %288 : vector<1x16x32xf32> to vector<16x32xf32>
    %290 = vector.shape_cast %287 : vector<16x32xf32> to vector<1x16x32xf32>
    tpu.vector_store %arg8[%c0_139, %c0_140, %c32], %290 {strides = array<i32>} : memref<1x16x256xf32, #tpu.memory_space<vmem>>, vector<1x16x32xf32>,
    %c2_141 = arith.constant 2 : index
    %c0_142 = arith.constant 0 : index
    %c0_143 = arith.constant 0 : index
    %291 = vector.load %arg9[%c2_141, %c0_142, %c0_143] : memref<8x16x96xf32, #tpu.memory_space<vmem>>, vector<1x16x96xf32>
    %292 = vector.shape_cast %291 : vector<1x16x96xf32> to vector<16x96xf32>
    %cst_144 = arith.constant dense<0.000000e+00> : vector<48x32xf32>
    %293 = tpu.matmul %11, %287, %cst_144 {dimension_numbers = #tpu.dot_dimension_numbers<[1], [0], [0], [1], [0, 0, 1, 1], [], []>} : vector<48x16xf32>, vector<16x32xf32>, vector<48x32xf32> -> vector<48x32xf32>
    %294 = vector.extract_strided_slice %293 {offsets = [0, 0], sizes = [16, 32], strides = [1, 1]} : vector<48x32xf32> to vector<16x32xf32>
    %295 = vector.extract_strided_slice %293 {offsets = [16, 0], sizes = [16, 32], strides = [1, 1]} : vector<48x32xf32> to vector<16x32xf32>
    %296 = vector.extract_strided_slice %293 {offsets = [32, 0], sizes = [16, 32], strides = [1, 1]} : vector<48x32xf32> to vector<16x32xf32>
    %297 = tpu.concatenate %294, %295, %296 in 1 : vector<16x32xf32>, vector<16x32xf32>, vector<16x32xf32> -> vector<16x96xf32>
    %c0_145 = arith.constant 0 : index
    %c0_146 = arith.constant 0 : index
    %298 = vector.load %arg5[%c0_145, %c0_146] : memref<96x64xf32, #tpu.memory_space<vmem>>, vector<96x64xf32>
    %cst_147 = arith.constant dense<0.000000e+00> : vector<16x64xf32>
    %299 = tpu.matmul %297, %298, %cst_147 {dimension_numbers = #tpu.dot_dimension_numbers<[1], [0], [0], [1], [0, 0, 1, 1], [], []>} : vector<16x96xf32>, vector<96x64xf32>, vector<16x64xf32> -> vector<16x64xf32>
    %300 = vector.extract_strided_slice %292 {offsets = [0, 0], sizes = [16, 64], strides = [1, 1]} : vector<16x96xf32> to vector<16x64xf32>
    %301 = arith.addf %299, %300 : vector<16x64xf32>
    %302 = arith.negf %301 : vector<16x64xf32>
    %303 = math.exp %302 : vector<16x64xf32>
    %cst_148 = arith.constant 1.000000e+00 : f32
    %304 = vector.broadcast %cst_148 : f32 to vector<16x64xf32>
    %305 = arith.addf %304, %303 : vector<16x64xf32>
    %306 = arith.divf %304, %305 : vector<16x64xf32>
    %307 = vector.extract_strided_slice %306 {offsets = [0, 0], sizes = [16, 32], strides = [1, 1]} : vector<16x64xf32> to vector<16x32xf32>
    %308 = vector.extract_strided_slice %306 {offsets = [0, 32], sizes = [16, 32], strides = [1, 1]} : vector<16x64xf32> to vector<16x32xf32>
    %309 = arith.mulf %308, %287 : vector<16x32xf32>
    %cst_149 = arith.constant dense<0.000000e+00> : vector<48x32xf32>
    %310 = tpu.matmul %11, %309, %cst_149 {dimension_numbers = #tpu.dot_dimension_numbers<[1], [0], [0], [1], [0, 0, 1, 1], [], []>} : vector<48x16xf32>, vector<16x32xf32>, vector<48x32xf32> -> vector<48x32xf32>
    %311 = vector.extract_strided_slice %310 {offsets = [0, 0], sizes = [16, 32], strides = [1, 1]} : vector<48x32xf32> to vector<16x32xf32>
    %312 = vector.extract_strided_slice %310 {offsets = [16, 0], sizes = [16, 32], strides = [1, 1]} : vector<48x32xf32> to vector<16x32xf32>
    %313 = vector.extract_strided_slice %310 {offsets = [32, 0], sizes = [16, 32], strides = [1, 1]} : vector<48x32xf32> to vector<16x32xf32>
    %314 = tpu.concatenate %311, %312, %313 in 1 : vector<16x32xf32>, vector<16x32xf32>, vector<16x32xf32> -> vector<16x96xf32>
    %c0_150 = arith.constant 0 : index
    %c0_151 = arith.constant 0 : index
    %315 = vector.load %arg6[%c0_150, %c0_151] : memref<96x32xf32, #tpu.memory_space<vmem>>, vector<96x32xf32>
    %cst_152 = arith.constant dense<0.000000e+00> : vector<16x32xf32>
    %316 = tpu.matmul %314, %315, %cst_152 {dimension_numbers = #tpu.dot_dimension_numbers<[1], [0], [0], [1], [0, 0, 1, 1], [], []>} : vector<16x96xf32>, vector<96x32xf32>, vector<16x32xf32> -> vector<16x32xf32>
    %317 = vector.extract_strided_slice %292 {offsets = [0, 64], sizes = [16, 32], strides = [1, 1]} : vector<16x96xf32> to vector<16x32xf32>
    %318 = arith.addf %316, %317 : vector<16x32xf32>
    %319 = math.tanh %318 : vector<16x32xf32>
    %320 = arith.mulf %307, %319 : vector<16x32xf32>
    %cst_153 = arith.constant 1.000000e+00 : f32
    %321 = vector.broadcast %cst_153 : f32 to vector<16x32xf32>
    %322 = arith.subf %321, %307 : vector<16x32xf32>
    %323 = arith.mulf %322, %287 : vector<16x32xf32>
    %324 = arith.addf %320, %323 : vector<16x32xf32>
    %c0_154 = arith.constant 0 : index
    %c0_155 = arith.constant 0 : index
    %c64 = arith.constant 64 : index
    %325 = vector.load %arg8[%c0_154, %c0_155, %c64] : memref<1x16x256xf32, #tpu.memory_space<vmem>>, vector<1x16x32xf32>
    %326 = vector.shape_cast %325 : vector<1x16x32xf32> to vector<16x32xf32>
    %327 = vector.shape_cast %324 : vector<16x32xf32> to vector<1x16x32xf32>
    tpu.vector_store %arg8[%c0_154, %c0_155, %c64], %327 {strides = array<i32>} : memref<1x16x256xf32, #tpu.memory_space<vmem>>, vector<1x16x32xf32>,
    %c3_156 = arith.constant 3 : index
    %c0_157 = arith.constant 0 : index
    %c0_158 = arith.constant 0 : index
    %328 = vector.load %arg9[%c3_156, %c0_157, %c0_158] : memref<8x16x96xf32, #tpu.memory_space<vmem>>, vector<1x16x96xf32>
    %329 = vector.shape_cast %328 : vector<1x16x96xf32> to vector<16x96xf32>
    %cst_159 = arith.constant dense<0.000000e+00> : vector<48x32xf32>
    %330 = tpu.matmul %11, %324, %cst_159 {dimension_numbers = #tpu.dot_dimension_numbers<[1], [0], [0], [1], [0, 0, 1, 1], [], []>} : vector<48x16xf32>, vector<16x32xf32>, vector<48x32xf32> -> vector<48x32xf32>
    %331 = vector.extract_strided_slice %330 {offsets = [0, 0], sizes = [16, 32], strides = [1, 1]} : vector<48x32xf32> to vector<16x32xf32>
    %332 = vector.extract_strided_slice %330 {offsets = [16, 0], sizes = [16, 32], strides = [1, 1]} : vector<48x32xf32> to vector<16x32xf32>
    %333 = vector.extract_strided_slice %330 {offsets = [32, 0], sizes = [16, 32], strides = [1, 1]} : vector<48x32xf32> to vector<16x32xf32>
    %334 = tpu.concatenate %331, %332, %333 in 1 : vector<16x32xf32>, vector<16x32xf32>, vector<16x32xf32> -> vector<16x96xf32>
    %c0_160 = arith.constant 0 : index
    %c0_161 = arith.constant 0 : index
    %335 = vector.load %arg5[%c0_160, %c0_161] : memref<96x64xf32, #tpu.memory_space<vmem>>, vector<96x64xf32>
    %cst_162 = arith.constant dense<0.000000e+00> : vector<16x64xf32>
    %336 = tpu.matmul %334, %335, %cst_162 {dimension_numbers = #tpu.dot_dimension_numbers<[1], [0], [0], [1], [0, 0, 1, 1], [], []>} : vector<16x96xf32>, vector<96x64xf32>, vector<16x64xf32> -> vector<16x64xf32>
    %337 = vector.extract_strided_slice %329 {offsets = [0, 0], sizes = [16, 64], strides = [1, 1]} : vector<16x96xf32> to vector<16x64xf32>
    %338 = arith.addf %336, %337 : vector<16x64xf32>
    %339 = arith.negf %338 : vector<16x64xf32>
    %340 = math.exp %339 : vector<16x64xf32>
    %cst_163 = arith.constant 1.000000e+00 : f32
    %341 = vector.broadcast %cst_163 : f32 to vector<16x64xf32>
    %342 = arith.addf %341, %340 : vector<16x64xf32>
    %343 = arith.divf %341, %342 : vector<16x64xf32>
    %344 = vector.extract_strided_slice %343 {offsets = [0, 0], sizes = [16, 32], strides = [1, 1]} : vector<16x64xf32> to vector<16x32xf32>
    %345 = vector.extract_strided_slice %343 {offsets = [0, 32], sizes = [16, 32], strides = [1, 1]} : vector<16x64xf32> to vector<16x32xf32>
    %346 = arith.mulf %345, %324 : vector<16x32xf32>
    %cst_164 = arith.constant dense<0.000000e+00> : vector<48x32xf32>
    %347 = tpu.matmul %11, %346, %cst_164 {dimension_numbers = #tpu.dot_dimension_numbers<[1], [0], [0], [1], [0, 0, 1, 1], [], []>} : vector<48x16xf32>, vector<16x32xf32>, vector<48x32xf32> -> vector<48x32xf32>
    %348 = vector.extract_strided_slice %347 {offsets = [0, 0], sizes = [16, 32], strides = [1, 1]} : vector<48x32xf32> to vector<16x32xf32>
    %349 = vector.extract_strided_slice %347 {offsets = [16, 0], sizes = [16, 32], strides = [1, 1]} : vector<48x32xf32> to vector<16x32xf32>
    %350 = vector.extract_strided_slice %347 {offsets = [32, 0], sizes = [16, 32], strides = [1, 1]} : vector<48x32xf32> to vector<16x32xf32>
    %351 = tpu.concatenate %348, %349, %350 in 1 : vector<16x32xf32>, vector<16x32xf32>, vector<16x32xf32> -> vector<16x96xf32>
    %c0_165 = arith.constant 0 : index
    %c0_166 = arith.constant 0 : index
    %352 = vector.load %arg6[%c0_165, %c0_166] : memref<96x32xf32, #tpu.memory_space<vmem>>, vector<96x32xf32>
    %cst_167 = arith.constant dense<0.000000e+00> : vector<16x32xf32>
    %353 = tpu.matmul %351, %352, %cst_167 {dimension_numbers = #tpu.dot_dimension_numbers<[1], [0], [0], [1], [0, 0, 1, 1], [], []>} : vector<16x96xf32>, vector<96x32xf32>, vector<16x32xf32> -> vector<16x32xf32>
    %354 = vector.extract_strided_slice %329 {offsets = [0, 64], sizes = [16, 32], strides = [1, 1]} : vector<16x96xf32> to vector<16x32xf32>
    %355 = arith.addf %353, %354 : vector<16x32xf32>
    %356 = math.tanh %355 : vector<16x32xf32>
    %357 = arith.mulf %344, %356 : vector<16x32xf32>
    %cst_168 = arith.constant 1.000000e+00 : f32
    %358 = vector.broadcast %cst_168 : f32 to vector<16x32xf32>
    %359 = arith.subf %358, %344 : vector<16x32xf32>
    %360 = arith.mulf %359, %324 : vector<16x32xf32>
    %361 = arith.addf %357, %360 : vector<16x32xf32>
    %c0_169 = arith.constant 0 : index
    %c0_170 = arith.constant 0 : index
    %c96 = arith.constant 96 : index
    %362 = vector.load %arg8[%c0_169, %c0_170, %c96] : memref<1x16x256xf32, #tpu.memory_space<vmem>>, vector<1x16x32xf32>
    %363 = vector.shape_cast %362 : vector<1x16x32xf32> to vector<16x32xf32>
    %364 = vector.shape_cast %361 : vector<16x32xf32> to vector<1x16x32xf32>
    tpu.vector_store %arg8[%c0_169, %c0_170, %c96], %364 {strides = array<i32>} : memref<1x16x256xf32, #tpu.memory_space<vmem>>, vector<1x16x32xf32>,
    %c4_171 = arith.constant 4 : index
    %c0_172 = arith.constant 0 : index
    %c0_173 = arith.constant 0 : index
    %365 = vector.load %arg9[%c4_171, %c0_172, %c0_173] : memref<8x16x96xf32, #tpu.memory_space<vmem>>, vector<1x16x96xf32>
    %366 = vector.shape_cast %365 : vector<1x16x96xf32> to vector<16x96xf32>
    %cst_174 = arith.constant dense<0.000000e+00> : vector<48x32xf32>
    %367 = tpu.matmul %11, %361, %cst_174 {dimension_numbers = #tpu.dot_dimension_numbers<[1], [0], [0], [1], [0, 0, 1, 1], [], []>} : vector<48x16xf32>, vector<16x32xf32>, vector<48x32xf32> -> vector<48x32xf32>
    %368 = vector.extract_strided_slice %367 {offsets = [0, 0], sizes = [16, 32], strides = [1, 1]} : vector<48x32xf32> to vector<16x32xf32>
    %369 = vector.extract_strided_slice %367 {offsets = [16, 0], sizes = [16, 32], strides = [1, 1]} : vector<48x32xf32> to vector<16x32xf32>
    %370 = vector.extract_strided_slice %367 {offsets = [32, 0], sizes = [16, 32], strides = [1, 1]} : vector<48x32xf32> to vector<16x32xf32>
    %371 = tpu.concatenate %368, %369, %370 in 1 : vector<16x32xf32>, vector<16x32xf32>, vector<16x32xf32> -> vector<16x96xf32>
    %c0_175 = arith.constant 0 : index
    %c0_176 = arith.constant 0 : index
    %372 = vector.load %arg5[%c0_175, %c0_176] : memref<96x64xf32, #tpu.memory_space<vmem>>, vector<96x64xf32>
    %cst_177 = arith.constant dense<0.000000e+00> : vector<16x64xf32>
    %373 = tpu.matmul %371, %372, %cst_177 {dimension_numbers = #tpu.dot_dimension_numbers<[1], [0], [0], [1], [0, 0, 1, 1], [], []>} : vector<16x96xf32>, vector<96x64xf32>, vector<16x64xf32> -> vector<16x64xf32>
    %374 = vector.extract_strided_slice %366 {offsets = [0, 0], sizes = [16, 64], strides = [1, 1]} : vector<16x96xf32> to vector<16x64xf32>
    %375 = arith.addf %373, %374 : vector<16x64xf32>
    %376 = arith.negf %375 : vector<16x64xf32>
    %377 = math.exp %376 : vector<16x64xf32>
    %cst_178 = arith.constant 1.000000e+00 : f32
    %378 = vector.broadcast %cst_178 : f32 to vector<16x64xf32>
    %379 = arith.addf %378, %377 : vector<16x64xf32>
    %380 = arith.divf %378, %379 : vector<16x64xf32>
    %381 = vector.extract_strided_slice %380 {offsets = [0, 0], sizes = [16, 32], strides = [1, 1]} : vector<16x64xf32> to vector<16x32xf32>
    %382 = vector.extract_strided_slice %380 {offsets = [0, 32], sizes = [16, 32], strides = [1, 1]} : vector<16x64xf32> to vector<16x32xf32>
    %383 = arith.mulf %382, %361 : vector<16x32xf32>
    %cst_179 = arith.constant dense<0.000000e+00> : vector<48x32xf32>
    %384 = tpu.matmul %11, %383, %cst_179 {dimension_numbers = #tpu.dot_dimension_numbers<[1], [0], [0], [1], [0, 0, 1, 1], [], []>} : vector<48x16xf32>, vector<16x32xf32>, vector<48x32xf32> -> vector<48x32xf32>
    %385 = vector.extract_strided_slice %384 {offsets = [0, 0], sizes = [16, 32], strides = [1, 1]} : vector<48x32xf32> to vector<16x32xf32>
    %386 = vector.extract_strided_slice %384 {offsets = [16, 0], sizes = [16, 32], strides = [1, 1]} : vector<48x32xf32> to vector<16x32xf32>
    %387 = vector.extract_strided_slice %384 {offsets = [32, 0], sizes = [16, 32], strides = [1, 1]} : vector<48x32xf32> to vector<16x32xf32>
    %388 = tpu.concatenate %385, %386, %387 in 1 : vector<16x32xf32>, vector<16x32xf32>, vector<16x32xf32> -> vector<16x96xf32>
    %c0_180 = arith.constant 0 : index
    %c0_181 = arith.constant 0 : index
    %389 = vector.load %arg6[%c0_180, %c0_181] : memref<96x32xf32, #tpu.memory_space<vmem>>, vector<96x32xf32>
    %cst_182 = arith.constant dense<0.000000e+00> : vector<16x32xf32>
    %390 = tpu.matmul %388, %389, %cst_182 {dimension_numbers = #tpu.dot_dimension_numbers<[1], [0], [0], [1], [0, 0, 1, 1], [], []>} : vector<16x96xf32>, vector<96x32xf32>, vector<16x32xf32> -> vector<16x32xf32>
    %391 = vector.extract_strided_slice %366 {offsets = [0, 64], sizes = [16, 32], strides = [1, 1]} : vector<16x96xf32> to vector<16x32xf32>
    %392 = arith.addf %390, %391 : vector<16x32xf32>
    %393 = math.tanh %392 : vector<16x32xf32>
    %394 = arith.mulf %381, %393 : vector<16x32xf32>
    %cst_183 = arith.constant 1.000000e+00 : f32
    %395 = vector.broadcast %cst_183 : f32 to vector<16x32xf32>
    %396 = arith.subf %395, %381 : vector<16x32xf32>
    %397 = arith.mulf %396, %361 : vector<16x32xf32>
    %398 = arith.addf %394, %397 : vector<16x32xf32>
    %c0_184 = arith.constant 0 : index
    %c0_185 = arith.constant 0 : index
    %c128 = arith.constant 128 : index
    %399 = vector.load %arg8[%c0_184, %c0_185, %c128] : memref<1x16x256xf32, #tpu.memory_space<vmem>>, vector<1x16x32xf32>
    %400 = vector.shape_cast %399 : vector<1x16x32xf32> to vector<16x32xf32>
    %401 = vector.shape_cast %398 : vector<16x32xf32> to vector<1x16x32xf32>
    tpu.vector_store %arg8[%c0_184, %c0_185, %c128], %401 {strides = array<i32>} : memref<1x16x256xf32, #tpu.memory_space<vmem>>, vector<1x16x32xf32>,
    %c5_186 = arith.constant 5 : index
    %c0_187 = arith.constant 0 : index
    %c0_188 = arith.constant 0 : index
    %402 = vector.load %arg9[%c5_186, %c0_187, %c0_188] : memref<8x16x96xf32, #tpu.memory_space<vmem>>, vector<1x16x96xf32>
    %403 = vector.shape_cast %402 : vector<1x16x96xf32> to vector<16x96xf32>
    %cst_189 = arith.constant dense<0.000000e+00> : vector<48x32xf32>
    %404 = tpu.matmul %11, %398, %cst_189 {dimension_numbers = #tpu.dot_dimension_numbers<[1], [0], [0], [1], [0, 0, 1, 1], [], []>} : vector<48x16xf32>, vector<16x32xf32>, vector<48x32xf32> -> vector<48x32xf32>
    %405 = vector.extract_strided_slice %404 {offsets = [0, 0], sizes = [16, 32], strides = [1, 1]} : vector<48x32xf32> to vector<16x32xf32>
    %406 = vector.extract_strided_slice %404 {offsets = [16, 0], sizes = [16, 32], strides = [1, 1]} : vector<48x32xf32> to vector<16x32xf32>
    %407 = vector.extract_strided_slice %404 {offsets = [32, 0], sizes = [16, 32], strides = [1, 1]} : vector<48x32xf32> to vector<16x32xf32>
    %408 = tpu.concatenate %405, %406, %407 in 1 : vector<16x32xf32>, vector<16x32xf32>, vector<16x32xf32> -> vector<16x96xf32>
    %c0_190 = arith.constant 0 : index
    %c0_191 = arith.constant 0 : index
    %409 = vector.load %arg5[%c0_190, %c0_191] : memref<96x64xf32, #tpu.memory_space<vmem>>, vector<96x64xf32>
    %cst_192 = arith.constant dense<0.000000e+00> : vector<16x64xf32>
    %410 = tpu.matmul %408, %409, %cst_192 {dimension_numbers = #tpu.dot_dimension_numbers<[1], [0], [0], [1], [0, 0, 1, 1], [], []>} : vector<16x96xf32>, vector<96x64xf32>, vector<16x64xf32> -> vector<16x64xf32>
    %411 = vector.extract_strided_slice %403 {offsets = [0, 0], sizes = [16, 64], strides = [1, 1]} : vector<16x96xf32> to vector<16x64xf32>
    %412 = arith.addf %410, %411 : vector<16x64xf32>
    %413 = arith.negf %412 : vector<16x64xf32>
    %414 = math.exp %413 : vector<16x64xf32>
    %cst_193 = arith.constant 1.000000e+00 : f32
    %415 = vector.broadcast %cst_193 : f32 to vector<16x64xf32>
    %416 = arith.addf %415, %414 : vector<16x64xf32>
    %417 = arith.divf %415, %416 : vector<16x64xf32>
    %418 = vector.extract_strided_slice %417 {offsets = [0, 0], sizes = [16, 32], strides = [1, 1]} : vector<16x64xf32> to vector<16x32xf32>
    %419 = vector.extract_strided_slice %417 {offsets = [0, 32], sizes = [16, 32], strides = [1, 1]} : vector<16x64xf32> to vector<16x32xf32>
    %420 = arith.mulf %419, %398 : vector<16x32xf32>
    %cst_194 = arith.constant dense<0.000000e+00> : vector<48x32xf32>
    %421 = tpu.matmul %11, %420, %cst_194 {dimension_numbers = #tpu.dot_dimension_numbers<[1], [0], [0], [1], [0, 0, 1, 1], [], []>} : vector<48x16xf32>, vector<16x32xf32>, vector<48x32xf32> -> vector<48x32xf32>
    %422 = vector.extract_strided_slice %421 {offsets = [0, 0], sizes = [16, 32], strides = [1, 1]} : vector<48x32xf32> to vector<16x32xf32>
    %423 = vector.extract_strided_slice %421 {offsets = [16, 0], sizes = [16, 32], strides = [1, 1]} : vector<48x32xf32> to vector<16x32xf32>
    %424 = vector.extract_strided_slice %421 {offsets = [32, 0], sizes = [16, 32], strides = [1, 1]} : vector<48x32xf32> to vector<16x32xf32>
    %425 = tpu.concatenate %422, %423, %424 in 1 : vector<16x32xf32>, vector<16x32xf32>, vector<16x32xf32> -> vector<16x96xf32>
    %c0_195 = arith.constant 0 : index
    %c0_196 = arith.constant 0 : index
    %426 = vector.load %arg6[%c0_195, %c0_196] : memref<96x32xf32, #tpu.memory_space<vmem>>, vector<96x32xf32>
    %cst_197 = arith.constant dense<0.000000e+00> : vector<16x32xf32>
    %427 = tpu.matmul %425, %426, %cst_197 {dimension_numbers = #tpu.dot_dimension_numbers<[1], [0], [0], [1], [0, 0, 1, 1], [], []>} : vector<16x96xf32>, vector<96x32xf32>, vector<16x32xf32> -> vector<16x32xf32>
    %428 = vector.extract_strided_slice %403 {offsets = [0, 64], sizes = [16, 32], strides = [1, 1]} : vector<16x96xf32> to vector<16x32xf32>
    %429 = arith.addf %427, %428 : vector<16x32xf32>
    %430 = math.tanh %429 : vector<16x32xf32>
    %431 = arith.mulf %418, %430 : vector<16x32xf32>
    %cst_198 = arith.constant 1.000000e+00 : f32
    %432 = vector.broadcast %cst_198 : f32 to vector<16x32xf32>
    %433 = arith.subf %432, %418 : vector<16x32xf32>
    %434 = arith.mulf %433, %398 : vector<16x32xf32>
    %435 = arith.addf %431, %434 : vector<16x32xf32>
    %c0_199 = arith.constant 0 : index
    %c0_200 = arith.constant 0 : index
    %c160 = arith.constant 160 : index
    %436 = vector.load %arg8[%c0_199, %c0_200, %c160] : memref<1x16x256xf32, #tpu.memory_space<vmem>>, vector<1x16x32xf32>
    %437 = vector.shape_cast %436 : vector<1x16x32xf32> to vector<16x32xf32>
    %438 = vector.shape_cast %435 : vector<16x32xf32> to vector<1x16x32xf32>
    tpu.vector_store %arg8[%c0_199, %c0_200, %c160], %438 {strides = array<i32>} : memref<1x16x256xf32, #tpu.memory_space<vmem>>, vector<1x16x32xf32>,
    %c6_201 = arith.constant 6 : index
    %c0_202 = arith.constant 0 : index
    %c0_203 = arith.constant 0 : index
    %439 = vector.load %arg9[%c6_201, %c0_202, %c0_203] : memref<8x16x96xf32, #tpu.memory_space<vmem>>, vector<1x16x96xf32>
    %440 = vector.shape_cast %439 : vector<1x16x96xf32> to vector<16x96xf32>
    %cst_204 = arith.constant dense<0.000000e+00> : vector<48x32xf32>
    %441 = tpu.matmul %11, %435, %cst_204 {dimension_numbers = #tpu.dot_dimension_numbers<[1], [0], [0], [1], [0, 0, 1, 1], [], []>} : vector<48x16xf32>, vector<16x32xf32>, vector<48x32xf32> -> vector<48x32xf32>
    %442 = vector.extract_strided_slice %441 {offsets = [0, 0], sizes = [16, 32], strides = [1, 1]} : vector<48x32xf32> to vector<16x32xf32>
    %443 = vector.extract_strided_slice %441 {offsets = [16, 0], sizes = [16, 32], strides = [1, 1]} : vector<48x32xf32> to vector<16x32xf32>
    %444 = vector.extract_strided_slice %441 {offsets = [32, 0], sizes = [16, 32], strides = [1, 1]} : vector<48x32xf32> to vector<16x32xf32>
    %445 = tpu.concatenate %442, %443, %444 in 1 : vector<16x32xf32>, vector<16x32xf32>, vector<16x32xf32> -> vector<16x96xf32>
    %c0_205 = arith.constant 0 : index
    %c0_206 = arith.constant 0 : index
    %446 = vector.load %arg5[%c0_205, %c0_206] : memref<96x64xf32, #tpu.memory_space<vmem>>, vector<96x64xf32>
    %cst_207 = arith.constant dense<0.000000e+00> : vector<16x64xf32>
    %447 = tpu.matmul %445, %446, %cst_207 {dimension_numbers = #tpu.dot_dimension_numbers<[1], [0], [0], [1], [0, 0, 1, 1], [], []>} : vector<16x96xf32>, vector<96x64xf32>, vector<16x64xf32> -> vector<16x64xf32>
    %448 = vector.extract_strided_slice %440 {offsets = [0, 0], sizes = [16, 64], strides = [1, 1]} : vector<16x96xf32> to vector<16x64xf32>
    %449 = arith.addf %447, %448 : vector<16x64xf32>
    %450 = arith.negf %449 : vector<16x64xf32>
    %451 = math.exp %450 : vector<16x64xf32>
    %cst_208 = arith.constant 1.000000e+00 : f32
    %452 = vector.broadcast %cst_208 : f32 to vector<16x64xf32>
    %453 = arith.addf %452, %451 : vector<16x64xf32>
    %454 = arith.divf %452, %453 : vector<16x64xf32>
    %455 = vector.extract_strided_slice %454 {offsets = [0, 0], sizes = [16, 32], strides = [1, 1]} : vector<16x64xf32> to vector<16x32xf32>
    %456 = vector.extract_strided_slice %454 {offsets = [0, 32], sizes = [16, 32], strides = [1, 1]} : vector<16x64xf32> to vector<16x32xf32>
    %457 = arith.mulf %456, %435 : vector<16x32xf32>
    %cst_209 = arith.constant dense<0.000000e+00> : vector<48x32xf32>
    %458 = tpu.matmul %11, %457, %cst_209 {dimension_numbers = #tpu.dot_dimension_numbers<[1], [0], [0], [1], [0, 0, 1, 1], [], []>} : vector<48x16xf32>, vector<16x32xf32>, vector<48x32xf32> -> vector<48x32xf32>
    %459 = vector.extract_strided_slice %458 {offsets = [0, 0], sizes = [16, 32], strides = [1, 1]} : vector<48x32xf32> to vector<16x32xf32>
    %460 = vector.extract_strided_slice %458 {offsets = [16, 0], sizes = [16, 32], strides = [1, 1]} : vector<48x32xf32> to vector<16x32xf32>
    %461 = vector.extract_strided_slice %458 {offsets = [32, 0], sizes = [16, 32], strides = [1, 1]} : vector<48x32xf32> to vector<16x32xf32>
    %462 = tpu.concatenate %459, %460, %461 in 1 : vector<16x32xf32>, vector<16x32xf32>, vector<16x32xf32> -> vector<16x96xf32>
    %c0_210 = arith.constant 0 : index
    %c0_211 = arith.constant 0 : index
    %463 = vector.load %arg6[%c0_210, %c0_211] : memref<96x32xf32, #tpu.memory_space<vmem>>, vector<96x32xf32>
    %cst_212 = arith.constant dense<0.000000e+00> : vector<16x32xf32>
    %464 = tpu.matmul %462, %463, %cst_212 {dimension_numbers = #tpu.dot_dimension_numbers<[1], [0], [0], [1], [0, 0, 1, 1], [], []>} : vector<16x96xf32>, vector<96x32xf32>, vector<16x32xf32> -> vector<16x32xf32>
    %465 = vector.extract_strided_slice %440 {offsets = [0, 64], sizes = [16, 32], strides = [1, 1]} : vector<16x96xf32> to vector<16x32xf32>
    %466 = arith.addf %464, %465 : vector<16x32xf32>
    %467 = math.tanh %466 : vector<16x32xf32>
    %468 = arith.mulf %455, %467 : vector<16x32xf32>
    %cst_213 = arith.constant 1.000000e+00 : f32
    %469 = vector.broadcast %cst_213 : f32 to vector<16x32xf32>
    %470 = arith.subf %469, %455 : vector<16x32xf32>
    %471 = arith.mulf %470, %435 : vector<16x32xf32>
    %472 = arith.addf %468, %471 : vector<16x32xf32>
    %c0_214 = arith.constant 0 : index
    %c0_215 = arith.constant 0 : index
    %c192 = arith.constant 192 : index
    %473 = vector.load %arg8[%c0_214, %c0_215, %c192] : memref<1x16x256xf32, #tpu.memory_space<vmem>>, vector<1x16x32xf32>
    %474 = vector.shape_cast %473 : vector<1x16x32xf32> to vector<16x32xf32>
    %475 = vector.shape_cast %472 : vector<16x32xf32> to vector<1x16x32xf32>
    tpu.vector_store %arg8[%c0_214, %c0_215, %c192], %475 {strides = array<i32>} : memref<1x16x256xf32, #tpu.memory_space<vmem>>, vector<1x16x32xf32>,
    %c7_216 = arith.constant 7 : index
    %c0_217 = arith.constant 0 : index
    %c0_218 = arith.constant 0 : index
    %476 = vector.load %arg9[%c7_216, %c0_217, %c0_218] : memref<8x16x96xf32, #tpu.memory_space<vmem>>, vector<1x16x96xf32>
    %477 = vector.shape_cast %476 : vector<1x16x96xf32> to vector<16x96xf32>
    %cst_219 = arith.constant dense<0.000000e+00> : vector<48x32xf32>
    %478 = tpu.matmul %11, %472, %cst_219 {dimension_numbers = #tpu.dot_dimension_numbers<[1], [0], [0], [1], [0, 0, 1, 1], [], []>} : vector<48x16xf32>, vector<16x32xf32>, vector<48x32xf32> -> vector<48x32xf32>
    %479 = vector.extract_strided_slice %478 {offsets = [0, 0], sizes = [16, 32], strides = [1, 1]} : vector<48x32xf32> to vector<16x32xf32>
    %480 = vector.extract_strided_slice %478 {offsets = [16, 0], sizes = [16, 32], strides = [1, 1]} : vector<48x32xf32> to vector<16x32xf32>
    %481 = vector.extract_strided_slice %478 {offsets = [32, 0], sizes = [16, 32], strides = [1, 1]} : vector<48x32xf32> to vector<16x32xf32>
    %482 = tpu.concatenate %479, %480, %481 in 1 : vector<16x32xf32>, vector<16x32xf32>, vector<16x32xf32> -> vector<16x96xf32>
    %c0_220 = arith.constant 0 : index
    %c0_221 = arith.constant 0 : index
    %483 = vector.load %arg5[%c0_220, %c0_221] : memref<96x64xf32, #tpu.memory_space<vmem>>, vector<96x64xf32>
    %cst_222 = arith.constant dense<0.000000e+00> : vector<16x64xf32>
    %484 = tpu.matmul %482, %483, %cst_222 {dimension_numbers = #tpu.dot_dimension_numbers<[1], [0], [0], [1], [0, 0, 1, 1], [], []>} : vector<16x96xf32>, vector<96x64xf32>, vector<16x64xf32> -> vector<16x64xf32>
    %485 = vector.extract_strided_slice %477 {offsets = [0, 0], sizes = [16, 64], strides = [1, 1]} : vector<16x96xf32> to vector<16x64xf32>
    %486 = arith.addf %484, %485 : vector<16x64xf32>
    %487 = arith.negf %486 : vector<16x64xf32>
    %488 = math.exp %487 : vector<16x64xf32>
    %cst_223 = arith.constant 1.000000e+00 : f32
    %489 = vector.broadcast %cst_223 : f32 to vector<16x64xf32>
    %490 = arith.addf %489, %488 : vector<16x64xf32>
    %491 = arith.divf %489, %490 : vector<16x64xf32>
    %492 = vector.extract_strided_slice %491 {offsets = [0, 0], sizes = [16, 32], strides = [1, 1]} : vector<16x64xf32> to vector<16x32xf32>
    %493 = vector.extract_strided_slice %491 {offsets = [0, 32], sizes = [16, 32], strides = [1, 1]} : vector<16x64xf32> to vector<16x32xf32>
    %494 = arith.mulf %493, %472 : vector<16x32xf32>
    %cst_224 = arith.constant dense<0.000000e+00> : vector<48x32xf32>
    %495 = tpu.matmul %11, %494, %cst_224 {dimension_numbers = #tpu.dot_dimension_numbers<[1], [0], [0], [1], [0, 0, 1, 1], [], []>} : vector<48x16xf32>, vector<16x32xf32>, vector<48x32xf32> -> vector<48x32xf32>
    %496 = vector.extract_strided_slice %495 {offsets = [0, 0], sizes = [16, 32], strides = [1, 1]} : vector<48x32xf32> to vector<16x32xf32>
    %497 = vector.extract_strided_slice %495 {offsets = [16, 0], sizes = [16, 32], strides = [1, 1]} : vector<48x32xf32> to vector<16x32xf32>
    %498 = vector.extract_strided_slice %495 {offsets = [32, 0], sizes = [16, 32], strides = [1, 1]} : vector<48x32xf32> to vector<16x32xf32>
    %499 = tpu.concatenate %496, %497, %498 in 1 : vector<16x32xf32>, vector<16x32xf32>, vector<16x32xf32> -> vector<16x96xf32>
    %c0_225 = arith.constant 0 : index
    %c0_226 = arith.constant 0 : index
    %500 = vector.load %arg6[%c0_225, %c0_226] : memref<96x32xf32, #tpu.memory_space<vmem>>, vector<96x32xf32>
    %cst_227 = arith.constant dense<0.000000e+00> : vector<16x32xf32>
    %501 = tpu.matmul %499, %500, %cst_227 {dimension_numbers = #tpu.dot_dimension_numbers<[1], [0], [0], [1], [0, 0, 1, 1], [], []>} : vector<16x96xf32>, vector<96x32xf32>, vector<16x32xf32> -> vector<16x32xf32>
    %502 = vector.extract_strided_slice %477 {offsets = [0, 64], sizes = [16, 32], strides = [1, 1]} : vector<16x96xf32> to vector<16x32xf32>
    %503 = arith.addf %501, %502 : vector<16x32xf32>
    %504 = math.tanh %503 : vector<16x32xf32>
    %505 = arith.mulf %492, %504 : vector<16x32xf32>
    %cst_228 = arith.constant 1.000000e+00 : f32
    %506 = vector.broadcast %cst_228 : f32 to vector<16x32xf32>
    %507 = arith.subf %506, %492 : vector<16x32xf32>
    %508 = arith.mulf %507, %472 : vector<16x32xf32>
    %509 = arith.addf %505, %508 : vector<16x32xf32>
    %c0_229 = arith.constant 0 : index
    %c0_230 = arith.constant 0 : index
    %c224 = arith.constant 224 : index
    %510 = vector.load %arg8[%c0_229, %c0_230, %c224] : memref<1x16x256xf32, #tpu.memory_space<vmem>>, vector<1x16x32xf32>
    %511 = vector.shape_cast %510 : vector<1x16x32xf32> to vector<16x32xf32>
    %512 = vector.shape_cast %509 : vector<16x32xf32> to vector<1x16x32xf32>
    tpu.vector_store %arg8[%c0_229, %c0_230, %c224], %512 {strides = array<i32>} : memref<1x16x256xf32, #tpu.memory_space<vmem>>, vector<1x16x32xf32>,
    return
  }
  func.func @transform_0(%arg0: i32) -> (i32, i32, i32, i32) {
    %c0_i32 = arith.constant 0 : i32
    %c0_i32_0 = arith.constant 0 : i32
    %c0_i32_1 = arith.constant 0 : i32
    %c0_i32_2 = arith.constant 0 : i32
    return %arg0, %c0_i32, %c0_i32_0, %c0_i32_1 : i32, i32, i32, i32
  }
  func.func @transform_1(%arg0: i32) -> (i32, i32, i32) {
    %c0_i32 = arith.constant 0 : i32
    %c0_i32_0 = arith.constant 0 : i32
    %c0_i32_1 = arith.constant 0 : i32
    return %arg0, %c0_i32, %c0_i32_0 : i32, i32, i32
  }
  func.func @transform_2(%arg0: i32) -> (i32, i32, i32) {
    %c0_i32 = arith.constant 0 : i32
    %c0_i32_0 = arith.constant 0 : i32
    %c0_i32_1 = arith.constant 0 : i32
    %c0_i32_2 = arith.constant 0 : i32
    return %c0_i32, %c0_i32_0, %c0_i32_1 : i32, i32, i32
  }
  func.func @transform_3(%arg0: i32) -> (i32, i32, i32) {
    %c0_i32 = arith.constant 0 : i32
    %c0_i32_0 = arith.constant 0 : i32
    %c0_i32_1 = arith.constant 0 : i32
    %c0_i32_2 = arith.constant 0 : i32
    return %c0_i32, %c0_i32_0, %c0_i32_1 : i32, i32, i32
  }
  func.func @transform_4(%arg0: i32) -> (i32, i32) {
    %c0_i32 = arith.constant 0 : i32
    %c0_i32_0 = arith.constant 0 : i32
    %c0_i32_1 = arith.constant 0 : i32
    return %c0_i32, %c0_i32_0 : i32, i32
  }
  func.func @transform_5(%arg0: i32) -> (i32, i32) {
    %c0_i32 = arith.constant 0 : i32
    %c0_i32_0 = arith.constant 0 : i32
    %c0_i32_1 = arith.constant 0 : i32
    return %c0_i32, %c0_i32_0 : i32, i32
  }
  func.func @transform_6(%arg0: i32) -> (i32, i32) {
    %c0_i32 = arith.constant 0 : i32
    %c0_i32_0 = arith.constant 0 : i32
    %c0_i32_1 = arith.constant 0 : i32
    return %c0_i32, %c0_i32_0 : i32, i32
  }
  func.func @transform_7(%arg0: i32) -> (i32, i32, i32) {
    %c0_i32 = arith.constant 0 : i32
    %c0_i32_0 = arith.constant 0 : i32
    %c0_i32_1 = arith.constant 0 : i32
    return %arg0, %c0_i32, %c0_i32_0 : i32, i32, i32
  }
}

</mosaic_0001>

<bundles_post_ra>
// kernel: stmeta_gcru_encoder.1
= control target key start
LH: loop header
LB: loop body
LE: loop exit
PB: predicated region body
PF: predicated region fallthrough
CT: control target
= control target key end

     0   :  { %s3571_s24 = smov 0   ;;  %s4922_s0 = inlined_call_operand.vmem [shape: f32[2,1,16,8], index: 0, kind: input, shape index: {}]   ;;  %s4923_s1 = inlined_call_operand.vmem [shape: f32[2,16,16], index: 1, kind: input, shape index: {}]   ;;  %s4924_s2 = inlined_call_operand.vmem [shape: f32[3,16,16], index: 2, kind: input, shape index: {}]   ;;  %s4925_s3 = inlined_call_operand.vmem [shape: f32[3,1,96], index: 3, kind: input, shape index: {}]   ;;  %s4926_s4 = inlined_call_operand.vmem [shape: f32[96,64], index: 4, kind: input, shape index: {}]   ;;  %s4927_s5 = inlined_call_operand.vmem [shape: f32[96,32], index: 5, kind: input, shape index: {}]   ;;  %s4928_s6 = inlined_call_operand.vmem [shape: f32[1,96], index: 6, kind: input, shape index: {}]   ;;  %s4929_s7 = inlined_call_operand.vmem [shape: f32[2,16,256], index: 7, kind: output, shape index: {}]  }
   0x1 LB: > { %s3110_s25 = sadd.s32 4294967295, %s3517_s24   ;;  %p3114_p0 = scmp.ge.s32.totalorder %s3517_s24, 1  ;;  %s3517_s24 = sphi %s3571_s24, %s17_s24  }
   0x2   : > { %p247_p1 = scmp.lt.s32.totalorder %s3517_s24, 3 }
   0x4   : > { %p248_p2 = pnand %p3114_p0, %p247_p1 }
   0x5   : > { %p284_p3 = scmp.lt.s32.totalorder (!%p248_p2), %s3110_s25, 1  ;;  %s3521_s22 = smov (!%p248_p2), 32  }
   0x6   : > { %251 = sbr.rel (%p248_p2) target bundleno = 8152 (0x1fd8), region = 48  ;;  %s3522_s23 = smov (!%p248_p2), 64  }
   0x7   : > { %s3523_s16 = smov (!%p248_p2), 96  }
   0xb   : > { %v302_v0 = vld [vmem:[%s4924_s2 + $0x8] sm:$0xff]  ;;  %v301_v1 = vld [vmem:[%s4924_s2] sm:$0xff]  ;;  %v3124_v2 = vld [vmem:[%s4924_s2 + $0x18] sm:$0xff]  ;;  %s4931_s25 = smov (!%p284_p3, %s3110_s25), 1  ;;  %vm303_vm0 = vcmask 130048   ;;  %v3519_v10 = vmov 0.0  }
   0xc   : > { %324 = vmatpush.msra.mxu0 %v302_v0  ;;  %350 = vmatpush.msra.mxu1 %v3124_v2  ;;  %v3123_v3 = vld [vmem:[%s4924_s2 + $0x10] sm:$0xff]  ;;  %v3128_v4 = vld [vmem:[%s4924_s2 + $0x28] sm:$0xff]  ;;  %v3127_v5 = vld [vmem:[%s4924_s2 + $0x20] sm:$0xff]  ;;  %s3299_s15 = sshll.u32 %s4931_s25, 4  ;;  %v3520_v17 = vmov 0   ;;  %vm500_vm1 = vcmask 785408  }
   0xd   : > { %376 = vmatpush.msra.mxu2 %v3128_v4  ;;  %s293_s18 = scalar_lea.vmem %s4923_s1, %s3299_s15  ;;  %s288_s21 = scalar_lea.vmem %s4922_s0, %s3299_s15  ;;  %3324 = vset.pattern.permute.xlu2 %v3520_v17  ;;  %v3677_v30 = vld [vmem:[%s4926_s4 + $0x58] sm:$0xff]  ;;  %v3682_v31 = vld [vmem:[%s4926_s4 + $0x50] sm:$0xff]  ;;  %v3689_v32 = vld [vmem:[%s4926_s4 + $0x48] sm:$0xff]  ;;  %vm913_vm2 = vcmask 261120   ;;  %vm916_vm3 = vcmask 523264  }
   0xe   : > { %325 = vmatpush.msra.mxu0 %v301_v1  ;;  %351 = vmatpush.msra.mxu1 %v3123_v3  ;;  %v299_v6 = vld [vmem:[%s293_s18] sm:$0xff]  ;;  %v387_v7 = vld [vmem:[%s288_s21 + $0x8] sm:$0xff]  ;;  %v3704_v34 = vld [vmem:[%s4926_s4 + $0x38] sm:$0xff]  ;;  %s3301_s27 = sshll.u32 %s4931_s25, 5 }
   0xf   : > { %377 = vmatpush.msra.mxu2 %v3127_v5  ;;  %3121 = vmatmul.msk.f32.vlgmr.msra.gmra.mxu0 %vm303_vm0, %v299_v6  ;;  %v300_v8 = vld [vmem:[%s293_s18 + $0x8] sm:$0xff]  ;;  %v386_v9 = vld [vmem:[%s288_s21] sm:$0xff]  ;;  %v3710_v35 = vld [vmem:[%s4926_s4 + $0x30] sm:$0xff]  ;;  %s3928_s30 = scalar_lea.vmem %s4929_s7, %s3301_s27 }
  0x10   : > { %3125 = vmatmul.msk.f32.vlgmr.msra.gmra.mxu1 %vm303_vm0, %v299_v6  ;;  %3129 = vmatmul.msk.f32.vlgmr.msra.gmra.mxu2 %vm303_vm0, %v299_v6  ;;  %v3698_v33 = vld [vmem:[%s4926_s4 + $0x40] sm:$0xff]  ;;  %v3719_v36 = vld [vmem:[%s4926_s4 + $0x28] sm:$0xff]  ;;  %v3733_v38 = vld [vmem:[%s4926_s4 + $0x18] sm:$0xff] }
  0x11   : > { %420 = vmatpush.msra.mxu3 %v387_v7  ;;  %877 = vmatpush.msrb.mxu0 %v3519_v10  ;;  %v3726_v37 = vld [vmem:[%s4926_s4 + $0x20] sm:$0xff]  ;;  %v3740_v39 = vld [vmem:[%s4926_s4 + $0x10] sm:$0xff]  ;;  %v3746_v40 = vld [vmem:[%s4926_s4 + $0x8] sm:$0xff] }
  0x12   : > { %3325 = vset.pattern.permute.xlu0 %v3520_v17  ;;  %3326 = vset.pattern.permute.xlu1 %v3520_v17  ;;  %v3754_v41 = vld [vmem:[%s4926_s4] sm:$0xff] }
  0x13   : > { %421 = vmatpush.msra.mxu3 %v386_v9  ;;  %941 = vmatpush.msrb.mxu1 %v3677_v30  ;;  %v3389_v44 = vld [vmem:[%s4925_s3 + $0x1] ss:$0 sm:$0xff]  ;;  %v3388_v45 = vld [vmem:[%s4925_s3] ss:$0 sm:$0xff]  ;;  %v3390_v47 = vld [vmem:[%s4925_s3 + $0x2] ss:$0 sm:$0xff] }
  0x14   : > { %1203 = vmatpush.msra.mxu0 %v3677_v30  ;;  %v3770_v51 = vld [vmem:[%s4928_s6] ss:$0 sm:$0xff] }
  0x15   : > { %942 = vmatpush.msrb.mxu1 %v3682_v31 }
  0x16   : > { %1204 = vmatpush.msra.mxu0 %v3682_v31 }
  0x17   : > { %3122 = vmatmul.msk.f32.gmra.mxu0 %vm303_vm0, %v300_v8  ;;  %943 = vmatpush.msrb.mxu1 %v3689_v32 }
  0x18   : > { %3126 = vmatmul.msk.f32.gmra.mxu1 %vm303_vm0, %v300_v8  ;;  %3130 = vmatmul.msk.f32.gmra.mxu2 %vm303_vm0, %v300_v8 }
  0x19   : > { %1205 = vmatpush.msra.mxu0 %v3689_v32  ;;  %944 = vmatpush.msrb.mxu1 %v3698_v33 }
  0x1b   : > { %1206 = vmatpush.msra.mxu0 %v3698_v33  ;;  %945 = vmatpush.msrb.mxu1 %v3704_v34 }
  0x1d   : > { %1207 = vmatpush.msra.mxu0 %v3704_v34  ;;  %946 = vmatpush.msrb.mxu1 %v3710_v35 }
  0x1f   : > { %1208 = vmatpush.msra.mxu0 %v3710_v35  ;;  %947 = vmatpush.msrb.mxu1 %v3719_v36 }
  0x21   : > { %1209 = vmatpush.msra.mxu0 %v3719_v36  ;;  %948 = vmatpush.msrb.mxu1 %v3726_v37 }
  0x23   : > { %1210 = vmatpush.msra.mxu0 %v3726_v37  ;;  %949 = vmatpush.msrb.mxu1 %v3733_v38 }
  0x25   : > { %1211 = vmatpush.msra.mxu0 %v3733_v38  ;;  %950 = vmatpush.msrb.mxu1 %v3740_v39 }
  0x27   : > { %1212 = vmatpush.msra.mxu0 %v3740_v39  ;;  %951 = vmatpush.msrb.mxu1 %v3746_v40 }
  0x29   : > { %1213 = vmatpush.msra.mxu0 %v3746_v40  ;;  %952 = vmatpush.msrb.mxu1 %v3754_v41 }
  0x2b   : > { %1214 = vmatpush.msra.mxu0 %v3754_v41 }
  0x8c   : > { %v3612_v11 = vpop.f32.mrf.mxu0 }
  0x8d   : > { %3131 = vmatmul.msk.f32.vlgmr.msra.gmra.mxu3 %vm303_vm0, %v3612_v11  ;;  %3153 = vmatmul.msk.f32.vlgmr.msrb.gmra.mxu0 %vm303_vm0, %v3612_v11  ;;  %v3624_v13 = vpop.f32.mrf.mxu1 }
  0x93   : > { %v3636_v15 = vpop.f32.mrf.mxu2 }
  0x94   : > { %v3618_v12 = vpop.f32.mrf.mxu0 }
  0x95   : > { %3132 = vmatmul.msk.f32.gmra.mxu3 %vm303_vm0, %v3618_v12  ;;  %3154 = vmatmul.msk.f32.gmra.mxu0 %vm303_vm0, %v3618_v12  ;;  %v3630_v14 = vpop.f32.mrf.mxu1 }
  0x9b   : > { %v3642_v16 = vpop.f32.mrf.mxu2 }
  0x9d   : > { %3133 = vmatmul.msk.f32.gmra.mxu3 %vm303_vm0, %v3624_v13  ;;  %3155 = vmatmul.msk.f32.gmra.mxu0 %vm303_vm0, %v3624_v13 }
  0xa5   : > { %3134 = vmatmul.msk.f32.gmra.mxu3 %vm303_vm0, %v3630_v14  ;;  %3156 = vmatmul.msk.f32.gmra.mxu0 %vm303_vm0, %v3630_v14 }
  0xad   : > { %3135 = vmatmul.msk.f32.gmra.mxu3 %vm303_vm0, %v3636_v15  ;;  %3157 = vmatmul.msk.f32.gmra.mxu0 %vm303_vm0, %v3636_v15 }
  0xb5   : > { %3136 = vmatmul.msk.f32.gmra.mxu3 %vm303_vm0, %v3642_v16  ;;  %3158 = vmatmul.msk.f32.gmra.mxu0 %vm303_vm0, %v3642_v16 }
 0x10a   : > { %v3648_v18 = vpop.f32.mrf.mxu0 }
 0x110   : > { %v3650_v19 = vpop.f32.mrf.mxu3 }
 0x112   : > { %v3652_v20 = vpop.f32.mrf.mxu0 }
 0x118   : > { %v3654_v21 = vpop.f32.mrf.mxu3 }
 0x119   : > { %449 = vperm.xlu2 %3324, %v3654_v21  }
 0x11a   : > { %v885_v22 = vpop.f32.mrf.mxu0 }
 0x11b   : > { %899 = vrot.lane.b32.xlu0 %v885_v22, %s3521_s22 }
 0x120   : > { %v3658_v23 = vpop.f32.mrf.mxu3 }
 0x122   : > { %v888_v24 = vpop.f32.mrf.mxu0 }
 0x123   : > { %901 = vrot.lane.b32.xlu1 %v888_v24, %s3521_s22 }
 0x128   : > { %v3661_v25 = vpop.f32.mrf.mxu3 }
 0x129   : > { %466 = vperm.xlu2 %3324, %v3661_v25  }
 0x12a   : > { %v891_v26 = vpop.f32.mrf.mxu0 }
 0x12b   : > { %907 = vrot.lane.b32.xlu0 %v891_v26, %s3522_s23 }
 0x130   : > { %v3665_v27 = vpop.f32.mrf.mxu3 }
 0x132   : > { %v894_v28 = vpop.f32.mrf.mxu0 }
 0x133   : > { %909 = vrot.lane.b32.xlu1 %v894_v28, %s3522_s23  ;;  %444 = vperm.xlu0 %3325, %v3650_v19  }
 0x138   : > { %v3669_v29 = vpop.f32.mrf.mxu3 }
 0x139   : > { %485 = vperm.xlu2 %3324, %v3669_v29  }
 0x13b   : > { %461 = vperm.xlu1 %3326, %v3658_v23  }
 0x143   : > { %480 = vperm.xlu1 %3326, %v3665_v27  }
 0x173   : > { %v450_v42 = vpop.permute.xlu2 %449 }
 0x174   : > { %v456_v48 = vmul.f32 %v3388_v45, %v450_v42 }
 0x183   : > { %v467_v43 = vpop.permute.xlu2 %466 }
 0x184   : > { %v473_v46 = vmul.f32 %v3389_v44, %v467_v43 }
 0x186   : > { %v475_v50 = vadd.f32 %v473_v46, %v456_v48 }
 0x18d   : > { %v900_v53 = vpop.permute.xlu0 %899 }
 0x18e   : > { %v914_v56 = vsel %vm913_vm2, %v3648_v18, %v900_v53 }
 0x193   : > { %v486_v49 = vpop.permute.xlu2 %485 }
 0x194   : > { %v492_v52 = vmul.f32 %v3390_v47, %v486_v49 }
 0x195   : > { %v902_v57 = vpop.permute.xlu1 %901 }
 0x196   : > { %v494_v54 = vadd.f32 %v492_v52, %v475_v50  ;;  %v915_v60 = vsel %vm913_vm2, %v3652_v20, %v902_v57 }
 0x198   : > { %v499_v55 = vadd.f32 %v3770_v51, %v494_v54 }
 0x19a   : > { %502 = vst.msk [vmem:[#allocation2 + $0x8] sm:$0xff] %vm500_vm1, %v499_v55 }
 0x19d   : > { %v908_v58 = vpop.permute.xlu0 %907 }
 0x19e   : > { %v917_v59 = vsel %vm916_vm3, %v914_v56, %v908_v58 }
 0x19f   : > { %3159 = vmatmul.msk.f32.vlgmr.msrb.gmra.mxu1 %vm500_vm1, %v917_v59 }
 0x1a1   : > { %v3787_v18 = vld [vmem:[#allocation2 + $0x8] sm:$0xff] }
 0x1a5   : > { %v910_v61 = vpop.permute.xlu1 %909  ;;  %v445_v0 = vpop.permute.xlu0 %444 }
 0x1a6   : > { %v918_v62 = vsel %vm916_vm3, %v915_v60, %v910_v61  ;;  %v455_v2 = vmul.f32 %v3388_v45, %v445_v0 }
 0x1a7   : > { %3160 = vmatmul.msk.f32.gmra.mxu1 %vm500_vm1, %v918_v62 }
 0x1ad   : > { %v462_v63 = vpop.permute.xlu1 %461 }
 0x1ae   : > { %v472_v1 = vmul.f32 %v3389_v44, %v462_v63 }
 0x1b0   : > { %v474_v4 = vadd.f32 %v472_v1, %v455_v2 }
 0x1b5   : > { %v481_v3 = vpop.permute.xlu1 %480 }
 0x1b6   : > { %v491_v5 = vmul.f32 %v3390_v47, %v481_v3 }
 0x1b8   : > { %v493_v6 = vadd.f32 %v491_v5, %v474_v4 }
 0x1ba   : > { %v498_v7 = vadd.f32 %v3770_v51, %v493_v6 }
 0x1bc   : > { %501 = vst.msk [vmem:[#allocation2] sm:$0xff] %vm500_vm1, %v498_v7 }
 0x1c3   : > { %v3784_v8 = vld [vmem:[#allocation2] sm:$0xff] }
 0x21c   : > { %v954_v9 = vpop.f32.mrf.mxu1 }
 0x21d   : > { %v955_v10 = vadd.f32 %v954_v9, %v3784_v8 }
 0x21f   : > { %v3161_v17 = vmul.f32 -1.442695, %v955_v10 }
 0x221   : > { %3413 = vpow2.f32 %v3161_v17 }
 0x224   : > { %v957_v20 = vpop.f32.mrf.mxu1 }
 0x225   : > { %v958_v22 = vadd.f32 %v957_v20, %v3787_v18 }
 0x227   : > { %v3414_v24 = vpop.eup %3413  ;;  %v3162_v26 = vmul.f32 -1.442695, %v958_v22 }
 0x228   : > { %v966_v28 = vadd.f32 1.0, %v3414_v24  ;;  %v3822_v24 = vld [vmem:[%s4927_s5 + $0x58] sm:$0xff] }
 0x229   : > { %3415 = vpow2.f32 %v3162_v26  ;;  %v3827_v26 = vld [vmem:[%s4927_s5 + $0x50] sm:$0xff]  ;;  %1093 = vmatpush.msra.mxu1 %v3822_v24 }
 0x22a   : > { %3417 = vrcp.f32 %v966_v28  ;;  %v979_v52 = vand.u32 2147483648, %v966_v28  ;;  %vm973_vm5 = vweird.f32 %v966_v28  ;;  %v977_v54 = vand.u32 2147483647, %v966_v28 }
 0x22b   : > { %1094 = vmatpush.msra.mxu1 %v3827_v26 }
 0x22c   : > { %v980_v59 = vor.u32 1.1754944e-38, %v979_v52  ;;  %vm978_vm8 = vcmp.eq.f32.partialorder %v977_v54, 8.507059e+37 }
 0x22f   : > { %v3416_v42 = vpop.eup %3415 }
 0x230   : > { %v3418_v43 = vpop.eup %3417  ;;  %v967_v44 = vadd.f32 1.0, %v3416_v42  ;;  %v3855_v42 = vld [vmem:[%s4927_s5 + $0x30] sm:$0xff] }
 0x231   : > { %v969_v45 = vmul.f32 %v3418_v43, %v966_v28  ;;  %vm974_vm4 = vweird.f32 %v3418_v43  ;;  %v3849_v28 = vld [vmem:[%s4927_s5 + $0x38] sm:$0xff] }
 0x232   : > { %3419 = vrcp.f32 %v967_v44  ;;  %vm975_vm6 = vmor %vm973_vm5, %vm974_vm4  ;;  %v994_v55 = vand.u32 2147483648, %v967_v44  ;;  %v992_v58 = vand.u32 2147483647, %v967_v44  ;;  %vm988_vm9 = vweird.f32 %v967_v44 }
 0x233   : > { %v970_v46 = vsub.f32 1.0, %v969_v45  ;;  %v3876_v45 = vld [vmem:[%s4927_s5 + $0x18] sm:$0xff] }
 0x234   : > { %v995_v62 = vor.u32 1.1754944e-38, %v994_v55  ;;  %vm993_vm11 = vcmp.eq.f32.partialorder %v992_v58, 8.507059e+37 }
 0x235   : > { %v971_v47 = vmul.f32 %v3418_v43, %v970_v46  ;;  %v3883_v46 = vld [vmem:[%s4927_s5 + $0x10] sm:$0xff] }
 0x237   : > { %v972_v50 = vadd.f32 %v3418_v43, %v971_v47  ;;  %v3890_v47 = vld [vmem:[%s4927_s5 + $0x8] sm:$0xff] }
 0x238   : > { %v3420_v48 = vpop.eup %3419 }
 0x239   : > { %v984_v49 = vmul.f32 %v3420_v48, %v967_v44  ;;  %v976_v56 = vsel %vm975_vm6, %v3418_v43, %v972_v50  ;;  %vm989_vm7 = vweird.f32 %v3420_v48  ;;  %v3862_v43 = vld [vmem:[%s4927_s5 + $0x28] sm:$0xff]  ;;  %v3869_v44 = vld [vmem:[%s4927_s5 + $0x20] sm:$0xff] }
 0x23a   : > { %v3790_v61 = vsel %vm978_vm8, %v980_v59, %v976_v56  ;;  %vm990_vm10 = vmor %vm988_vm9, %vm989_vm7  ;;  %vm1400_vm8 = vcmask 523520  }
 0x23b   : > { %v985_v53 = vsub.f32 1.0, %v984_v49  ;;  %v998_v1 = vmul.f32 0.0, %v3790_v61 }
 0x23d   : > { %v986_v57 = vmul.f32 %v3420_v48, %v985_v53 }
 0x23f   : > { %v987_v60 = vadd.f32 %v3420_v48, %v986_v57 }
 0x241   : > { %v991_v63 = vsel %vm990_vm10, %v3420_v48, %v987_v60  ;;  %v3899_v48 = vld [vmem:[%s4927_s5] sm:$0xff] }
 0x242   : > { %v3792_v0 = vsel %vm993_vm11, %v995_v62, %v991_v63  ;;  %v3524_v62 = vmov 1  }
 0x243   : > { %v999_v2 = vmul.f32 0.0, %v3792_v0  ;;  %v1117_v57 = vsub.f32 1.0, %v3792_v0  ;;  %3333 = vset.pattern.permute.xlu2 %v3524_v62  ;;  %3332 = vset.pattern.permute.xlu1 %v3524_v62 }
 0x244   : > { %3334 = vset.pattern.permute.xlu0 %v3524_v62 }
 0x245   : > { %v3327_v3 = vpack.i.bf16 %v998_v1, %v999_v2  ;;  %v1119_v60 = vmul.f32 0.0, %v1117_v57 }
 0x247   : > { %3328 = vrot.lane.b32.xlu2 %v3327_v3, %s3523_s16 }
 0x2a1   : > { %v3329_v4 = vpop.permute.xlu2 %3328 }
 0x2a2   : > { %v3330_v5 = vunpack.i.l.bf16 %v3329_v4  ;;  %v3331_v6 = vunpack.i.h.bf16 %v3329_v4 }
 0x2a4   : > { %1022 = vmatpush.msrb.mxu2 %v3330_v5 }
 0x2a6   : > { %1023 = vmatpush.msrb.mxu2 %v3331_v6 }
 0x2a7   : > { %3163 = vmatmul.msk.f32.vlgmr.msrb.gmra.mxu2 %vm303_vm0, %v3612_v11 }
 0x2a8   : > { %1363 = vmatpush.msra.mxu2 %v3822_v24 }
 0x2aa   : > { %1364 = vmatpush.msra.mxu2 %v3827_v26 }
 0x2af   : > { %3164 = vmatmul.msk.f32.gmra.mxu2 %vm303_vm0, %v3618_v12 }
 0x2b7   : > { %3165 = vmatmul.msk.f32.gmra.mxu2 %vm303_vm0, %v3624_v13 }
 0x2bf   : > { %3166 = vmatmul.msk.f32.gmra.mxu2 %vm303_vm0, %v3630_v14 }
 0x2c7   : > { %3167 = vmatmul.msk.f32.gmra.mxu2 %vm303_vm0, %v3636_v15 }
 0x2cf   : > { %3168 = vmatmul.msk.f32.gmra.mxu2 %vm303_vm0, %v3642_v16 }
 0x32a   : > { %v1025_v7 = vpop.f32.mrf.mxu2 }
 0x332   : > { %v3809_v9 = vpop.f32.mrf.mxu2 }
 0x33a   : > { %v1031_v10 = vpop.f32.mrf.mxu2 }
 0x33b   : > { %1045 = vrot.lane.b32.xlu0 %v1031_v10, %s3521_s22 }
 0x342   : > { %v1034_v17 = vpop.f32.mrf.mxu2 }
 0x343   : > { %1047 = vrot.lane.b32.xlu2 %v1034_v17, %s3521_s22 }
 0x34a   : > { %v1037_v20 = vpop.f32.mrf.mxu2 }
 0x34b   : > { %1077 = vrot.lane.b32.xlu2 %v3784_v8, %s3522_s23  ;;  %1053 = vrot.lane.b32.xlu1 %v1037_v20, %s3522_s23  ;;  %v3834_v8 = vld [vmem:[%s4927_s5 + $0x48] sm:$0xff]  ;;  %v3392_v20 = vld [vmem:[%s4925_s3 + $0x1] ss:$0 sm:$0xff] }
 0x34c   : > { %1095 = vmatpush.msra.mxu1 %v3834_v8  ;;  %1365 = vmatpush.msra.mxu2 %v3834_v8 }
 0x352   : > { %v1040_v22 = vpop.f32.mrf.mxu2 }
 0x353   : > { %1079 = vrot.lane.b32.xlu1 %v3787_v18, %s3522_s23  ;;  %1055 = vrot.lane.b32.xlu0 %v1040_v22, %s3522_s23  ;;  %v3843_v18 = vld [vmem:[%s4927_s5 + $0x40] sm:$0xff] }
 0x354   : > { %1096 = vmatpush.msra.mxu1 %v3843_v18  ;;  %1366 = vmatpush.msra.mxu2 %v3843_v18  ;;  %v3394_v22 = vld [vmem:[%s4925_s3] ss:$0 sm:$0xff] }
 0x356   : > { %1097 = vmatpush.msra.mxu1 %v3849_v28  ;;  %1367 = vmatpush.msra.mxu2 %v3849_v28 }
 0x358   : > { %1098 = vmatpush.msra.mxu1 %v3855_v42  ;;  %1368 = vmatpush.msra.mxu2 %v3855_v42 }
 0x35a   : > { %1099 = vmatpush.msra.mxu1 %v3862_v43  ;;  %1369 = vmatpush.msra.mxu2 %v3862_v43 }
 0x35c   : > { %1100 = vmatpush.msra.mxu1 %v3869_v44  ;;  %1370 = vmatpush.msra.mxu2 %v3869_v44 }
 0x35e   : > { %1101 = vmatpush.msra.mxu1 %v3876_v45  ;;  %1371 = vmatpush.msra.mxu2 %v3876_v45 }
 0x360   : > { %1102 = vmatpush.msra.mxu1 %v3883_v46  ;;  %1372 = vmatpush.msra.mxu2 %v3883_v46 }
 0x362   : > { %1103 = vmatpush.msra.mxu1 %v3890_v47  ;;  %1373 = vmatpush.msra.mxu2 %v3890_v47 }
 0x364   : > { %1104 = vmatpush.msra.mxu1 %v3899_v48  ;;  %1374 = vmatpush.msra.mxu2 %v3899_v48 }
 0x366   : > { %1482 = vmatpush.msrb.mxu2 %v3677_v30 }
 0x368   : > { %1483 = vmatpush.msrb.mxu2 %v3682_v31 }
 0x36a   : > { %1484 = vmatpush.msrb.mxu2 %v3689_v32 }
 0x36c   : > { %1485 = vmatpush.msrb.mxu2 %v3698_v33 }
 0x36e   : > { %1486 = vmatpush.msrb.mxu2 %v3704_v34 }
 0x370   : > { %1487 = vmatpush.msrb.mxu2 %v3710_v35 }
 0x372   : > { %1488 = vmatpush.msrb.mxu2 %v3719_v36 }
 0x374   : > { %1489 = vmatpush.msrb.mxu2 %v3726_v37 }
 0x376   : > { %1490 = vmatpush.msrb.mxu2 %v3733_v38 }
 0x378   : > { %1491 = vmatpush.msrb.mxu2 %v3740_v39 }
 0x37a   : > { %1492 = vmatpush.msrb.mxu2 %v3746_v40 }
 0x37c   : > { %1493 = vmatpush.msrb.mxu2 %v3754_v41  ;;  %v1116_v41 = vsub.f32 1.0, %v3790_v61 }
 0x37e   : > { %v1118_v55 = vmul.f32 0.0, %v1116_v41 }
 0x39d   : > { %v1048_v34 = vpop.permute.xlu2 %1047 }
 0x39e   : > { %v1060_v35 = vsel %vm913_vm2, %v3809_v9, %v1048_v34 }
 0x3a5   : > { %v1078_v38 = vpop.permute.xlu2 %1077 }
 0x3ad   : > { %v1046_v30 = vpop.permute.xlu0 %1045 }
 0x3ae   : > { %v1059_v31 = vsel %vm913_vm2, %v1025_v7, %v1046_v30  ;;  %v3393_v30 = vld [vmem:[%s4925_s3 + $0x2] ss:$0 sm:$0xff] }
 0x3bd   : > { %v1054_v32 = vpop.permute.xlu1 %1053 }
 0x3be   : > { %v1061_v33 = vsel %vm916_vm3, %v1059_v31, %v1054_v32 }
 0x3bf   : > { %3169 = vmatmul.msk.f32.vlgmr.msra.gmra.mxu1 %vm500_vm1, %v1061_v33 }
 0x3c5   : > { %v1056_v36 = vpop.permute.xlu0 %1055  ;;  %v1080_v49 = vpop.permute.xlu1 %1079 }
 0x3c6   : > { %v1062_v37 = vsel %vm916_vm3, %v1060_v35, %v1056_v36 }
 0x3c7   : > { %3170 = vmatmul.msk.f32.gmra.mxu1 %vm500_vm1, %v1062_v37 }
 0x43c   : > { %v1106_v39 = vpop.f32.mrf.mxu1 }
 0x43d   : > { %v1107_v40 = vadd.f32 %v1106_v39, %v1078_v38 }
 0x43f   : > { %3421 = vtanh.f32 %v1107_v40 }
 0x444   : > { %v1109_v50 = vpop.f32.mrf.mxu1 }
 0x445   : > { %v3422_v52 = vpop.eup %3421  ;;  %v1110_v53 = vadd.f32 %v1109_v50, %v1080_v49 }
 0x446   : > { %v1114_v54 = vmul.f32 %v3422_v52, %v3790_v61 }
 0x447   : > { %3423 = vtanh.f32 %v1110_v53 }
 0x448   : > { %v3930_v56 = vadd.f32 %v1118_v55, %v1114_v54 }
 0x44a   : > { %1122 = vst.msk [vmem:[%s3928_s30] sm:$0xff] %vm913_vm2, %v3930_v56 }
 0x44d   : > { %v3424_v58 = vpop.eup %3423 }
 0x44e   : > { %v1115_v59 = vmul.f32 %v3424_v58, %v3792_v0 }
 0x450   : > { %v3937_v61 = vadd.f32 %v1119_v60, %v1115_v59 }
 0x452   : > { %1140 = vmatpush.msrb.mxu3 %v3937_v61  ;;  %1123 = vst.msk [vmem:[%s3928_s30 + $0x10] sm:$0xff] %vm913_vm2, %v3937_v61 }
 0x454   : > { %1141 = vmatpush.msrb.mxu3 %v3930_v56 }
 0x455   : > { %3171 = vmatmul.msk.f32.vlgmr.msrb.gmra.mxu3 %vm303_vm0, %v3612_v11 }
 0x45d   : > { %3172 = vmatmul.msk.f32.gmra.mxu3 %vm303_vm0, %v3618_v12 }
 0x465   : > { %3173 = vmatmul.msk.f32.gmra.mxu3 %vm303_vm0, %v3624_v13 }
 0x46d   : > { %3174 = vmatmul.msk.f32.gmra.mxu3 %vm303_vm0, %v3630_v14 }
 0x475   : > { %3175 = vmatmul.msk.f32.gmra.mxu3 %vm303_vm0, %v3636_v15 }
 0x47d   : > { %3176 = vmatmul.msk.f32.gmra.mxu3 %vm303_vm0, %v3642_v16 }
 0x4d8   : > { %v1143_v63 = vpop.f32.mrf.mxu3 }
 0x4e0   : > { %v1146_v0 = vpop.f32.mrf.mxu3 }
 0x4e8   : > { %v1149_v1 = vpop.f32.mrf.mxu3 }
 0x4e9   : > { %1163 = vrot.lane.b32.xlu0 %v1149_v1, %s3521_s22 }
 0x4f0   : > { %v1152_v2 = vpop.f32.mrf.mxu3 }
 0x4f1   : > { %1165 = vrot.lane.b32.xlu2 %v1152_v2, %s3521_s22 }
 0x4f8   : > { %v1155_v3 = vpop.f32.mrf.mxu3 }
 0x4f9   : > { %523 = vperm.xlu2 %3333, %v3661_v25   ;;  %1171 = vrot.lane.b32.xlu1 %v1155_v3, %s3522_s23 }
 0x500   : > { %v1158_v4 = vpop.f32.mrf.mxu3 }
 0x501   : > { %539 = vperm.xlu2 %3333, %v3669_v29   ;;  %509 = vperm.xlu1 %3332, %v3654_v21  }
 0x502   : > { %1173 = vrot.lane.b32.xlu0 %v1158_v4, %s3522_s23 }
 0x509   : > { %1264 = vrot.lane.b32.xlu2 %v3937_v61, %s3521_s22  ;;  %519 = vperm.xlu1 %3332, %v3658_v23  }
 0x50a   : > { %505 = vperm.xlu0 %3334, %v3650_v19  }
 0x511   : > { %535 = vperm.xlu1 %3332, %v3665_v27  }
 0x512   : > { %1262 = vrot.lane.b32.xlu0 %v3930_v56, %s3521_s22 }
 0x54b   : > { %v1166_v5 = vpop.permute.xlu2 %1165 }
 0x54c   : > { %v1178_v33 = vsel %vm913_vm2, %v1146_v0, %v1166_v5 }
 0x553   : > { %v524_v7 = vpop.permute.xlu2 %523 }
 0x554   : > { %v530_v34 = vmul.f32 %v3392_v20, %v524_v7 }
 0x55b   : > { %v1164_v6 = vpop.permute.xlu0 %1163  ;;  %v540_v31 = vpop.permute.xlu2 %539 }
 0x55c   : > { %v1177_v9 = vsel %vm913_vm2, %v1143_v63, %v1164_v6  ;;  %v546_v38 = vmul.f32 %v3393_v30, %v540_v31 }
 0x56b   : > { %v1172_v10 = vpop.permute.xlu1 %1171 }
 0x56c   : > { %v1179_v17 = vsel %vm916_vm3, %v1177_v9, %v1172_v10 }
 0x56d   : > { %3177 = vmatmul.msk.f32.vlgmr.msra.gmra.mxu0 %vm500_vm1, %v1179_v17 }
 0x573   : > { %v510_v32 = vpop.permute.xlu1 %509 }
 0x574   : > { %v516_v35 = vmul.f32 %v3394_v22, %v510_v32  ;;  %v1174_v36 = vpop.permute.xlu0 %1173 }
 0x575   : > { %v1180_v37 = vsel %vm916_vm3, %v1178_v33, %v1174_v36 }
 0x576   : > { %v532_v39 = vadd.f32 %v530_v34, %v516_v35  ;;  %3178 = vmatmul.msk.f32.gmra.mxu0 %vm500_vm1, %v1180_v37 }
 0x578   : > { %v548_v40 = vadd.f32 %v546_v38, %v532_v39 }
 0x57a   : > { %v550_v41 = vadd.f32 %v3770_v51, %v548_v40 }
 0x57b   : > { %v520_v49 = vpop.permute.xlu1 %519 }
 0x57c   : > { %553 = vst.msk [vmem:[#allocation2 + $0x18] sm:$0xff] %vm500_vm1, %v550_v41  ;;  %v506_v50 = vpop.permute.xlu0 %505  ;;  %v529_v52 = vmul.f32 %v3392_v20, %v520_v49 }
 0x57d   : > { %v515_v53 = vmul.f32 %v3394_v22, %v506_v50 }
 0x57f   : > { %v531_v55 = vadd.f32 %v529_v52, %v515_v53  ;;  %v1265_v53 = vpop.permute.xlu2 %1264 }
 0x583   : > { %v536_v54 = vpop.permute.xlu1 %535  ;;  %v3992_v1 = vld [vmem:[#allocation2 + $0x18] sm:$0xff] }
 0x584   : > { %v545_v57 = vmul.f32 %v3393_v30, %v536_v54  ;;  %v1263_v54 = vpop.permute.xlu0 %1262 }
 0x586   : > { %v547_v58 = vadd.f32 %v545_v57, %v531_v55 }
 0x588   : > { %v549_v59 = vadd.f32 %v3770_v51, %v547_v58 }
 0x58a   : > { %552 = vst.msk [vmem:[#allocation2 + $0x10] sm:$0xff] %vm500_vm1, %v549_v59 }
 0x591   : > { %v3989_v60 = vld [vmem:[#allocation2 + $0x10] sm:$0xff] }
 0x5ea   : > { %v1216_v62 = vpop.f32.mrf.mxu0 }
 0x5eb   : > { %v1217_v63 = vadd.f32 %v1216_v62, %v3989_v60 }
 0x5ed   : > { %v3179_v0 = vmul.f32 -1.442695, %v1217_v63 }
 0x5ef   : > { %3425 = vpow2.f32 %v3179_v0 }
 0x5f3   : > { %v1219_v2 = vpop.f32.mrf.mxu0 }
 0x5f4   : > { %v1220_v3 = vadd.f32 %v1219_v2, %v3992_v1 }
 0x5f5   : > { %v3426_v4 = vpop.eup %3425 }
 0x5f6   : > { %v1228_v5 = vadd.f32 1.0, %v3426_v4  ;;  %v3180_v6 = vmul.f32 -1.442695, %v1220_v3 }
 0x5f8   : > { %3427 = vrcp.f32 %v1228_v5  ;;  %v1241_v33 = vand.u32 2147483648, %v1228_v5  ;;  %vm1235_vm13 = vweird.f32 %v1228_v5  ;;  %v1239_v35 = vand.u32 2147483647, %v1228_v5 }
 0x5f9   : > { %3429 = vpow2.f32 %v3180_v6 }
 0x5fa   : > { %v1242_v40 = vor.u32 1.1754944e-38, %v1241_v33  ;;  %vm1240_vm4 = vcmp.eq.f32.partialorder %v1239_v35, 8.507059e+37 }
 0x5fe   : > { %v3428_v7 = vpop.eup %3427 }
 0x5ff   : > { %v3430_v9 = vpop.eup %3429  ;;  %v1231_v10 = vmul.f32 %v3428_v7, %v1228_v5  ;;  %vm1236_vm12 = vweird.f32 %v3428_v7 }
 0x600   : > { %v1229_v17 = vadd.f32 1.0, %v3430_v9  ;;  %vm1237_vm14 = vmor %vm1235_vm13, %vm1236_vm12 }
 0x601   : > { %v1232_v20 = vsub.f32 1.0, %v1231_v10 }
 0x602   : > { %3431 = vrcp.f32 %v1229_v17  ;;  %v1256_v36 = vand.u32 2147483648, %v1229_v17  ;;  %v1254_v39 = vand.u32 2147483647, %v1229_v17  ;;  %vm1250_vm5 = vweird.f32 %v1229_v17 }
 0x603   : > { %v1233_v22 = vmul.f32 %v3428_v7, %v1232_v20 }
 0x604   : > { %v1257_v50 = vor.u32 1.1754944e-38, %v1256_v36  ;;  %vm1255_vm7 = vcmp.eq.f32.partialorder %v1254_v39, 8.507059e+37 }
 0x605   : > { %v1234_v32 = vadd.f32 %v3428_v7, %v1233_v22 }
 0x607   : > { %v1238_v37 = vsel %vm1237_vm14, %v3428_v7, %v1234_v32 }
 0x608   : > { %v3432_v30 = vpop.eup %3431  ;;  %v3995_v49 = vsel %vm1240_vm4, %v1242_v40, %v1238_v37 }
 0x609   : > { %v1246_v31 = vmul.f32 %v3432_v30, %v1229_v17  ;;  %vm1251_vm15 = vweird.f32 %v3432_v30  ;;  %v1268_v57 = vmul.f32 %v1263_v54, %v3995_v49  ;;  %v1386_v17 = vsub.f32 1.0, %v3995_v49 }
 0x60a   : > { %vm1252_vm6 = vmor %vm1250_vm5, %vm1251_vm15 }
 0x60b   : > { %v1247_v34 = vsub.f32 1.0, %v1246_v31  ;;  %v1388_v33 = vmul.f32 %v1386_v17, %v3930_v56  ;;  %v3525_v56 = vmov 2  }
 0x60c   : > { %3341 = vset.pattern.permute.xlu1 %v3525_v56  ;;  %3340 = vset.pattern.permute.xlu0 %v3525_v56 }
 0x60d   : > { %v1248_v38 = vmul.f32 %v3432_v30, %v1247_v34  ;;  %3342 = vset.pattern.permute.xlu2 %v3525_v56 }
 0x60f   : > { %v1249_v41 = vadd.f32 %v3432_v30, %v1248_v38 }
 0x611   : > { %v1253_v52 = vsel %vm1252_vm6, %v3432_v30, %v1249_v41 }
 0x612   : > { %v3997_v55 = vsel %vm1255_vm7, %v1257_v50, %v1253_v52 }
 0x613   : > { %v1269_v58 = vmul.f32 %v1265_v53, %v3997_v55  ;;  %v1387_v9 = vsub.f32 1.0, %v3997_v55 }
 0x615   : > { %v3335_v59 = vpack.i.bf16 %v1268_v57, %v1269_v58  ;;  %v1389_v30 = vmul.f32 %v1387_v9, %v3937_v61  ;;  %v3396_v58 = vld [vmem:[%s4925_s3 + $0x1] ss:$0 sm:$0xff] }
 0x617   : > { %3336 = vrot.lane.b32.xlu1 %v3335_v59, %s3523_s16 }
 0x689   : > { %v3337_v62 = vpop.permute.xlu1 %3336 }
 0x68a   : > { %v3338_v63 = vunpack.i.l.bf16 %v3337_v62  ;;  %v3339_v0 = vunpack.i.h.bf16 %v3337_v62  ;;  %v3395_v62 = vld [vmem:[%s4925_s3] ss:$0 sm:$0xff] }
 0x68c   : > { %1292 = vmatpush.msrb.mxu0 %v3338_v63  ;;  %3302 = vmatpush.msrb.mxu1 %v3338_v63  ;;  %v3397_v63 = vld [vmem:[%s4925_s3 + $0x2] ss:$0 sm:$0xff] }
 0x68e   : > { %1293 = vmatpush.msrb.mxu0 %v3339_v0  ;;  %3303 = vmatpush.msrb.mxu1 %v3339_v0 }
 0x68f   : > { %3181 = vmatmul.msk.f32.vlgmr.msrb.gmra.mxu0 %vm303_vm0, %v3612_v11  ;;  %3183 = vmatmul.msk.f32.vlgmr.msrb.gmra.mxu1 %vm303_vm0, %v3624_v13 }
 0x690   : > { %1634 = vmatpush.msra.mxu1 %v3822_v24 }
 0x692   : > { %1635 = vmatpush.msra.mxu1 %v3827_v26 }
 0x694   : > { %1636 = vmatpush.msra.mxu1 %v3834_v8 }
 0x696   : > { %1637 = vmatpush.msra.mxu1 %v3843_v18 }
 0x697   : > { %3182 = vmatmul.msk.f32.gmra.mxu0 %vm303_vm0, %v3618_v12  ;;  %3184 = vmatmul.msk.f32.gmra.mxu1 %vm303_vm0, %v3630_v14 }
 0x698   : > { %1638 = vmatpush.msra.mxu1 %v3849_v28 }
 0x69a   : > { %1639 = vmatpush.msra.mxu1 %v3855_v42 }
 0x69c   : > { %1640 = vmatpush.msra.mxu1 %v3862_v43 }
 0x69e   : > { %1641 = vmatpush.msra.mxu1 %v3869_v44 }
 0x69f   : > { %3185 = vmatmul.msk.f32.gmra.mxu1 %vm303_vm0, %v3636_v15 }
 0x6a0   : > { %1642 = vmatpush.msra.mxu1 %v3876_v45 }
 0x6a2   : > { %1643 = vmatpush.msra.mxu1 %v3883_v46 }
 0x6a4   : > { %1644 = vmatpush.msra.mxu1 %v3890_v47 }
 0x6a6   : > { %1645 = vmatpush.msra.mxu1 %v3899_v48 }
 0x6a7   : > { %3186 = vmatmul.msk.f32.gmra.mxu1 %vm303_vm0, %v3642_v16 }
 0x70c   : > { %v1301_v24 = vpop.f32.mrf.mxu1  ;;  %v1295_v28 = vpop.f32.mrf.mxu0 }
 0x70d   : > { %1315 = vrot.lane.b32.xlu2 %v1301_v24, %s3521_s22 }
 0x714   : > { %v1304_v26 = vpop.f32.mrf.mxu1  ;;  %v1298_v47 = vpop.f32.mrf.mxu0 }
 0x715   : > { %1317 = vrot.lane.b32.xlu1 %v1304_v26, %s3521_s22 }
 0x71c   : > { %v1307_v8 = vpop.f32.mrf.mxu1 }
 0x71d   : > { %1347 = vrot.lane.b32.xlu1 %v3989_v60, %s3522_s23  ;;  %1323 = vrot.lane.b32.xlu0 %v1307_v8, %s3522_s23 }
 0x724   : > { %v1310_v18 = vpop.f32.mrf.mxu1 }
 0x725   : > { %1349 = vrot.lane.b32.xlu0 %v3992_v1, %s3522_s23  ;;  %1325 = vrot.lane.b32.xlu2 %v1310_v18, %s3522_s23 }
 0x767   : > { %v1316_v42 = vpop.permute.xlu2 %1315 }
 0x768   : > { %v1329_v43 = vsel %vm913_vm2, %v1295_v28, %v1316_v42 }
 0x77f   : > { %v1326_v60 = vpop.permute.xlu2 %1325 }
 0x787   : > { %v1318_v46 = vpop.permute.xlu1 %1317 }
 0x788   : > { %v1330_v48 = vsel %vm913_vm2, %v1298_v47, %v1318_v46 }
 0x789   : > { %v1332_v2 = vsel %vm916_vm3, %v1330_v48, %v1326_v60 }
 0x78f   : > { %v1324_v44 = vpop.permute.xlu0 %1323  ;;  %v1348_v3 = vpop.permute.xlu1 %1347 }
 0x790   : > { %v1331_v45 = vsel %vm916_vm3, %v1329_v43, %v1324_v44 }
 0x791   : > { %3187 = vmatmul.msk.f32.vlgmr.msra.gmra.mxu2 %vm500_vm1, %v1331_v45 }
 0x797   : > { %v1350_v5 = vpop.permute.xlu0 %1349 }
 0x799   : > { %3188 = vmatmul.msk.f32.gmra.mxu2 %vm500_vm1, %v1332_v2 }
 0x814   : > { %v1376_v1 = vpop.f32.mrf.mxu2 }
 0x815   : > { %v1377_v4 = vadd.f32 %v1376_v1, %v1348_v3 }
 0x817   : > { %3433 = vtanh.f32 %v1377_v4 }
 0x81c   : > { %v1379_v6 = vpop.f32.mrf.mxu2 }
 0x81d   : > { %v1380_v7 = vadd.f32 %v1379_v6, %v1350_v5  ;;  %v3434_v10 = vpop.eup %3433 }
 0x81e   : > { %v1384_v31 = vmul.f32 %v3434_v10, %v3995_v49 }
 0x81f   : > { %3435 = vtanh.f32 %v1380_v7 }
 0x820   : > { %v4049_v34 = vadd.f32 %v1388_v33, %v1384_v31 }
 0x825   : > { %v3436_v20 = vpop.eup %3435 }
 0x826   : > { %v1385_v22 = vmul.f32 %v3436_v20, %v3997_v55 }
 0x828   : > { %v4045_v32 = vadd.f32 %v1389_v30, %v1385_v22 }
 0x82a   : > { %1419 = vmatpush.msra.mxu0 %v4045_v32 }
 0x82c   : > { %1420 = vmatpush.msra.mxu0 %v4049_v34 }
 0x82d   : > { %3189 = vmatmul.msk.f32.vlgmr.msra.gmra.mxu0 %vm303_vm0, %v3612_v11 }
 0x835   : > { %3190 = vmatmul.msk.f32.gmra.mxu0 %vm303_vm0, %v3618_v12 }
 0x83d   : > { %3191 = vmatmul.msk.f32.gmra.mxu0 %vm303_vm0, %v3624_v13 }
 0x845   : > { %3192 = vmatmul.msk.f32.gmra.mxu0 %vm303_vm0, %v3630_v14 }
 0x84d   : > { %3193 = vmatmul.msk.f32.gmra.mxu0 %vm303_vm0, %v3636_v15 }
 0x855   : > { %3194 = vmatmul.msk.f32.gmra.mxu0 %vm303_vm0, %v3642_v16 }
 0x8aa   : > { %v1422_v61 = vpop.f32.mrf.mxu0 }
 0x8b2   : > { %v1425_v35 = vpop.f32.mrf.mxu0 }
 0x8ba   : > { %v1428_v36 = vpop.f32.mrf.mxu0 }
 0x8bb   : > { %1442 = vrot.lane.b32.xlu2 %v1428_v36, %s3521_s22 }
 0x8c2   : > { %v1431_v37 = vpop.f32.mrf.mxu0 }
 0x8c3   : > { %1444 = vrot.lane.b32.xlu1 %v1431_v37, %s3521_s22 }
 0x8ca   : > { %v1434_v38 = vpop.f32.mrf.mxu0 }
 0x8cb   : > { %574 = vperm.xlu1 %3341, %v3661_v25   ;;  %1450 = vrot.lane.b32.xlu0 %v1434_v38, %s3522_s23 }
 0x8d2   : > { %v1437_v39 = vpop.f32.mrf.mxu0 }
 0x8d3   : > { %570 = vperm.xlu1 %3341, %v3658_v23   ;;  %560 = vperm.xlu0 %3340, %v3654_v21  }
 0x8d4   : > { %1452 = vrot.lane.b32.xlu2 %v1437_v39, %s3522_s23 }
 0x8db   : > { %1396 = vrot.lane.b32.xlu1 %v4045_v32, %s3521_s22  ;;  %586 = vperm.xlu0 %3340, %v3665_v27  }
 0x8dc   : > { %556 = vperm.xlu2 %3342, %v3650_v19  }
 0x8e4   : > { %590 = vperm.xlu2 %3342, %v3669_v29  }
 0x8ec   : > { %1394 = vrot.lane.b32.xlu2 %v4049_v34, %s3521_s22 }
 0x915   : > { %v1443_v40 = vpop.permute.xlu2 %1442 }
 0x916   : > { %v1456_v52 = vsel %vm913_vm2, %v1422_v61, %v1443_v40 }
 0x92e   : > { %v1453_v41 = vpop.permute.xlu2 %1452 }
 0x935   : > { %v1445_v49 = vpop.permute.xlu1 %1444 }
 0x936   : > { %v557_v50 = vpop.permute.xlu2 %556  ;;  %v1457_v59 = vsel %vm913_vm2, %v1425_v35, %v1445_v49 }
 0x937   : > { %v1459_v28 = vsel %vm916_vm3, %v1457_v59, %v1453_v41  ;;  %v566_v46 = vmul.f32 %v3395_v62, %v557_v50 }
 0x93d   : > { %v575_v53 = vpop.permute.xlu1 %574  ;;  %v1451_v54 = vpop.permute.xlu0 %1450 }
 0x93e   : > { %v1458_v55 = vsel %vm916_vm3, %v1456_v52, %v1451_v54  ;;  %v591_v57 = vpop.permute.xlu2 %590  ;;  %v581_v26 = vmul.f32 %v3396_v58, %v575_v53 }
 0x93f   : > { %3195 = vmatmul.msk.f32.vlgmr.msrb.gmra.mxu2 %vm500_vm1, %v1458_v55  ;;  %v597_v42 = vmul.f32 %v3397_v63, %v591_v57 }
 0x945   : > { %v571_v0 = vpop.permute.xlu1 %570  ;;  %v561_v24 = vpop.permute.xlu0 %560 }
 0x946   : > { %v567_v8 = vmul.f32 %v3395_v62, %v561_v24  ;;  %v4091_v18 = vpop.permute.xlu2 %1394  ;;  %v580_v44 = vmul.f32 %v3396_v58, %v571_v0 }
 0x947   : > { %1401 = vst.msk [vmem:[%s3928_s30] sm:$0xff] %vm1400_vm8, %v4091_v18  ;;  %3196 = vmatmul.msk.f32.gmra.mxu2 %vm500_vm1, %v1459_v28 }
 0x948   : > { %v583_v43 = vadd.f32 %v581_v26, %v567_v8  ;;  %v582_v2 = vadd.f32 %v580_v44, %v566_v46 }
 0x94a   : > { %v599_v45 = vadd.f32 %v597_v42, %v583_v43 }
 0x94c   : > { %v601_v47 = vadd.f32 %v3770_v51, %v599_v45 }
 0x94d   : > { %v1397_v48 = vpop.permute.xlu1 %1396  ;;  %v587_v60 = vpop.permute.xlu0 %586 }
 0x94e   : > { %604 = vst.msk [vmem:[#allocation2 + $0x28] sm:$0xff] %vm500_vm1, %v601_v47  ;;  %v596_v1 = vmul.f32 %v3397_v63, %v587_v60 }
 0x94f   : > { %1402 = vst.msk [vmem:[%s3928_s30 + $0x10] sm:$0xff] %vm1400_vm8, %v1397_v48 }
 0x950   : > { %v598_v3 = vadd.f32 %v596_v1, %v582_v2 }
 0x952   : > { %v600_v4 = vadd.f32 %v3770_v51, %v598_v3 }
 0x954   : > { %603 = vst.msk [vmem:[#allocation2 + $0x20] sm:$0xff] %vm500_vm1, %v600_v4 }
 0x955   : > { %v4107_v10 = vld [vmem:[#allocation2 + $0x28] sm:$0xff] }
 0x95b   : > { %v4104_v5 = vld [vmem:[#allocation2 + $0x20] sm:$0xff] }
 0x9c2   : > { %v1495_v6 = vpop.f32.mrf.mxu2 }
 0x9c3   : > { %v1496_v7 = vadd.f32 %v1495_v6, %v4104_v5 }
 0x9c5   : > { %v3197_v9 = vmul.f32 -1.442695, %v1496_v7 }
 0x9c7   : > { %3437 = vpow2.f32 %v3197_v9 }
 0x9ca   : > { %v1498_v17 = vpop.f32.mrf.mxu2 }
 0x9cb   : > { %v1499_v20 = vadd.f32 %v1498_v17, %v4107_v10 }
 0x9cd   : > { %v3438_v22 = vpop.eup %3437  ;;  %v3198_v30 = vmul.f32 -1.442695, %v1499_v20 }
 0x9ce   : > { %v1507_v31 = vadd.f32 1.0, %v3438_v22 }
 0x9cf   : > { %3439 = vpow2.f32 %v3198_v30 }
 0x9d0   : > { %3441 = vrcp.f32 %v1507_v31  ;;  %v1520_v40 = vand.u32 2147483648, %v1507_v31  ;;  %vm1514_vm10 = vweird.f32 %v1507_v31  ;;  %v1518_v49 = vand.u32 2147483647, %v1507_v31 }
 0x9d2   : > { %v1521_v55 = vor.u32 1.1754944e-38, %v1520_v40  ;;  %vm1519_vm13 = vcmp.eq.f32.partialorder %v1518_v49, 8.507059e+37 }
 0x9d5   : > { %v3440_v51 = vpop.eup %3439 }
 0x9d6   : > { %v3442_v33 = vpop.eup %3441  ;;  %v1508_v56 = vadd.f32 1.0, %v3440_v51 }
 0x9d7   : > { %v1510_v61 = vmul.f32 %v3442_v33, %v1507_v31  ;;  %vm1515_vm9 = vweird.f32 %v3442_v33 }
 0x9d8   : > { %3443 = vrcp.f32 %v1508_v56  ;;  %vm1516_vm11 = vmor %vm1514_vm10, %vm1515_vm9  ;;  %v1535_v50 = vand.u32 2147483648, %v1508_v56  ;;  %v1533_v54 = vand.u32 2147483647, %v1508_v56  ;;  %vm1529_vm14 = vweird.f32 %v1508_v56 }
 0x9d9   : > { %v1511_v35 = vsub.f32 1.0, %v1510_v61 }
 0x9da   : > { %v1536_v59 = vor.u32 1.1754944e-38, %v1535_v50  ;;  %vm1534_vm4 = vcmp.eq.f32.partialorder %v1533_v54, 8.507059e+37  ;;  %v4165_v50 = vld [vmem:[%s4926_s4 + $0x58] sm:$0xff]  ;;  %v4185_v54 = vld [vmem:[%s4926_s4 + $0x40] sm:$0xff] }
 0x9db   : > { %v1512_v36 = vmul.f32 %v3442_v33, %v1511_v35  ;;  %1753 = vmatpush.msrb.mxu0 %v4165_v50 }
 0x9dd   : > { %v1513_v39 = vadd.f32 %v3442_v33, %v1512_v36 }
 0x9de   : > { %v3444_v37 = vpop.eup %3443 }
 0x9df   : > { %v1525_v38 = vmul.f32 %v3444_v37, %v1508_v56  ;;  %v1517_v52 = vsel %vm1516_vm11, %v3442_v33, %v1513_v39  ;;  %vm1530_vm12 = vweird.f32 %v3444_v37 }
 0x9e0   : > { %v1522_v58 = vsel %vm1519_vm13, %v1521_v55, %v1517_v52  ;;  %vm1531_vm15 = vmor %vm1529_vm14, %vm1530_vm12  ;;  %v4170_v52 = vld [vmem:[%s4926_s4 + $0x50] sm:$0xff] }
 0x9e1   : > { %v1526_v41 = vsub.f32 1.0, %v1525_v38  ;;  %v1539_v0 = vmul.f32 %v1522_v58, %v4091_v18  ;;  %v1657_v51 = vsub.f32 1.0, %v1522_v58  ;;  %1754 = vmatpush.msrb.mxu0 %v4170_v52 }
 0x9e3   : > { %v1527_v53 = vmul.f32 %v3444_v37, %v1526_v41 }
 0x9e5   : > { %v1528_v57 = vadd.f32 %v3444_v37, %v1527_v53  ;;  %v4177_v53 = vld [vmem:[%s4926_s4 + $0x48] sm:$0xff] }
 0x9e6   : > { %1755 = vmatpush.msrb.mxu0 %v4177_v53 }
 0x9e7   : > { %v1532_v62 = vsel %vm1531_vm15, %v3444_v37, %v1528_v57  ;;  %v1659_v37 = vmul.f32 %v1657_v51, %v4049_v34  ;;  %v4194_v57 = vld [vmem:[%s4926_s4 + $0x38] sm:$0xff] }
 0x9e8   : > { %v1537_v63 = vsel %vm1534_vm4, %v1536_v59, %v1532_v62  ;;  %1756 = vmatpush.msrb.mxu0 %v4185_v54  ;;  %v4208_v59 = vld [vmem:[%s4926_s4 + $0x28] sm:$0xff]  ;;  %v4224_v62 = vld [vmem:[%s4926_s4 + $0x20] sm:$0xff] }
 0x9e9   : > { %v1540_v24 = vmul.f32 %v1537_v63, %v1397_v48  ;;  %v1658_v30 = vsub.f32 1.0, %v1537_v63 }
 0x9ea   : > { %1757 = vmatpush.msrb.mxu0 %v4194_v57 }
 0x9eb   : > { %v3343_v26 = vpack.i.bf16 %v1539_v0, %v1540_v24  ;;  %v1660_v35 = vmul.f32 %v1658_v30, %v4045_v32  ;;  %v3526_v32 = vmov 3   ;;  %v4236_v0 = vld [vmem:[%s4926_s4 + $0x10] sm:$0xff]  ;;  %v4243_v24 = vld [vmem:[%s4926_s4 + $0x8] sm:$0xff]  ;;  %v4274_v30 = vld [vmem:[%s4928_s6] ss:$0 sm:$0xff] }
 0x9ec   : > { %3349 = vset.pattern.permute.xlu0 %v3526_v32  ;;  %3348 = vset.pattern.permute.xlu2 %v3526_v32 }
 0x9ed   : > { %3344 = vrot.lane.b32.xlu0 %v3343_v26, %s3523_s16  ;;  %3350 = vset.pattern.permute.xlu1 %v3526_v32  ;;  %v4252_v26 = vld [vmem:[%s4926_s4] sm:$0xff] }
 0xa5f   : > { %v3345_v8 = vpop.permute.xlu0 %3344 }
 0xa60   : > { %v3346_v28 = vunpack.i.l.bf16 %v3345_v8  ;;  %v3347_v42 = vunpack.i.h.bf16 %v3345_v8 }
 0xa62   : > { %1563 = vmatpush.msra.mxu3 %v3346_v28 }
 0xa64   : > { %1564 = vmatpush.msra.mxu3 %v3347_v42 }
 0xa65   : > { %3199 = vmatmul.msk.f32.vlgmr.msra.gmra.mxu3 %vm303_vm0, %v3612_v11 }
 0xa6d   : > { %3200 = vmatmul.msk.f32.gmra.mxu3 %vm303_vm0, %v3618_v12 }
 0xa75   : > { %3201 = vmatmul.msk.f32.gmra.mxu3 %vm303_vm0, %v3624_v13 }
 0xa7d   : > { %3202 = vmatmul.msk.f32.gmra.mxu3 %vm303_vm0, %v3630_v14 }
 0xa85   : > { %3203 = vmatmul.msk.f32.gmra.mxu3 %vm303_vm0, %v3636_v15 }
 0xa8d   : > { %3204 = vmatmul.msk.f32.gmra.mxu3 %vm303_vm0, %v3642_v16 }
 0xae8   : > { %v1566_v18 = vpop.f32.mrf.mxu3 }
 0xaf0   : > { %v1569_v43 = vpop.f32.mrf.mxu3 }
 0xaf8   : > { %v1572_v44 = vpop.f32.mrf.mxu3 }
 0xaf9   : > { %1586 = vrot.lane.b32.xlu1 %v1572_v44, %s3521_s22 }
 0xb00   : > { %v1575_v45 = vpop.f32.mrf.mxu3 }
 0xb01   : > { %1588 = vrot.lane.b32.xlu0 %v1575_v45, %s3521_s22 }
 0xb08   : > { %v1578_v46 = vpop.f32.mrf.mxu3 }
 0xb09   : > { %1618 = vrot.lane.b32.xlu0 %v4104_v5, %s3522_s23  ;;  %1594 = vrot.lane.b32.xlu2 %v1578_v46, %s3522_s23 }
 0xb10   : > { %v1581_v47 = vpop.f32.mrf.mxu3 }
 0xb11   : > { %1620 = vrot.lane.b32.xlu2 %v4107_v10, %s3522_s23  ;;  %1596 = vrot.lane.b32.xlu1 %v1581_v47, %s3522_s23 }
 0xb63   : > { %v1595_v60 = vpop.permute.xlu2 %1594 }
 0xb6b   : > { %v1587_v48 = vpop.permute.xlu1 %1586  ;;  %v1621_v17 = vpop.permute.xlu2 %1620 }
 0xb6c   : > { %v1600_v2 = vsel %vm913_vm2, %v1566_v18, %v1587_v48 }
 0xb6d   : > { %v1602_v1 = vsel %vm916_vm3, %v1600_v2, %v1595_v60  ;;  %v3399_v60 = vld [vmem:[%s4925_s3 + $0x1] ss:$0 sm:$0xff]  ;;  %v3398_v2 = vld [vmem:[%s4925_s3] ss:$0 sm:$0xff] }
 0xb6e   : > { %3205 = vmatmul.msk.f32.vlgmr.msra.gmra.mxu1 %vm500_vm1, %v1602_v1  ;;  %v3400_v1 = vld [vmem:[%s4925_s3 + $0x2] ss:$0 sm:$0xff] }
 0xb73   : > { %v1589_v3 = vpop.permute.xlu0 %1588 }
 0xb74   : > { %v1601_v4 = vsel %vm913_vm2, %v1569_v43, %v1589_v3 }
 0xb7b   : > { %v1619_v9 = vpop.permute.xlu0 %1618 }
 0xb83   : > { %v1597_v5 = vpop.permute.xlu1 %1596 }
 0xb84   : > { %v1603_v6 = vsel %vm916_vm3, %v1601_v4, %v1597_v5 }
 0xb85   : > { %3206 = vmatmul.msk.f32.gmra.mxu1 %vm500_vm1, %v1603_v6 }
 0xbeb   : > { %v1647_v7 = vpop.f32.mrf.mxu1 }
 0xbec   : > { %v1648_v10 = vadd.f32 %v1647_v7, %v1619_v9 }
 0xbee   : > { %3445 = vtanh.f32 %v1648_v10 }
 0xbf4   : > { %v3446_v31 = vpop.eup %3445 }
 0xbf5   : > { %v1655_v56 = vmul.f32 %v3446_v31, %v1522_v58  ;;  %v4201_v58 = vld [vmem:[%s4926_s4 + $0x30] sm:$0xff] }
 0xbf6   : > { %1758 = vmatpush.msrb.mxu0 %v4201_v58 }
 0xbf7   : > { %v4143_v38 = vadd.f32 %v1659_v37, %v1655_v56 }
 0xbf8   : > { %1759 = vmatpush.msrb.mxu0 %v4208_v59 }
 0xbfa   : > { %1760 = vmatpush.msrb.mxu0 %v4224_v62 }
 0xc02   : > { %v1650_v20 = vpop.f32.mrf.mxu1 }
 0xc03   : > { %v1651_v22 = vadd.f32 %v1650_v20, %v1621_v17 }
 0xc05   : > { %3447 = vtanh.f32 %v1651_v22 }
 0xc0b   : > { %v3448_v33 = vpop.eup %3447 }
 0xc0c   : > { %v1656_v61 = vmul.f32 %v3448_v33, %v1537_v63  ;;  %v4229_v63 = vld [vmem:[%s4926_s4 + $0x18] sm:$0xff] }
 0xc0d   : > { %1761 = vmatpush.msrb.mxu0 %v4229_v63 }
 0xc0e   : > { %v4139_v36 = vadd.f32 %v1660_v35, %v1656_v61 }
 0xc0f   : > { %1762 = vmatpush.msrb.mxu0 %v4236_v0 }
 0xc10   : > { %1690 = vmatpush.msra.mxu2 %v4139_v36 }
 0xc11   : > { %1763 = vmatpush.msrb.mxu0 %v4243_v24 }
 0xc12   : > { %1691 = vmatpush.msra.mxu2 %v4143_v38 }
 0xc13   : > { %3207 = vmatmul.msk.f32.vlgmr.msra.gmra.mxu2 %vm303_vm0, %v3612_v11  ;;  %1764 = vmatpush.msrb.mxu0 %v4252_v26 }
 0xc14   : > { %2030 = vmatpush.msrb.mxu2 %v4165_v50 }
 0xc16   : > { %2031 = vmatpush.msrb.mxu2 %v4170_v52 }
 0xc18   : > { %2032 = vmatpush.msrb.mxu2 %v4177_v53 }
 0xc1a   : > { %2033 = vmatpush.msrb.mxu2 %v4185_v54 }
 0xc1b   : > { %3208 = vmatmul.msk.f32.gmra.mxu2 %vm303_vm0, %v3618_v12 }
 0xc1c   : > { %2034 = vmatpush.msrb.mxu2 %v4194_v57 }
 0xc1e   : > { %2035 = vmatpush.msrb.mxu2 %v4201_v58 }
 0xc20   : > { %2036 = vmatpush.msrb.mxu2 %v4208_v59 }
 0xc22   : > { %2037 = vmatpush.msrb.mxu2 %v4224_v62 }
 0xc23   : > { %3209 = vmatmul.msk.f32.gmra.mxu2 %vm303_vm0, %v3624_v13 }
 0xc24   : > { %2038 = vmatpush.msrb.mxu2 %v4229_v63 }
 0xc26   : > { %2039 = vmatpush.msrb.mxu2 %v4236_v0 }
 0xc28   : > { %2040 = vmatpush.msrb.mxu2 %v4243_v24 }
 0xc2a   : > { %2041 = vmatpush.msrb.mxu2 %v4252_v26 }
 0xc2b   : > { %3210 = vmatmul.msk.f32.gmra.mxu2 %vm303_vm0, %v3630_v14 }
 0xc33   : > { %3211 = vmatmul.msk.f32.gmra.mxu2 %vm303_vm0, %v3636_v15 }
 0xc3b   : > { %3212 = vmatmul.msk.f32.gmra.mxu2 %vm303_vm0, %v3642_v16 }
 0xc96   : > { %v1693_v34 = vpop.f32.mrf.mxu2 }
 0xc9e   : > { %v1696_v39 = vpop.f32.mrf.mxu2 }
 0xca6   : > { %v1699_v40 = vpop.f32.mrf.mxu2 }
 0xca7   : > { %1713 = vrot.lane.b32.xlu1 %v1699_v40, %s3521_s22 }
 0xcae   : > { %v1702_v41 = vpop.f32.mrf.mxu2 }
 0xcaf   : > { %1715 = vrot.lane.b32.xlu0 %v1702_v41, %s3521_s22 }
 0xcb6   : > { %v1705_v49 = vpop.f32.mrf.mxu2 }
 0xcb7   : > { %625 = vperm.xlu0 %3349, %v3661_v25   ;;  %1721 = vrot.lane.b32.xlu2 %v1705_v49, %s3522_s23 }
 0xcbe   : > { %v1708_v55 = vpop.f32.mrf.mxu2 }
 0xcbf   : > { %1812 = vrot.lane.b32.xlu0 %v4139_v36, %s3521_s22  ;;  %611 = vperm.xlu2 %3348, %v3654_v21  }
 0xcc0   : > { %1723 = vrot.lane.b32.xlu1 %v1708_v55, %s3522_s23 }
 0xcc7   : > { %621 = vperm.xlu2 %3348, %v3658_v23  }
 0xcc8   : > { %607 = vperm.xlu1 %3350, %v3650_v19  }
 0xccf   : > { %637 = vperm.xlu2 %3348, %v3665_v27  }
 0xcd0   : > { %641 = vperm.xlu1 %3350, %v3669_v29  }
 0xcd8   : > { %1810 = vrot.lane.b32.xlu1 %v4143_v38, %s3521_s22 }
 0xd11   : > { %v1722_v28 = vpop.permute.xlu2 %1721 }
 0xd19   : > { %v1714_v8 = vpop.permute.xlu1 %1713  ;;  %v612_v43 = vpop.permute.xlu2 %611 }
 0xd1a   : > { %v1727_v42 = vsel %vm913_vm2, %v1693_v34, %v1714_v8  ;;  %v618_v22 = vmul.f32 %v3398_v2, %v612_v43 }
 0xd1b   : > { %v1729_v18 = vsel %vm916_vm3, %v1727_v42, %v1722_v28 }
 0xd1c   : > { %3213 = vmatmul.msk.f32.vlgmr.msrb.gmra.mxu0 %vm500_vm1, %v1729_v18 }
 0xd21   : > { %v1716_v44 = vpop.permute.xlu0 %1715  ;;  %v622_v45 = vpop.permute.xlu2 %621 }
 0xd22   : > { %v1728_v46 = vsel %vm913_vm2, %v1696_v39, %v1716_v44  ;;  %v631_v5 = vmul.f32 %v3399_v60, %v622_v45 }
 0xd29   : > { %v638_v3 = vpop.permute.xlu2 %637  ;;  %v626_v7 = vpop.permute.xlu0 %625 }
 0xd2a   : > { %v647_v9 = vmul.f32 %v3400_v1, %v638_v3  ;;  %v632_v17 = vmul.f32 %v3399_v60, %v626_v7 }
 0xd2c   : > { %v634_v33 = vadd.f32 %v632_v17, %v618_v22 }
 0xd32   : > { %v1724_v47 = vpop.permute.xlu1 %1723 }
 0xd33   : > { %v1730_v48 = vsel %vm916_vm3, %v1728_v46, %v1724_v47 }
 0xd34   : > { %3214 = vmatmul.msk.f32.gmra.mxu0 %vm500_vm1, %v1730_v48 }
 0xd3a   : > { %v608_v4 = vpop.permute.xlu1 %607 }
 0xd3b   : > { %v617_v6 = vmul.f32 %v3398_v2, %v608_v4 }
 0xd3d   : > { %v633_v10 = vadd.f32 %v631_v5, %v617_v6 }
 0xd3f   : > { %v649_v20 = vadd.f32 %v647_v9, %v633_v10 }
 0xd41   : > { %v651_v31 = vadd.f32 %v4274_v30, %v649_v20 }
 0xd42   : > { %v642_v51 = vpop.permute.xlu1 %641 }
 0xd43   : > { %654 = vst.msk [vmem:[#allocation2 + $0x30] sm:$0xff] %vm500_vm1, %v651_v31  ;;  %v648_v56 = vmul.f32 %v3400_v1, %v642_v51  ;;  %v1813_v31 = vpop.permute.xlu0 %1812 }
 0xd45   : > { %v650_v61 = vadd.f32 %v648_v56, %v634_v33 }
 0xd47   : > { %v652_v35 = vadd.f32 %v4274_v30, %v650_v61 }
 0xd49   : > { %655 = vst.msk [vmem:[#allocation2 + $0x38] sm:$0xff] %vm500_vm1, %v652_v35 }
 0xd4a   : > { %v4280_v32 = vld [vmem:[#allocation2 + $0x30] sm:$0xff]  ;;  %v1811_v51 = vpop.permute.xlu1 %1810 }
 0xd50   : > { %v1675_v49 = vld [vmem:[#allocation2 + $0x38] sm:$0xff] }
 0xd99   : > { %v1766_v37 = vpop.f32.mrf.mxu0 }
 0xd9a   : > { %v1767_v34 = vadd.f32 %v1766_v37, %v4280_v32 }
 0xd9c   : > { %v3215_v39 = vmul.f32 -1.442695, %v1767_v34 }
 0xd9e   : > { %3449 = vpow2.f32 %v3215_v39 }
 0xda4   : > { %v3450_v40 = vpop.eup %3449 }
 0xda5   : > { %v1778_v41 = vadd.f32 1.0, %v3450_v40 }
 0xda7   : > { %3451 = vrcp.f32 %v1778_v41  ;;  %v1791_v2 = vand.u32 2147483648, %v1778_v41  ;;  %vm1785_vm6 = vweird.f32 %v1778_v41  ;;  %v1789_v3 = vand.u32 2147483647, %v1778_v41 }
 0xda9   : > { %v1792_v9 = vor.u32 1.1754944e-38, %v1791_v2  ;;  %vm1790_vm10 = vcmp.eq.f32.partialorder %v1789_v3, 8.507059e+37  ;;  %v4380_v2 = vld [vmem:[%s4927_s5 + $0x8] sm:$0xff] }
 0xdad   : > { %v3452_v42 = vpop.eup %3451 }
 0xdae   : > { %v1781_v18 = vmul.f32 %v3452_v42, %v1778_v41  ;;  %vm1786_vm5 = vweird.f32 %v3452_v42 }
 0xdaf   : > { %vm1787_vm7 = vmor %vm1785_vm6, %vm1786_vm5 }
 0xdb0   : > { %v1782_v45 = vsub.f32 1.0, %v1781_v18  ;;  %v4312_v18 = vld [vmem:[%s4927_s5 + $0x58] sm:$0xff] }
 0xdb1   : > { %v1769_v55 = vpop.f32.mrf.mxu0  ;;  %1911 = vmatpush.msrb.mxu3 %v4312_v18 }
 0xdb2   : > { %v1770_v8 = vadd.f32 %v1769_v55, %v1675_v49  ;;  %v1783_v46 = vmul.f32 %v3452_v42, %v1782_v45  ;;  %v4345_v45 = vld [vmem:[%s4927_s5 + $0x30] sm:$0xff] }
 0xdb4   : > { %v3216_v28 = vmul.f32 -1.442695, %v1770_v8  ;;  %v1784_v60 = vadd.f32 %v3452_v42, %v1783_v46  ;;  %v4352_v46 = vld [vmem:[%s4927_s5 + $0x28] sm:$0xff] }
 0xdb6   : > { %3453 = vpow2.f32 %v3216_v28  ;;  %v1788_v5 = vsel %vm1787_vm7, %v3452_v42, %v1784_v60  ;;  %v4373_v60 = vld [vmem:[%s4927_s5 + $0x10] sm:$0xff] }
 0xdb7   : > { %v4283_v17 = vsel %vm1790_vm10, %v1792_v9, %v1788_v5 }
 0xdb8   : > { %v1816_v56 = vmul.f32 %v1811_v51, %v4283_v17 }
 0xdbc   : > { %v3454_v43 = vpop.eup %3453 }
 0xdbd   : > { %v1779_v44 = vadd.f32 1.0, %v3454_v43  ;;  %v4317_v43 = vld [vmem:[%s4927_s5 + $0x50] sm:$0xff] }
 0xdbe   : > { %1912 = vmatpush.msrb.mxu3 %v4317_v43 }
 0xdbf   : > { %3455 = vrcp.f32 %v1779_v44  ;;  %v1806_v4 = vand.u32 2147483648, %v1779_v44  ;;  %v1804_v7 = vand.u32 2147483647, %v1779_v44  ;;  %vm1800_vm11 = vweird.f32 %v1779_v44 }
 0xdc1   : > { %v1807_v20 = vor.u32 1.1754944e-38, %v1806_v4  ;;  %vm1805_vm13 = vcmp.eq.f32.partialorder %v1804_v7, 8.507059e+37 }
 0xdc5   : > { %v3456_v47 = vpop.eup %3455 }
 0xdc6   : > { %v1796_v48 = vmul.f32 %v3456_v47, %v1779_v44  ;;  %vm1801_vm9 = vweird.f32 %v3456_v47  ;;  %v4339_v44 = vld [vmem:[%s4927_s5 + $0x38] sm:$0xff] }
 0xdc7   : > { %vm1802_vm12 = vmor %vm1800_vm11, %vm1801_vm9 }
 0xdc8   : > { %v1797_v1 = vsub.f32 1.0, %v1796_v48  ;;  %v4366_v48 = vld [vmem:[%s4927_s5 + $0x18] sm:$0xff] }
 0xdca   : > { %v1798_v6 = vmul.f32 %v3456_v47, %v1797_v1  ;;  %v4389_v1 = vld [vmem:[%s4927_s5] sm:$0xff] }
 0xdcc   : > { %v1799_v10 = vadd.f32 %v3456_v47, %v1798_v6 }
 0xdce   : > { %v1803_v22 = vsel %vm1802_vm12, %v3456_v47, %v1799_v10  ;;  %v4359_v47 = vld [vmem:[%s4927_s5 + $0x20] sm:$0xff] }
 0xdcf   : > { %v4285_v33 = vsel %vm1805_vm13, %v1807_v20, %v1803_v22 }
 0xdd0   : > { %v1817_v61 = vmul.f32 %v1813_v31, %v4285_v33 }
 0xdd2   : > { %v3351_v35 = vpack.i.bf16 %v1816_v56, %v1817_v61 }
 0xdd4   : > { %3352 = vrot.lane.b32.xlu2 %v3351_v35, %s3523_s16 }
 0xe2e   : > { %v3353_v37 = vpop.permute.xlu2 %3352 }
 0xe2f   : > { %v3354_v34 = vunpack.i.l.bf16 %v3353_v37  ;;  %v3355_v39 = vunpack.i.h.bf16 %v3353_v37  ;;  %v1935_v37 = vsub.f32 1.0, %v4285_v33 }
 0xe31   : > { %1840 = vmatpush.msrb.mxu1 %v3354_v34 }
 0xe33   : > { %1841 = vmatpush.msrb.mxu1 %v3355_v39  ;;  %v1934_v39 = vsub.f32 1.0, %v4283_v17 }
 0xe34   : > { %3217 = vmatmul.msk.f32.vlgmr.msrb.gmra.mxu1 %vm303_vm0, %v3612_v11 }
 0xe35   : > { %2188 = vmatpush.msra.mxu1 %v4312_v18 }
 0xe37   : > { %2189 = vmatpush.msra.mxu1 %v4317_v43 }
 0xe3c   : > { %3218 = vmatmul.msk.f32.gmra.mxu1 %vm303_vm0, %v3618_v12 }
 0xe44   : > { %3219 = vmatmul.msk.f32.gmra.mxu1 %vm303_vm0, %v3624_v13 }
 0xe4c   : > { %3220 = vmatmul.msk.f32.gmra.mxu1 %vm303_vm0, %v3630_v14 }
 0xe54   : > { %3221 = vmatmul.msk.f32.gmra.mxu1 %vm303_vm0, %v3636_v15 }
 0xe5c   : > { %3222 = vmatmul.msk.f32.gmra.mxu1 %vm303_vm0, %v3642_v16 }
 0xeb1   : > { %v1843_v40 = vpop.f32.mrf.mxu1 }
 0xeb9   : > { %v1846_v41 = vpop.f32.mrf.mxu1 }
 0xec1   : > { %v1849_v55 = vpop.f32.mrf.mxu1 }
 0xec2   : > { %1863 = vrot.lane.b32.xlu0 %v1849_v55, %s3521_s22 }
 0xec9   : > { %v1852_v8 = vpop.f32.mrf.mxu1 }
 0xeca   : > { %1865 = vrot.lane.b32.xlu2 %v1852_v8, %s3521_s22  ;;  %v1937_v8 = vmul.f32 %v1935_v37, %v4139_v36 }
 0xed1   : > { %v1855_v28 = vpop.f32.mrf.mxu1 }
 0xed2   : > { %1895 = vrot.lane.b32.xlu2 %v4280_v32, %s3522_s23  ;;  %1871 = vrot.lane.b32.xlu1 %v1855_v28, %s3522_s23  ;;  %v4324_v32 = vld [vmem:[%s4927_s5 + $0x48] sm:$0xff] }
 0xed3   : > { %1913 = vmatpush.msrb.mxu3 %v4324_v32  ;;  %2190 = vmatpush.msra.mxu1 %v4324_v32 }
 0xed9   : > { %v1858_v42 = vpop.f32.mrf.mxu1 }
 0xeda   : > { %1897 = vrot.lane.b32.xlu1 %v1675_v49, %s3522_s23  ;;  %1873 = vrot.lane.b32.xlu0 %v1858_v42, %s3522_s23  ;;  %v4333_v49 = vld [vmem:[%s4927_s5 + $0x40] sm:$0xff]  ;;  %v1936_v42 = vmul.f32 %v1934_v39, %v4143_v38 }
 0xedb   : > { %1914 = vmatpush.msrb.mxu3 %v4333_v49  ;;  %2191 = vmatpush.msra.mxu1 %v4333_v49 }
 0xedd   : > { %1915 = vmatpush.msrb.mxu3 %v4339_v44  ;;  %2192 = vmatpush.msra.mxu1 %v4339_v44 }
 0xedf   : > { %1916 = vmatpush.msrb.mxu3 %v4345_v45  ;;  %2193 = vmatpush.msra.mxu1 %v4345_v45 }
 0xee1   : > { %1917 = vmatpush.msrb.mxu3 %v4352_v46  ;;  %2194 = vmatpush.msra.mxu1 %v4352_v46 }
 0xee3   : > { %1918 = vmatpush.msrb.mxu3 %v4359_v47  ;;  %2195 = vmatpush.msra.mxu1 %v4359_v47 }
 0xee5   : > { %1919 = vmatpush.msrb.mxu3 %v4366_v48  ;;  %2196 = vmatpush.msra.mxu1 %v4366_v48 }
 0xee7   : > { %1920 = vmatpush.msrb.mxu3 %v4373_v60  ;;  %2197 = vmatpush.msra.mxu1 %v4373_v60 }
 0xee9   : > { %1921 = vmatpush.msrb.mxu3 %v4380_v2  ;;  %2198 = vmatpush.msra.mxu1 %v4380_v2 }
 0xeeb   : > { %1922 = vmatpush.msrb.mxu3 %v4389_v1  ;;  %2199 = vmatpush.msra.mxu1 %v4389_v1 }
 0xf24   : > { %v1866_v7 = vpop.permute.xlu2 %1865 }
 0xf25   : > { %v1878_v9 = vsel %vm913_vm2, %v1846_v41, %v1866_v7 }
 0xf2c   : > { %v1896_v31 = vpop.permute.xlu2 %1895 }
 0xf34   : > { %v1864_v3 = vpop.permute.xlu0 %1863 }
 0xf35   : > { %v1877_v4 = vsel %vm913_vm2, %v1843_v40, %v1864_v3 }
 0xf44   : > { %v1872_v5 = vpop.permute.xlu1 %1871 }
 0xf45   : > { %v1879_v6 = vsel %vm916_vm3, %v1877_v4, %v1872_v5  ;;  %v3403_v4 = vld [vmem:[%s4925_s3] ss:$0 sm:$0xff]  ;;  %v3402_v5 = vld [vmem:[%s4925_s3 + $0x2] ss:$0 sm:$0xff] }
 0xf46   : > { %3223 = vmatmul.msk.f32.vlgmr.msrb.gmra.mxu3 %vm500_vm1, %v1879_v6 }
 0xf4c   : > { %v1874_v10 = vpop.permute.xlu0 %1873  ;;  %v1898_v56 = vpop.permute.xlu1 %1897 }
 0xf4d   : > { %v1880_v20 = vsel %vm916_vm3, %v1878_v9, %v1874_v10 }
 0xf4e   : > { %3224 = vmatmul.msk.f32.gmra.mxu3 %vm500_vm1, %v1880_v20 }
 0xfc9   : > { %v1924_v22 = vpop.f32.mrf.mxu3 }
 0xfca   : > { %v1925_v51 = vadd.f32 %v1924_v22, %v1896_v31 }
 0xfcc   : > { %3457 = vtanh.f32 %v1925_v51 }
 0xfd1   : > { %v1927_v61 = vpop.f32.mrf.mxu3 }
 0xfd2   : > { %v1928_v35 = vadd.f32 %v1927_v61, %v1898_v56  ;;  %v3458_v34 = vpop.eup %3457 }
 0xfd3   : > { %v1932_v41 = vmul.f32 %v3458_v34, %v4283_v17 }
 0xfd4   : > { %3459 = vtanh.f32 %v1928_v35 }
 0xfd5   : > { %v4408_v3 = vadd.f32 %v1936_v42, %v1932_v41 }
 0xfda   : > { %v3460_v40 = vpop.eup %3459 }
 0xfdb   : > { %v1933_v55 = vmul.f32 %v3460_v40, %v4285_v33  ;;  %v3401_v33 = vld [vmem:[%s4925_s3 + $0x1] ss:$0 sm:$0xff] }
 0xfdd   : > { %v4404_v28 = vadd.f32 %v1937_v8, %v1933_v55 }
 0xfdf   : > { %1967 = vmatpush.msra.mxu0 %v4404_v28 }
 0xfe1   : > { %1968 = vmatpush.msra.mxu0 %v4408_v3 }
 0xfe2   : > { %3225 = vmatmul.msk.f32.vlgmr.msra.gmra.mxu0 %vm303_vm0, %v3612_v11 }
 0xfe3   : > { %2298 = vmatpush.msrb.mxu0 %v4165_v50  ;;  %v3527_v50 = vmov 4  }
 0xfe4   : > { %3357 = vset.pattern.permute.xlu2 %v3527_v50  ;;  %3356 = vset.pattern.permute.xlu1 %v3527_v50 }
 0xfe5   : > { %2299 = vmatpush.msrb.mxu0 %v4170_v52  ;;  %3358 = vset.pattern.permute.xlu0 %v3527_v50 }
 0xfe7   : > { %2300 = vmatpush.msrb.mxu0 %v4177_v53 }
 0xfe9   : > { %2301 = vmatpush.msrb.mxu0 %v4185_v54 }
 0xfea   : > { %3226 = vmatmul.msk.f32.gmra.mxu0 %vm303_vm0, %v3618_v12 }
 0xfeb   : > { %2302 = vmatpush.msrb.mxu0 %v4194_v57 }
 0xfed   : > { %2303 = vmatpush.msrb.mxu0 %v4201_v58 }
 0xfef   : > { %2304 = vmatpush.msrb.mxu0 %v4208_v59 }
 0xff1   : > { %2305 = vmatpush.msrb.mxu0 %v4224_v62 }
 0xff2   : > { %3227 = vmatmul.msk.f32.gmra.mxu0 %vm303_vm0, %v3624_v13 }
 0xff3   : > { %2306 = vmatpush.msrb.mxu0 %v4229_v63 }
 0xff5   : > { %2307 = vmatpush.msrb.mxu0 %v4236_v0 }
 0xff7   : > { %2308 = vmatpush.msrb.mxu0 %v4243_v24 }
 0xff9   : > { %2309 = vmatpush.msrb.mxu0 %v4252_v26 }
 0xffa   : > { %3228 = vmatmul.msk.f32.gmra.mxu0 %vm303_vm0, %v3630_v14 }
0x1002   : > { %3229 = vmatmul.msk.f32.gmra.mxu0 %vm303_vm0, %v3636_v15 }
0x100a   : > { %3230 = vmatmul.msk.f32.gmra.mxu0 %vm303_vm0, %v3642_v16 }
0x105f   : > { %v1970_v52 = vpop.f32.mrf.mxu0 }
0x1067   : > { %v1973_v53 = vpop.f32.mrf.mxu0 }
0x106f   : > { %v1976_v54 = vpop.f32.mrf.mxu0 }
0x1070   : > { %1990 = vrot.lane.b32.xlu0 %v1976_v54, %s3521_s22 }
0x1077   : > { %v1979_v57 = vpop.f32.mrf.mxu0 }
0x1078   : > { %1992 = vrot.lane.b32.xlu2 %v1979_v57, %s3521_s22 }
0x107f   : > { %v1982_v58 = vpop.f32.mrf.mxu0 }
0x1080   : > { %676 = vperm.xlu2 %3357, %v3661_v25   ;;  %1998 = vrot.lane.b32.xlu1 %v1982_v58, %s3522_s23 }
0x1087   : > { %v1985_v59 = vpop.f32.mrf.mxu0 }
0x1088   : > { %692 = vperm.xlu2 %3357, %v3669_v29   ;;  %662 = vperm.xlu1 %3356, %v3654_v21  }
0x1089   : > { %2000 = vrot.lane.b32.xlu0 %v1985_v59, %s3522_s23 }
0x1090   : > { %2089 = vrot.lane.b32.xlu2 %v4404_v28, %s3521_s22  ;;  %672 = vperm.xlu1 %3356, %v3658_v23  }
0x1091   : > { %658 = vperm.xlu0 %3358, %v3650_v19  }
0x1098   : > { %688 = vperm.xlu1 %3356, %v3665_v27  }
0x1099   : > { %2087 = vrot.lane.b32.xlu0 %v4408_v3, %s3521_s22 }
0x10d2   : > { %v1993_v62 = vpop.permute.xlu2 %1992 }
0x10d3   : > { %v2005_v9 = vsel %vm913_vm2, %v1973_v53, %v1993_v62 }
0x10da   : > { %v677_v0 = vpop.permute.xlu2 %676 }
0x10db   : > { %v683_v10 = vmul.f32 %v3401_v33, %v677_v0 }
0x10e2   : > { %v1991_v63 = vpop.permute.xlu0 %1990  ;;  %v693_v6 = vpop.permute.xlu2 %692 }
0x10e3   : > { %v2004_v24 = vsel %vm913_vm2, %v1970_v52, %v1991_v63  ;;  %v699_v51 = vmul.f32 %v3402_v5, %v693_v6 }
0x10f2   : > { %v1999_v26 = vpop.permute.xlu1 %1998 }
0x10f3   : > { %v2006_v17 = vsel %vm916_vm3, %v2004_v24, %v1999_v26 }
0x10f4   : > { %3231 = vmatmul.msk.f32.vlgmr.msrb.gmra.mxu2 %vm500_vm1, %v2006_v17 }
0x10fa   : > { %v663_v7 = vpop.permute.xlu1 %662 }
0x10fb   : > { %v669_v20 = vmul.f32 %v3403_v4, %v663_v7  ;;  %v2001_v22 = vpop.permute.xlu0 %2000 }
0x10fc   : > { %v2007_v31 = vsel %vm916_vm3, %v2005_v9, %v2001_v22 }
0x10fd   : > { %v685_v56 = vadd.f32 %v683_v10, %v669_v20  ;;  %3232 = vmatmul.msk.f32.gmra.mxu2 %vm500_vm1, %v2007_v31 }
0x10ff   : > { %v701_v61 = vadd.f32 %v699_v51, %v685_v56 }
0x1101   : > { %v703_v35 = vadd.f32 %v4274_v30, %v701_v61 }
0x1102   : > { %v673_v37 = vpop.permute.xlu1 %672 }
0x1103   : > { %706 = vst.msk [vmem:[#allocation2 + $0x48] sm:$0xff] %vm500_vm1, %v703_v35  ;;  %v659_v34 = vpop.permute.xlu0 %658  ;;  %v682_v39 = vmul.f32 %v3401_v33, %v673_v37 }
0x1104   : > { %v668_v40 = vmul.f32 %v3403_v4, %v659_v34 }
0x1106   : > { %v684_v55 = vadd.f32 %v682_v39, %v668_v40 }
0x110a   : > { %v689_v41 = vpop.permute.xlu1 %688  ;;  %v4471_v58 = vld [vmem:[#allocation2 + $0x48] sm:$0xff] }
0x110b   : > { %v698_v8 = vmul.f32 %v3402_v5, %v689_v41 }
0x110d   : > { %v700_v42 = vadd.f32 %v698_v8, %v684_v55  ;;  %v2090_v55 = vpop.permute.xlu2 %2089  ;;  %v2088_v8 = vpop.permute.xlu0 %2087 }
0x110f   : > { %v702_v50 = vadd.f32 %v4274_v30, %v700_v42 }
0x1111   : > { %705 = vst.msk [vmem:[#allocation2 + $0x40] sm:$0xff] %vm500_vm1, %v702_v50 }
0x1118   : > { %v4468_v52 = vld [vmem:[#allocation2 + $0x40] sm:$0xff] }
0x1177   : > { %v2043_v53 = vpop.f32.mrf.mxu2 }
0x1178   : > { %v2044_v54 = vadd.f32 %v2043_v53, %v4468_v52 }
0x117a   : > { %v3233_v57 = vmul.f32 -1.442695, %v2044_v54 }
0x117c   : > { %3461 = vpow2.f32 %v3233_v57 }
0x1180   : > { %v2046_v59 = vpop.f32.mrf.mxu2 }
0x1181   : > { %v2047_v62 = vadd.f32 %v2046_v59, %v4471_v58 }
0x1182   : > { %v3462_v63 = vpop.eup %3461 }
0x1183   : > { %v2055_v0 = vadd.f32 1.0, %v3462_v63  ;;  %v3234_v24 = vmul.f32 -1.442695, %v2047_v62 }
0x1185   : > { %3463 = vrcp.f32 %v2055_v0  ;;  %v2068_v20 = vand.u32 2147483648, %v2055_v0  ;;  %vm2062_vm15 = vweird.f32 %v2055_v0  ;;  %v2066_v31 = vand.u32 2147483647, %v2055_v0 }
0x1186   : > { %3465 = vpow2.f32 %v3234_v24 }
0x1187   : > { %v2069_v37 = vor.u32 1.1754944e-38, %v2068_v20  ;;  %vm2067_vm6 = vcmp.eq.f32.partialorder %v2066_v31, 8.507059e+37 }
0x118b   : > { %v3464_v26 = vpop.eup %3463 }
0x118c   : > { %v3466_v17 = vpop.eup %3465  ;;  %v2058_v33 = vmul.f32 %v3464_v26, %v2055_v0  ;;  %vm2063_vm14 = vweird.f32 %v3464_v26 }
0x118d   : > { %v2056_v4 = vadd.f32 1.0, %v3466_v17  ;;  %vm2064_vm4 = vmor %vm2062_vm15, %vm2063_vm14 }
0x118e   : > { %v2059_v5 = vsub.f32 1.0, %v2058_v33 }
0x118f   : > { %3467 = vrcp.f32 %v2056_v4  ;;  %v2083_v51 = vand.u32 2147483648, %v2056_v4  ;;  %v2081_v35 = vand.u32 2147483647, %v2056_v4  ;;  %vm2077_vm7 = vweird.f32 %v2056_v4 }
0x1190   : > { %v2060_v6 = vmul.f32 %v3464_v26, %v2059_v5 }
0x1191   : > { %v2084_v40 = vor.u32 1.1754944e-38, %v2083_v51  ;;  %vm2082_vm10 = vcmp.eq.f32.partialorder %v2081_v35, 8.507059e+37 }
0x1192   : > { %v2061_v10 = vadd.f32 %v3464_v26, %v2060_v6 }
0x1194   : > { %v2065_v56 = vsel %vm2064_vm4, %v3464_v26, %v2061_v10 }
0x1195   : > { %v3468_v7 = vpop.eup %3467  ;;  %v4474_v39 = vsel %vm2067_vm6, %v2069_v37, %v2065_v56  ;;  %v3528_v56 = vmov 5  }
0x1196   : > { %v2073_v9 = vmul.f32 %v3468_v7, %v2056_v4  ;;  %vm2078_vm5 = vweird.f32 %v3468_v7  ;;  %v2093_v50 = vmul.f32 %v2088_v8, %v4474_v39  ;;  %v2211_v26 = vsub.f32 1.0, %v4474_v39  ;;  %3365 = vset.pattern.permute.xlu1 %v3528_v56  ;;  %3364 = vset.pattern.permute.xlu0 %v3528_v56 }
0x1197   : > { %vm2079_vm9 = vmor %vm2077_vm7, %vm2078_vm5  ;;  %3366 = vset.pattern.permute.xlu2 %v3528_v56 }
0x1198   : > { %v2074_v22 = vsub.f32 1.0, %v2073_v9 }
0x119a   : > { %v2075_v61 = vmul.f32 %v3468_v7, %v2074_v22 }
0x119c   : > { %v2076_v34 = vadd.f32 %v3468_v7, %v2075_v61 }
0x119e   : > { %v2080_v41 = vsel %vm2079_vm9, %v3468_v7, %v2076_v34  ;;  %v2213_v7 = vmul.f32 %v2211_v26, %v4408_v3 }
0x119f   : > { %v4476_v42 = vsel %vm2082_vm10, %v2084_v40, %v2080_v41 }
0x11a0   : > { %v2094_v53 = vmul.f32 %v2090_v55, %v4476_v42  ;;  %v2212_v10 = vsub.f32 1.0, %v4476_v42 }
0x11a2   : > { %v3359_v54 = vpack.i.bf16 %v2093_v50, %v2094_v53  ;;  %v2214_v31 = vmul.f32 %v2212_v10, %v4404_v28 }
0x11a4   : > { %3360 = vrot.lane.b32.xlu1 %v3359_v54, %s3523_s16 }
0x1216   : > { %v3361_v57 = vpop.permute.xlu1 %3360 }
0x1217   : > { %v3362_v59 = vunpack.i.l.bf16 %v3361_v57  ;;  %v3363_v62 = vunpack.i.h.bf16 %v3361_v57 }
0x1219   : > { %2117 = vmatpush.msra.mxu3 %v3362_v59  ;;  %v3405_v59 = vld [vmem:[%s4925_s3 + $0x1] ss:$0 sm:$0xff] }
0x121b   : > { %2118 = vmatpush.msra.mxu3 %v3363_v62 }
0x121c   : > { %3235 = vmatmul.msk.f32.vlgmr.msra.gmra.mxu3 %vm303_vm0, %v3612_v11 }
0x121d   : > { %2458 = vmatpush.msrb.mxu3 %v4312_v18 }
0x121f   : > { %2459 = vmatpush.msrb.mxu3 %v4317_v43 }
0x1221   : > { %2460 = vmatpush.msrb.mxu3 %v4324_v32 }
0x1223   : > { %2461 = vmatpush.msrb.mxu3 %v4333_v49 }
0x1224   : > { %3236 = vmatmul.msk.f32.gmra.mxu3 %vm303_vm0, %v3618_v12 }
0x1225   : > { %2462 = vmatpush.msrb.mxu3 %v4339_v44 }
0x1227   : > { %2463 = vmatpush.msrb.mxu3 %v4345_v45 }
0x1229   : > { %2464 = vmatpush.msrb.mxu3 %v4352_v46 }
0x122b   : > { %2465 = vmatpush.msrb.mxu3 %v4359_v47 }
0x122c   : > { %3237 = vmatmul.msk.f32.gmra.mxu3 %vm303_vm0, %v3624_v13 }
0x122d   : > { %2466 = vmatpush.msrb.mxu3 %v4366_v48 }
0x122f   : > { %2467 = vmatpush.msrb.mxu3 %v4373_v60 }
0x1231   : > { %2468 = vmatpush.msrb.mxu3 %v4380_v2 }
0x1233   : > { %2469 = vmatpush.msrb.mxu3 %v4389_v1 }
0x1234   : > { %3238 = vmatmul.msk.f32.gmra.mxu3 %vm303_vm0, %v3630_v14 }
0x123c   : > { %3239 = vmatmul.msk.f32.gmra.mxu3 %vm303_vm0, %v3636_v15 }
0x1244   : > { %3240 = vmatmul.msk.f32.gmra.mxu3 %vm303_vm0, %v3642_v16 }
0x129f   : > { %v2120_v18 = vpop.f32.mrf.mxu3 }
0x12a7   : > { %v2123_v43 = vpop.f32.mrf.mxu3 }
0x12af   : > { %v2126_v32 = vpop.f32.mrf.mxu3 }
0x12b0   : > { %2140 = vrot.lane.b32.xlu2 %v2126_v32, %s3521_s22 }
0x12b7   : > { %v2129_v49 = vpop.f32.mrf.mxu3 }
0x12b8   : > { %2142 = vrot.lane.b32.xlu1 %v2129_v49, %s3521_s22 }
0x12bf   : > { %v2132_v44 = vpop.f32.mrf.mxu3 }
0x12c0   : > { %2172 = vrot.lane.b32.xlu1 %v4468_v52, %s3522_s23  ;;  %2148 = vrot.lane.b32.xlu0 %v2132_v44, %s3522_s23 }
0x12c7   : > { %v2135_v45 = vpop.f32.mrf.mxu3 }
0x12c8   : > { %2174 = vrot.lane.b32.xlu0 %v4471_v58, %s3522_s23  ;;  %2150 = vrot.lane.b32.xlu2 %v2135_v45, %s3522_s23 }
0x130a   : > { %v2141_v46 = vpop.permute.xlu2 %2140 }
0x130b   : > { %v2154_v47 = vsel %vm913_vm2, %v2120_v18, %v2141_v46  ;;  %v3404_v18 = vld [vmem:[%s4925_s3] ss:$0 sm:$0xff] }
0x1322   : > { %v2151_v52 = vpop.permute.xlu2 %2150 }
0x132a   : > { %v2143_v2 = vpop.permute.xlu1 %2142 }
0x132b   : > { %v2155_v1 = vsel %vm913_vm2, %v2123_v43, %v2143_v2  ;;  %v3406_v43 = vld [vmem:[%s4925_s3 + $0x2] ss:$0 sm:$0xff] }
0x132c   : > { %v2157_v63 = vsel %vm916_vm3, %v2155_v1, %v2151_v52 }
0x1332   : > { %v2149_v48 = vpop.permute.xlu0 %2148  ;;  %v2173_v58 = vpop.permute.xlu1 %2172 }
0x1333   : > { %v2156_v60 = vsel %vm916_vm3, %v2154_v47, %v2149_v48 }
0x1334   : > { %3241 = vmatmul.msk.f32.vlgmr.msra.gmra.mxu1 %vm500_vm1, %v2156_v60 }
0x133a   : > { %v2175_v17 = vpop.permute.xlu0 %2174 }
0x133c   : > { %3242 = vmatmul.msk.f32.gmra.mxu1 %vm500_vm1, %v2157_v63 }
0x13b1   : > { %v2201_v0 = vpop.f32.mrf.mxu1 }
0x13b2   : > { %v2202_v24 = vadd.f32 %v2201_v0, %v2173_v58 }
0x13b4   : > { %3469 = vtanh.f32 %v2202_v24 }
0x13b9   : > { %v2204_v33 = vpop.f32.mrf.mxu1 }
0x13ba   : > { %v3470_v4 = vpop.eup %3469  ;;  %v2205_v5 = vadd.f32 %v2204_v33, %v2175_v17 }
0x13bb   : > { %v2209_v6 = vmul.f32 %v3470_v4, %v4474_v39 }
0x13bc   : > { %3471 = vtanh.f32 %v2205_v5 }
0x13bd   : > { %v4522_v9 = vadd.f32 %v2213_v7, %v2209_v6 }
0x13bf   : > { %2217 = vst.msk [vmem:[%s3928_s30 + $0x8] sm:$0xff] %vm913_vm2, %v4522_v9 }
0x13c2   : > { %v3472_v20 = vpop.eup %3471 }
0x13c3   : > { %v2210_v22 = vmul.f32 %v3472_v20, %v4476_v42 }
0x13c5   : > { %v4530_v51 = vadd.f32 %v2214_v31, %v2210_v22 }
0x13c7   : > { %2235 = vmatpush.msra.mxu2 %v4530_v51  ;;  %2218 = vst.msk [vmem:[%s3928_s30 + $0x18] sm:$0xff] %vm913_vm2, %v4530_v51 }
0x13c9   : > { %2236 = vmatpush.msra.mxu2 %v4522_v9 }
0x13ca   : > { %3243 = vmatmul.msk.f32.vlgmr.msra.gmra.mxu2 %vm303_vm0, %v3612_v11 }
0x13d2   : > { %3244 = vmatmul.msk.f32.gmra.mxu2 %vm303_vm0, %v3618_v12 }
0x13da   : > { %3245 = vmatmul.msk.f32.gmra.mxu2 %vm303_vm0, %v3624_v13 }
0x13e2   : > { %3246 = vmatmul.msk.f32.gmra.mxu2 %vm303_vm0, %v3630_v14 }
0x13ea   : > { %3247 = vmatmul.msk.f32.gmra.mxu2 %vm303_vm0, %v3636_v15 }
0x13f2   : > { %3248 = vmatmul.msk.f32.gmra.mxu2 %vm303_vm0, %v3642_v16 }
0x144d   : > { %v2238_v61 = vpop.f32.mrf.mxu2 }
0x1455   : > { %v2241_v35 = vpop.f32.mrf.mxu2 }
0x145d   : > { %v2244_v37 = vpop.f32.mrf.mxu2 }
0x145e   : > { %2258 = vrot.lane.b32.xlu2 %v2244_v37, %s3521_s22 }
0x1465   : > { %v2247_v34 = vpop.f32.mrf.mxu2 }
0x1466   : > { %2260 = vrot.lane.b32.xlu1 %v2247_v34, %s3521_s22 }
0x146d   : > { %v2250_v39 = vpop.f32.mrf.mxu2 }
0x146e   : > { %727 = vperm.xlu1 %3365, %v3661_v25   ;;  %2266 = vrot.lane.b32.xlu0 %v2250_v39, %s3522_s23 }
0x1475   : > { %v2253_v40 = vpop.f32.mrf.mxu2 }
0x1476   : > { %723 = vperm.xlu1 %3365, %v3658_v23   ;;  %713 = vperm.xlu0 %3364, %v3654_v21  }
0x1477   : > { %2268 = vrot.lane.b32.xlu2 %v2253_v40, %s3522_s23 }
0x147e   : > { %2359 = vrot.lane.b32.xlu1 %v4530_v51, %s3521_s22  ;;  %739 = vperm.xlu0 %3364, %v3665_v27  }
0x147f   : > { %709 = vperm.xlu2 %3366, %v3650_v19  }
0x1487   : > { %743 = vperm.xlu2 %3366, %v3669_v29  }
0x148f   : > { %2357 = vrot.lane.b32.xlu2 %v4522_v9, %s3521_s22 }
0x14b8   : > { %v2259_v41 = vpop.permute.xlu2 %2258 }
0x14b9   : > { %v2272_v50 = vsel %vm913_vm2, %v2238_v61, %v2259_v41 }
0x14d1   : > { %v2269_v55 = vpop.permute.xlu2 %2268 }
0x14d8   : > { %v2261_v8 = vpop.permute.xlu1 %2260 }
0x14d9   : > { %v710_v42 = vpop.permute.xlu2 %709  ;;  %v2273_v62 = vsel %vm913_vm2, %v2241_v35, %v2261_v8 }
0x14da   : > { %v2275_v46 = vsel %vm916_vm3, %v2273_v62, %v2269_v55  ;;  %v719_v52 = vmul.f32 %v3404_v18, %v710_v42 }
0x14e0   : > { %v728_v53 = vpop.permute.xlu1 %727  ;;  %v2267_v54 = vpop.permute.xlu0 %2266 }
0x14e1   : > { %v2274_v57 = vsel %vm916_vm3, %v2272_v50, %v2267_v54  ;;  %v744_v32 = vpop.permute.xlu2 %743  ;;  %v734_v44 = vmul.f32 %v3405_v59, %v728_v53 }
0x14e2   : > { %3249 = vmatmul.msk.f32.vlgmr.msrb.gmra.mxu0 %vm500_vm1, %v2274_v57  ;;  %v750_v48 = vmul.f32 %v3406_v43, %v744_v32 }
0x14e8   : > { %v714_v49 = vpop.permute.xlu0 %713  ;;  %v724_v47 = vpop.permute.xlu1 %723 }
0x14e9   : > { %v720_v45 = vmul.f32 %v3404_v18, %v714_v49  ;;  %v733_v2 = vmul.f32 %v3405_v59, %v724_v47 }
0x14ea   : > { %3250 = vmatmul.msk.f32.gmra.mxu0 %vm500_vm1, %v2275_v46 }
0x14eb   : > { %v736_v60 = vadd.f32 %v734_v44, %v720_v45  ;;  %v735_v0 = vadd.f32 %v733_v2, %v719_v52  ;;  %v2358_v44 = vpop.permute.xlu2 %2357 }
0x14ed   : > { %v752_v1 = vadd.f32 %v750_v48, %v736_v60 }
0x14ef   : > { %v754_v63 = vadd.f32 %v4274_v30, %v752_v1 }
0x14f0   : > { %v740_v58 = vpop.permute.xlu0 %739  ;;  %v2360_v45 = vpop.permute.xlu1 %2359 }
0x14f1   : > { %757 = vst.msk [vmem:[#allocation2 + $0x58] sm:$0xff] %vm500_vm1, %v754_v63  ;;  %v749_v24 = vmul.f32 %v3406_v43, %v740_v58 }
0x14f3   : > { %v751_v26 = vadd.f32 %v749_v24, %v735_v0 }
0x14f5   : > { %v753_v17 = vadd.f32 %v4274_v30, %v751_v26 }
0x14f7   : > { %756 = vst.msk [vmem:[#allocation2 + $0x50] sm:$0xff] %vm500_vm1, %v753_v17 }
0x14f8   : > { %v4585_v7 = vld [vmem:[#allocation2 + $0x58] sm:$0xff] }
0x14fe   : > { %v4582_v33 = vld [vmem:[#allocation2 + $0x50] sm:$0xff] }
0x155f   : > { %v2311_v4 = vpop.f32.mrf.mxu0 }
0x1560   : > { %v2312_v5 = vadd.f32 %v2311_v4, %v4582_v33 }
0x1562   : > { %v3251_v6 = vmul.f32 -1.442695, %v2312_v5 }
0x1564   : > { %3473 = vpow2.f32 %v3251_v6 }
0x1567   : > { %v2314_v10 = vpop.f32.mrf.mxu0 }
0x1568   : > { %v2315_v20 = vadd.f32 %v2314_v10, %v4585_v7 }
0x156a   : > { %v3474_v22 = vpop.eup %3473  ;;  %v3252_v31 = vmul.f32 -1.442695, %v2315_v20 }
0x156b   : > { %v2323_v56 = vadd.f32 1.0, %v3474_v22 }
0x156c   : > { %3475 = vpow2.f32 %v3252_v31 }
0x156d   : > { %3477 = vrcp.f32 %v2323_v56  ;;  %v2336_v8 = vand.u32 2147483648, %v2323_v56  ;;  %vm2330_vm12 = vweird.f32 %v2323_v56  ;;  %v2334_v50 = vand.u32 2147483647, %v2323_v56 }
0x156f   : > { %v2337_v62 = vor.u32 1.1754944e-38, %v2336_v8  ;;  %vm2335_vm15 = vcmp.eq.f32.partialorder %v2334_v50, 8.507059e+37 }
0x1572   : > { %v3476_v30 = vpop.eup %3475 }
0x1573   : > { %v3478_v61 = vpop.eup %3477  ;;  %v2324_v35 = vadd.f32 1.0, %v3476_v30 }
0x1574   : > { %v2326_v37 = vmul.f32 %v3478_v61, %v2323_v56  ;;  %vm2331_vm11 = vweird.f32 %v3478_v61 }
0x1575   : > { %3479 = vrcp.f32 %v2324_v35  ;;  %vm2332_vm13 = vmor %vm2330_vm12, %vm2331_vm11  ;;  %v2351_v53 = vand.u32 2147483648, %v2324_v35  ;;  %v2349_v59 = vand.u32 2147483647, %v2324_v35  ;;  %vm2345_vm4 = vweird.f32 %v2324_v35 }
0x1576   : > { %v2327_v34 = vsub.f32 1.0, %v2326_v37 }
0x1577   : > { %v2352_v32 = vor.u32 1.1754944e-38, %v2351_v53  ;;  %vm2350_vm6 = vcmp.eq.f32.partialorder %v2349_v59, 8.507059e+37 }
0x1578   : > { %v2328_v39 = vmul.f32 %v3478_v61, %v2327_v34 }
0x157a   : > { %v2329_v55 = vadd.f32 %v3478_v61, %v2328_v39 }
0x157b   : > { %v3480_v40 = vpop.eup %3479 }
0x157c   : > { %v2341_v41 = vmul.f32 %v3480_v40, %v2324_v35  ;;  %v2333_v54 = vsel %vm2332_vm13, %v3478_v61, %v2329_v55  ;;  %vm2346_vm14 = vweird.f32 %v3480_v40 }
0x157d   : > { %v2338_v43 = vsel %vm2335_vm15, %v2337_v62, %v2333_v54  ;;  %vm2347_vm5 = vmor %vm2345_vm4, %vm2346_vm14 }
0x157e   : > { %v2342_v42 = vsub.f32 1.0, %v2341_v41  ;;  %v2363_v47 = vmul.f32 %v2358_v44, %v2338_v43  ;;  %v2562_v44 = vld [vmem:[%s4926_s4 + $0x40] sm:$0xff] }
0x1580   : > { %v2343_v57 = vmul.f32 %v3480_v40, %v2342_v42 }
0x1582   : > { %v2344_v18 = vadd.f32 %v3480_v40, %v2343_v57 }
0x1584   : > { %v2348_v49 = vsel %vm2347_vm5, %v3480_v40, %v2344_v18  ;;  %v2481_v40 = vsub.f32 1.0, %v2338_v43 }
0x1585   : > { %v2353_v46 = vsel %vm2350_vm6, %v2352_v32, %v2348_v49  ;;  %v2564_v32 = vld [vmem:[%s4926_s4 + $0x50] sm:$0xff]  ;;  %v2563_v49 = vld [vmem:[%s4926_s4 + $0x48] sm:$0xff] }
0x1586   : > { %v2364_v48 = vmul.f32 %v2360_v45, %v2353_v46  ;;  %v2482_v34 = vsub.f32 1.0, %v2353_v46  ;;  %v2483_v53 = vmul.f32 %v2481_v40, %v4522_v9  ;;  %v3529_v9 = vmov 6  }
0x1587   : > { %3373 = vset.pattern.permute.xlu0 %v3529_v9  ;;  %3372 = vset.pattern.permute.xlu2 %v3529_v9 }
0x1588   : > { %v3367_v60 = vpack.i.bf16 %v2363_v47, %v2364_v48  ;;  %v2484_v8 = vmul.f32 %v2482_v34, %v4530_v51  ;;  %3374 = vset.pattern.permute.xlu1 %v3529_v9  ;;  %v2560_v47 = vld [vmem:[%s4926_s4 + $0x30] sm:$0xff]  ;;  %v2559_v48 = vld [vmem:[%s4926_s4 + $0x28] sm:$0xff] }
0x158a   : > { %3368 = vrot.lane.b32.xlu0 %v3367_v60, %s3523_s16  ;;  %v2558_v60 = vld [vmem:[%s4926_s4 + $0x20] sm:$0xff] }
0x15fc   : > { %v3369_v2 = vpop.permute.xlu0 %3368 }
0x15fd   : > { %v3370_v1 = vunpack.i.l.bf16 %v3369_v2  ;;  %v3371_v52 = vunpack.i.h.bf16 %v3369_v2  ;;  %v2557_v2 = vld [vmem:[%s4926_s4 + $0x18] sm:$0xff] }
0x15ff   : > { %2387 = vmatpush.msrb.mxu1 %v3370_v1  ;;  %v2556_v1 = vld [vmem:[%s4926_s4 + $0x10] sm:$0xff] }
0x1601   : > { %2388 = vmatpush.msrb.mxu1 %v3371_v52  ;;  %v2555_v52 = vld [vmem:[%s4926_s4 + $0x8] sm:$0xff] }
0x1602   : > { %3253 = vmatmul.msk.f32.vlgmr.msrb.gmra.mxu1 %vm303_vm0, %v3612_v11 }
0x160a   : > { %3254 = vmatmul.msk.f32.gmra.mxu1 %vm303_vm0, %v3618_v12 }
0x1612   : > { %3255 = vmatmul.msk.f32.gmra.mxu1 %vm303_vm0, %v3624_v13 }
0x161a   : > { %3256 = vmatmul.msk.f32.gmra.mxu1 %vm303_vm0, %v3630_v14 }
0x1622   : > { %3257 = vmatmul.msk.f32.gmra.mxu1 %vm303_vm0, %v3636_v15 }
0x162a   : > { %3258 = vmatmul.msk.f32.gmra.mxu1 %vm303_vm0, %v3642_v16 }
0x167f   : > { %v2390_v63 = vpop.f32.mrf.mxu1 }
0x1687   : > { %v2393_v58 = vpop.f32.mrf.mxu1 }
0x168f   : > { %v2396_v0 = vpop.f32.mrf.mxu1 }
0x1690   : > { %2410 = vrot.lane.b32.xlu1 %v2396_v0, %s3521_s22 }
0x1697   : > { %v2399_v24 = vpop.f32.mrf.mxu1 }
0x1698   : > { %2412 = vrot.lane.b32.xlu0 %v2399_v24, %s3521_s22 }
0x169f   : > { %v2402_v26 = vpop.f32.mrf.mxu1 }
0x16a0   : > { %2442 = vrot.lane.b32.xlu0 %v4582_v33, %s3522_s23  ;;  %2418 = vrot.lane.b32.xlu2 %v2402_v26, %s3522_s23 }
0x16a7   : > { %v2405_v17 = vpop.f32.mrf.mxu1 }
0x16a8   : > { %2444 = vrot.lane.b32.xlu2 %v4585_v7, %s3522_s23  ;;  %2420 = vrot.lane.b32.xlu1 %v2405_v17, %s3522_s23 }
0x16fa   : > { %v2419_v5 = vpop.permute.xlu2 %2418 }
0x1702   : > { %v2411_v4 = vpop.permute.xlu1 %2410  ;;  %v2445_v61 = vpop.permute.xlu2 %2444 }
0x1703   : > { %v2424_v6 = vsel %vm913_vm2, %v2390_v63, %v2411_v4  ;;  %v2554_v63 = vld [vmem:[%s4926_s4] sm:$0xff] }
0x1704   : > { %v2426_v10 = vsel %vm916_vm3, %v2424_v6, %v2419_v5 }
0x1705   : > { %3259 = vmatmul.msk.f32.vlgmr.msrb.gmra.mxu3 %vm500_vm1, %v2426_v10 }
0x170a   : > { %v2413_v20 = vpop.permute.xlu0 %2412 }
0x170b   : > { %v2425_v22 = vsel %vm913_vm2, %v2393_v58, %v2413_v20 }
0x1712   : > { %v2443_v7 = vpop.permute.xlu0 %2442 }
0x171a   : > { %v2421_v33 = vpop.permute.xlu1 %2420 }
0x171b   : > { %v2427_v31 = vsel %vm916_vm3, %v2425_v22, %v2421_v33 }
0x171c   : > { %3260 = vmatmul.msk.f32.gmra.mxu3 %vm500_vm1, %v2427_v31  ;;  %v3408_v31 = vld [vmem:[%s4925_s3 + $0x1] ss:$0 sm:$0xff] }
0x1788   : > { %v2471_v56 = vpop.f32.mrf.mxu3 }
0x1789   : > { %v2472_v30 = vadd.f32 %v2471_v56, %v2443_v7  ;;  %v3407_v56 = vld [vmem:[%s4925_s3] ss:$0 sm:$0xff]  ;;  %v3409_v7 = vld [vmem:[%s4925_s3 + $0x2] ss:$0 sm:$0xff] }
0x178b   : > { %3481 = vtanh.f32 %v2472_v30 }
0x1791   : > { %v3482_v39 = vpop.eup %3481 }
0x1792   : > { %v2479_v42 = vmul.f32 %v3482_v39, %v2338_v43  ;;  %v2565_v43 = vld [vmem:[%s4926_s4 + $0x58] sm:$0xff] }
0x1793   : > { %2576 = vmatpush.msrb.mxu2 %v2565_v43 }
0x1794   : > { %v4620_v54 = vadd.f32 %v2483_v53, %v2479_v42 }
0x1795   : > { %2577 = vmatpush.msrb.mxu2 %v2564_v32 }
0x1797   : > { %2578 = vmatpush.msrb.mxu2 %v2563_v49 }
0x1799   : > { %2579 = vmatpush.msrb.mxu2 %v2562_v44 }
0x179f   : > { %v2474_v35 = vpop.f32.mrf.mxu3 }
0x17a0   : > { %v2475_v37 = vadd.f32 %v2474_v35, %v2445_v61 }
0x17a2   : > { %3483 = vtanh.f32 %v2475_v37 }
0x17a8   : > { %v3484_v41 = vpop.eup %3483 }
0x17a9   : > { %v2480_v55 = vmul.f32 %v3484_v41, %v2353_v46  ;;  %v2561_v46 = vld [vmem:[%s4926_s4 + $0x38] sm:$0xff] }
0x17aa   : > { %2580 = vmatpush.msrb.mxu2 %v2561_v46 }
0x17ab   : > { %v4616_v50 = vadd.f32 %v2484_v8, %v2480_v55  ;;  %v4711_v8 = vld [vmem:[%s4928_s6] ss:$0 sm:$0xff] }
0x17ac   : > { %2581 = vmatpush.msrb.mxu2 %v2560_v47 }
0x17ad   : > { %2513 = vmatpush.msra.mxu0 %v4616_v50 }
0x17ae   : > { %2582 = vmatpush.msrb.mxu2 %v2559_v48 }
0x17af   : > { %2514 = vmatpush.msra.mxu0 %v4620_v54 }
0x17b0   : > { %3261 = vmatmul.msk.f32.vlgmr.msra.gmra.mxu0 %vm303_vm0, %v3612_v11  ;;  %2583 = vmatpush.msrb.mxu2 %v2558_v60 }
0x17b1   : > { %2846 = vmatpush.msrb.mxu0 %v2565_v43 }
0x17b2   : > { %2584 = vmatpush.msrb.mxu2 %v2557_v2 }
0x17b3   : > { %2847 = vmatpush.msrb.mxu0 %v2564_v32 }
0x17b4   : > { %2585 = vmatpush.msrb.mxu2 %v2556_v1 }
0x17b5   : > { %2848 = vmatpush.msrb.mxu0 %v2563_v49 }
0x17b6   : > { %2586 = vmatpush.msrb.mxu2 %v2555_v52 }
0x17b7   : > { %2849 = vmatpush.msrb.mxu0 %v2562_v44 }
0x17b8   : > { %3262 = vmatmul.msk.f32.gmra.mxu0 %vm303_vm0, %v3618_v12  ;;  %2587 = vmatpush.msrb.mxu2 %v2554_v63 }
0x17b9   : > { %2850 = vmatpush.msrb.mxu0 %v2561_v46 }
0x17bb   : > { %2851 = vmatpush.msrb.mxu0 %v2560_v47 }
0x17bd   : > { %2852 = vmatpush.msrb.mxu0 %v2559_v48 }
0x17bf   : > { %2853 = vmatpush.msrb.mxu0 %v2558_v60 }
0x17c0   : > { %3263 = vmatmul.msk.f32.gmra.mxu0 %vm303_vm0, %v3624_v13 }
0x17c1   : > { %2854 = vmatpush.msrb.mxu0 %v2557_v2 }
0x17c3   : > { %2855 = vmatpush.msrb.mxu0 %v2556_v1 }
0x17c5   : > { %2856 = vmatpush.msrb.mxu0 %v2555_v52 }
0x17c7   : > { %2857 = vmatpush.msrb.mxu0 %v2554_v63 }
0x17c8   : > { %3264 = vmatmul.msk.f32.gmra.mxu0 %vm303_vm0, %v3630_v14 }
0x17d0   : > { %3265 = vmatmul.msk.f32.gmra.mxu0 %vm303_vm0, %v3636_v15 }
0x17d8   : > { %3266 = vmatmul.msk.f32.gmra.mxu0 %vm303_vm0, %v3642_v16 }
0x182d   : > { %v2516_v51 = vpop.f32.mrf.mxu0 }
0x1835   : > { %v4635_v57 = vpop.f32.mrf.mxu0 }
0x183d   : > { %v2522_v59 = vpop.f32.mrf.mxu0 }
0x183e   : > { %2536 = vrot.lane.b32.xlu1 %v2522_v59, %s3521_s22 }
0x1845   : > { %v2525_v62 = vpop.f32.mrf.mxu0 }
0x1846   : > { %2538 = vrot.lane.b32.xlu0 %v2525_v62, %s3521_s22 }
0x184d   : > { %v2528_v18 = vpop.f32.mrf.mxu0 }
0x184e   : > { %778 = vperm.xlu0 %3373, %v3661_v25   ;;  %2544 = vrot.lane.b32.xlu2 %v2528_v18, %s3522_s23 }
0x1855   : > { %v2531_v45 = vpop.f32.mrf.mxu0 }
0x1856   : > { %2491 = vrot.lane.b32.xlu0 %v4616_v50, %s3521_s22  ;;  %764 = vperm.xlu2 %3372, %v3654_v21  }
0x1857   : > { %2546 = vrot.lane.b32.xlu1 %v2531_v45, %s3522_s23 }
0x185e   : > { %774 = vperm.xlu2 %3372, %v3658_v23  }
0x185f   : > { %760 = vperm.xlu1 %3374, %v3650_v19  }
0x1866   : > { %790 = vperm.xlu2 %3372, %v3665_v27  }
0x1867   : > { %794 = vperm.xlu1 %3374, %v3669_v29  }
0x186f   : > { %2489 = vrot.lane.b32.xlu1 %v4620_v54, %s3521_s22 }
0x18a8   : > { %v2545_v0 = vpop.permute.xlu2 %2544 }
0x18b0   : > { %v2537_v58 = vpop.permute.xlu1 %2536  ;;  %v765_v4 = vpop.permute.xlu2 %764 }
0x18b1   : > { %v2550_v24 = vsel %vm913_vm2, %v2516_v51, %v2537_v58  ;;  %v771_v55 = vmul.f32 %v3407_v56, %v765_v4 }
0x18b2   : > { %v2552_v26 = vsel %vm916_vm3, %v2550_v24, %v2545_v0 }
0x18b3   : > { %3267 = vmatmul.msk.f32.vlgmr.msrb.gmra.mxu2 %vm500_vm1, %v2552_v26 }
0x18b8   : > { %v2539_v17 = vpop.permute.xlu0 %2538  ;;  %v775_v6 = vpop.permute.xlu2 %774 }
0x18b9   : > { %v2551_v20 = vsel %vm913_vm2, %v4635_v57, %v2539_v17  ;;  %v784_v35 = vmul.f32 %v3408_v31, %v775_v6 }
0x18c0   : > { %v779_v5 = vpop.permute.xlu0 %778  ;;  %v791_v30 = vpop.permute.xlu2 %790 }
0x18c1   : > { %v800_v34 = vmul.f32 %v3409_v7, %v791_v30  ;;  %v785_v40 = vmul.f32 %v3408_v31, %v779_v5 }
0x18c3   : > { %v787_v9 = vadd.f32 %v785_v40, %v771_v55 }
0x18c8   : > { %v4690_v10 = vpop.permute.xlu0 %2491 }
0x18c9   : > { %2496 = vst.msk [vmem:[%s3928_s30 + $0x18] sm:$0xff] %vm1400_vm8, %v4690_v10  ;;  %v2547_v22 = vpop.permute.xlu1 %2546 }
0x18ca   : > { %v2553_v33 = vsel %vm916_vm3, %v2551_v20, %v2547_v22 }
0x18cb   : > { %3268 = vmatmul.msk.f32.gmra.mxu2 %vm500_vm1, %v2553_v33 }
0x18d1   : > { %v761_v61 = vpop.permute.xlu1 %760 }
0x18d2   : > { %v770_v37 = vmul.f32 %v3407_v56, %v761_v61 }
0x18d4   : > { %v786_v39 = vadd.f32 %v784_v35, %v770_v37 }
0x18d6   : > { %v802_v41 = vadd.f32 %v800_v34, %v786_v39 }
0x18d8   : > { %v804_v42 = vadd.f32 %v4711_v8, %v802_v41 }
0x18d9   : > { %v795_v53 = vpop.permute.xlu1 %794 }
0x18da   : > { %807 = vst.msk [vmem:[#allocation2 + $0x60] sm:$0xff] %vm500_vm1, %v804_v42  ;;  %v801_v51 = vmul.f32 %v3409_v7, %v795_v53 }
0x18dc   : > { %v803_v57 = vadd.f32 %v801_v51, %v787_v9 }
0x18de   : > { %v805_v59 = vadd.f32 %v4711_v8, %v803_v57 }
0x18e0   : > { %808 = vst.msk [vmem:[#allocation2 + $0x68] sm:$0xff] %vm500_vm1, %v805_v59 }
0x18e1   : > { %v2490_v62 = vpop.permute.xlu1 %2489  ;;  %v4719_v43 = vld [vmem:[#allocation2 + $0x60] sm:$0xff] }
0x18e2   : > { %2495 = vst.msk [vmem:[%s3928_s30 + $0x8] sm:$0xff] %vm1400_vm8, %v2490_v62 }
0x18e7   : > { %v2498_v46 = vld [vmem:[#allocation2 + $0x68] sm:$0xff] }
0x1936   : > { %v2589_v18 = vpop.f32.mrf.mxu2 }
0x1937   : > { %v2590_v32 = vadd.f32 %v2589_v18, %v4719_v43  ;;  %v2708_v18 = vld [vmem:[%s4927_s5 + $0x50] sm:$0xff] }
0x1939   : > { %v3269_v49 = vmul.f32 -1.442695, %v2590_v32  ;;  %v2706_v32 = vld [vmem:[%s4927_s5 + $0x40] sm:$0xff] }
0x193b   : > { %3485 = vpow2.f32 %v3269_v49  ;;  %v2705_v49 = vld [vmem:[%s4927_s5 + $0x38] sm:$0xff] }
0x1941   : > { %v3486_v44 = vpop.eup %3485 }
0x1942   : > { %v2601_v45 = vadd.f32 1.0, %v3486_v44  ;;  %v2704_v44 = vld [vmem:[%s4927_s5 + $0x30] sm:$0xff] }
0x1944   : > { %3487 = vrcp.f32 %v2601_v45  ;;  %v2614_v4 = vand.u32 2147483648, %v2601_v45  ;;  %vm2608_vm7 = vweird.f32 %v2601_v45  ;;  %v2612_v6 = vand.u32 2147483647, %v2601_v45 }
0x1946   : > { %v2615_v56 = vor.u32 1.1754944e-38, %v2614_v4  ;;  %vm2613_vm11 = vcmp.eq.f32.partialorder %v2612_v6, 8.507059e+37 }
0x194a   : > { %v3488_v2 = vpop.eup %3487 }
0x194b   : > { %v2604_v1 = vmul.f32 %v3488_v2, %v2601_v45  ;;  %vm2609_vm8 = vweird.f32 %v3488_v2  ;;  %v2703_v45 = vld [vmem:[%s4927_s5 + $0x28] sm:$0xff] }
0x194c   : > { %vm2610_vm9 = vmor %vm2608_vm7, %vm2609_vm8 }
0x194d   : > { %v2605_v58 = vsub.f32 1.0, %v2604_v1 }
0x194e   : > { %v2592_v47 = vpop.f32.mrf.mxu2 }
0x194f   : > { %v2593_v48 = vadd.f32 %v2592_v47, %v2498_v46  ;;  %v2606_v0 = vmul.f32 %v3488_v2, %v2605_v58  ;;  %v2701_v47 = vld [vmem:[%s4927_s5 + $0x18] sm:$0xff] }
0x1951   : > { %v3270_v60 = vmul.f32 -1.442695, %v2593_v48  ;;  %v2607_v17 = vadd.f32 %v3488_v2, %v2606_v0  ;;  %v2700_v48 = vld [vmem:[%s4927_s5 + $0x10] sm:$0xff] }
0x1953   : > { %3489 = vpow2.f32 %v3270_v60  ;;  %v2611_v22 = vsel %vm2610_vm9, %v3488_v2, %v2607_v17  ;;  %v2699_v60 = vld [vmem:[%s4927_s5 + $0x8] sm:$0xff]  ;;  %v2698_v2 = vld [vmem:[%s4927_s5] sm:$0xff] }
0x1954   : > { %v4722_v30 = vsel %vm2613_vm11, %v2615_v56, %v2611_v22  ;;  %vm1948_vm11 = vcmask 1048320  }
0x1955   : > { %v2633_v34 = vmul.f32 %v4722_v30, %v2490_v62  ;;  %v2709_v62 = vld [vmem:[%s4927_s5 + $0x58] sm:$0xff] }
0x1956   : > { %2728 = vmatpush.msra.mxu1 %v2709_v62 }
0x1958   : > { %2729 = vmatpush.msra.mxu1 %v2708_v18 }
0x1959   : > { %v3490_v52 = vpop.eup %3489 }
0x195a   : > { %v2602_v63 = vadd.f32 1.0, %v3490_v52 }
0x195c   : > { %3491 = vrcp.f32 %v2602_v63  ;;  %v2629_v20 = vand.u32 2147483648, %v2602_v63  ;;  %v2627_v31 = vand.u32 2147483647, %v2602_v63  ;;  %vm2623_vm12 = vweird.f32 %v2602_v63 }
0x195e   : > { %v2630_v61 = vor.u32 1.1754944e-38, %v2629_v20  ;;  %vm2628_vm14 = vcmp.eq.f32.partialorder %v2627_v31, 8.507059e+37 }
0x1962   : > { %v3492_v24 = vpop.eup %3491 }
0x1963   : > { %v2619_v26 = vmul.f32 %v3492_v24, %v2602_v63  ;;  %vm2624_vm10 = vweird.f32 %v3492_v24 }
0x1964   : > { %vm2625_vm13 = vmor %vm2623_vm12, %vm2624_vm10 }
0x1965   : > { %v2620_v5 = vsub.f32 1.0, %v2619_v26 }
0x1967   : > { %v2621_v33 = vmul.f32 %v3492_v24, %v2620_v5 }
0x1969   : > { %v2622_v7 = vadd.f32 %v3492_v24, %v2621_v33 }
0x196b   : > { %v2626_v35 = vsel %vm2625_vm13, %v3492_v24, %v2622_v7  ;;  %v2751_v7 = vsub.f32 1.0, %v4722_v30 }
0x196c   : > { %v4724_v37 = vsel %vm2628_vm14, %v2630_v61, %v2626_v35 }
0x196d   : > { %v2634_v39 = vmul.f32 %v4724_v37, %v4690_v10  ;;  %v2752_v31 = vsub.f32 1.0, %v4724_v37 }
0x196f   : > { %v3375_v40 = vpack.i.bf16 %v2633_v34, %v2634_v39  ;;  %v2754_v39 = vmul.f32 %v2752_v31, %v4616_v50  ;;  %v3530_v50 = vmov 7  }
0x1970   : > { %3381 = vset.pattern.permute.xlu2 %v3530_v50  ;;  %3380 = vset.pattern.permute.xlu1 %v3530_v50 }
0x1971   : > { %3376 = vrot.lane.b32.xlu2 %v3375_v40, %s3523_s16  ;;  %3382 = vset.pattern.permute.xlu0 %v3530_v50 }
0x19cb   : > { %v3377_v41 = vpop.permute.xlu2 %3376 }
0x19cc   : > { %v3378_v55 = vunpack.i.l.bf16 %v3377_v41  ;;  %v3379_v42 = vunpack.i.h.bf16 %v3377_v41  ;;  %v2753_v41 = vmul.f32 %v2751_v7, %v4620_v54 }
0x19ce   : > { %2657 = vmatpush.msra.mxu3 %v3378_v55 }
0x19d0   : > { %2658 = vmatpush.msra.mxu3 %v3379_v42 }
0x19d1   : > { %3271 = vmatmul.msk.f32.vlgmr.msra.gmra.mxu3 %vm303_vm0, %v3612_v11 }
0x19d2   : > { %3004 = vmatpush.msrb.mxu3 %v2709_v62 }
0x19d4   : > { %3005 = vmatpush.msrb.mxu3 %v2708_v18 }
0x19d9   : > { %3272 = vmatmul.msk.f32.gmra.mxu3 %vm303_vm0, %v3618_v12 }
0x19e1   : > { %3273 = vmatmul.msk.f32.gmra.mxu3 %vm303_vm0, %v3624_v13 }
0x19e9   : > { %3274 = vmatmul.msk.f32.gmra.mxu3 %vm303_vm0, %v3630_v14 }
0x19f1   : > { %3275 = vmatmul.msk.f32.gmra.mxu3 %vm303_vm0, %v3636_v15 }
0x19f9   : > { %3276 = vmatmul.msk.f32.gmra.mxu3 %vm303_vm0, %v3642_v16 }
0x1a54   : > { %v2660_v10 = vpop.f32.mrf.mxu3 }
0x1a5c   : > { %v2663_v53 = vpop.f32.mrf.mxu3 }
0x1a64   : > { %v2666_v9 = vpop.f32.mrf.mxu3 }
0x1a65   : > { %2680 = vrot.lane.b32.xlu0 %v2666_v9, %s3521_s22 }
0x1a6c   : > { %v2669_v51 = vpop.f32.mrf.mxu3 }
0x1a6d   : > { %2682 = vrot.lane.b32.xlu2 %v2669_v51, %s3521_s22 }
0x1a74   : > { %v2672_v57 = vpop.f32.mrf.mxu3 }
0x1a75   : > { %2712 = vrot.lane.b32.xlu2 %v4719_v43, %s3522_s23  ;;  %2688 = vrot.lane.b32.xlu1 %v2672_v57, %s3522_s23  ;;  %v2707_v43 = vld [vmem:[%s4927_s5 + $0x48] sm:$0xff] }
0x1a76   : > { %2730 = vmatpush.msra.mxu1 %v2707_v43  ;;  %3006 = vmatpush.msrb.mxu3 %v2707_v43 }
0x1a78   : > { %2731 = vmatpush.msra.mxu1 %v2706_v32  ;;  %3007 = vmatpush.msrb.mxu3 %v2706_v32 }
0x1a7a   : > { %2732 = vmatpush.msra.mxu1 %v2705_v49  ;;  %3008 = vmatpush.msrb.mxu3 %v2705_v49 }
0x1a7c   : > { %v2675_v59 = vpop.f32.mrf.mxu3  ;;  %2733 = vmatpush.msra.mxu1 %v2704_v44  ;;  %3009 = vmatpush.msrb.mxu3 %v2704_v44 }
0x1a7d   : > { %2714 = vrot.lane.b32.xlu1 %v2498_v46, %s3522_s23  ;;  %2690 = vrot.lane.b32.xlu0 %v2675_v59, %s3522_s23  ;;  %v2702_v46 = vld [vmem:[%s4927_s5 + $0x20] sm:$0xff] }
0x1a7e   : > { %2734 = vmatpush.msra.mxu1 %v2703_v45  ;;  %3010 = vmatpush.msrb.mxu3 %v2703_v45 }
0x1a80   : > { %2735 = vmatpush.msra.mxu1 %v2702_v46  ;;  %3011 = vmatpush.msrb.mxu3 %v2702_v46 }
0x1a82   : > { %2736 = vmatpush.msra.mxu1 %v2701_v47  ;;  %3012 = vmatpush.msrb.mxu3 %v2701_v47 }
0x1a84   : > { %2737 = vmatpush.msra.mxu1 %v2700_v48  ;;  %3013 = vmatpush.msrb.mxu3 %v2700_v48 }
0x1a86   : > { %2738 = vmatpush.msra.mxu1 %v2699_v60  ;;  %3014 = vmatpush.msrb.mxu3 %v2699_v60 }
0x1a88   : > { %2739 = vmatpush.msra.mxu1 %v2698_v2  ;;  %3015 = vmatpush.msrb.mxu3 %v2698_v2 }
0x1ac7   : > { %v2683_v0 = vpop.permute.xlu2 %2682 }
0x1ac8   : > { %v2695_v24 = vsel %vm913_vm2, %v2663_v53, %v2683_v0 }
0x1acf   : > { %v2713_v5 = vpop.permute.xlu2 %2712 }
0x1ad7   : > { %v2681_v1 = vpop.permute.xlu0 %2680 }
0x1ad8   : > { %v2694_v52 = vsel %vm913_vm2, %v2660_v10, %v2681_v1 }
0x1ae7   : > { %v2689_v63 = vpop.permute.xlu1 %2688 }
0x1ae8   : > { %v2696_v58 = vsel %vm916_vm3, %v2694_v52, %v2689_v63 }
0x1ae9   : > { %3277 = vmatmul.msk.f32.vlgmr.msra.gmra.mxu1 %vm500_vm1, %v2696_v58 }
0x1aef   : > { %v2691_v26 = vpop.permute.xlu0 %2690  ;;  %v2715_v20 = vpop.permute.xlu1 %2714 }
0x1af0   : > { %v2697_v17 = vsel %vm916_vm3, %v2695_v24, %v2691_v26 }
0x1af1   : > { %3278 = vmatmul.msk.f32.gmra.mxu1 %vm500_vm1, %v2697_v17 }
0x1b66   : > { %v2741_v4 = vpop.f32.mrf.mxu1 }
0x1b67   : > { %v2742_v6 = vadd.f32 %v2741_v4, %v2713_v5 }
0x1b69   : > { %3493 = vtanh.f32 %v2742_v6 }
0x1b6e   : > { %v2744_v22 = vpop.f32.mrf.mxu1 }
0x1b6f   : > { %v2745_v33 = vadd.f32 %v2744_v22, %v2715_v20  ;;  %v3494_v56 = vpop.eup %3493 }
0x1b70   : > { %v2749_v35 = vmul.f32 %v3494_v56, %v4722_v30 }
0x1b71   : > { %3495 = vtanh.f32 %v2745_v33 }
0x1b72   : > { %v4800_v55 = vadd.f32 %v2753_v41, %v2749_v35 }
0x1b77   : > { %v3496_v61 = vpop.eup %3495 }
0x1b78   : > { %v2750_v34 = vmul.f32 %v3496_v61, %v4724_v37 }
0x1b7a   : > { %v4796_v40 = vadd.f32 %v2754_v39, %v2750_v34 }
0x1b7c   : > { %2783 = vmatpush.msra.mxu2 %v4796_v40 }
0x1b7e   : > { %2784 = vmatpush.msra.mxu2 %v4800_v55 }
0x1b7f   : > { %3279 = vmatmul.msk.f32.vlgmr.msra.gmra.mxu2 %vm303_vm0, %v3612_v11 }
0x1b87   : > { %3280 = vmatmul.msk.f32.gmra.mxu2 %vm303_vm0, %v3618_v12 }
0x1b8f   : > { %3281 = vmatmul.msk.f32.gmra.mxu2 %vm303_vm0, %v3624_v13 }
0x1b97   : > { %3282 = vmatmul.msk.f32.gmra.mxu2 %vm303_vm0, %v3630_v14 }
0x1b9f   : > { %3283 = vmatmul.msk.f32.gmra.mxu2 %vm303_vm0, %v3636_v15 }
0x1ba7   : > { %3284 = vmatmul.msk.f32.gmra.mxu2 %vm303_vm0, %v3642_v16 }
0x1c02   : > { %v2786_v54 = vpop.f32.mrf.mxu2 }
0x1c0a   : > { %v2789_v30 = vpop.f32.mrf.mxu2 }
0x1c12   : > { %v2792_v37 = vpop.f32.mrf.mxu2 }
0x1c13   : > { %2806 = vrot.lane.b32.xlu0 %v2792_v37, %s3521_s22 }
0x1c1a   : > { %v2795_v42 = vpop.f32.mrf.mxu2 }
0x1c1b   : > { %2808 = vrot.lane.b32.xlu2 %v2795_v42, %s3521_s22 }
0x1c22   : > { %v2798_v10 = vpop.f32.mrf.mxu2 }
0x1c23   : > { %829 = vperm.xlu2 %3381, %v3661_v25   ;;  %2814 = vrot.lane.b32.xlu1 %v2798_v10, %s3522_s23 }
0x1c2a   : > { %v2801_v53 = vpop.f32.mrf.mxu2 }
0x1c2b   : > { %845 = vperm.xlu2 %3381, %v3669_v29   ;;  %815 = vperm.xlu1 %3380, %v3654_v21  }
0x1c2c   : > { %2816 = vrot.lane.b32.xlu0 %v2801_v53, %s3522_s23 }
0x1c33   : > { %2905 = vrot.lane.b32.xlu2 %v4796_v40, %s3521_s22  ;;  %825 = vperm.xlu1 %3380, %v3658_v23   ;;  %v3410_v23 = vld [vmem:[%s4925_s3 + $0x1] ss:$0 sm:$0xff] }
0x1c34   : > { %811 = vperm.xlu0 %3382, %v3650_v19   ;;  %v3412_v19 = vld [vmem:[%s4925_s3] ss:$0 sm:$0xff] }
0x1c3b   : > { %841 = vperm.xlu1 %3380, %v3665_v27   ;;  %v3411_v27 = vld [vmem:[%s4925_s3 + $0x2] ss:$0 sm:$0xff] }
0x1c3c   : > { %2903 = vrot.lane.b32.xlu0 %v4800_v55, %s3521_s22 }
0x1c75   : > { %v2809_v25 = vpop.permute.xlu2 %2808 }
0x1c76   : > { %v2821_v18 = vsel %vm913_vm2, %v2789_v30, %v2809_v25 }
0x1c7d   : > { %v830_v51 = vpop.permute.xlu2 %829 }
0x1c7e   : > { %v836_v43 = vmul.f32 %v3410_v23, %v830_v51 }
0x1c85   : > { %v2807_v9 = vpop.permute.xlu0 %2806  ;;  %v846_v59 = vpop.permute.xlu2 %845 }
0x1c86   : > { %v2820_v29 = vsel %vm913_vm2, %v2786_v54, %v2807_v9  ;;  %v852_v45 = vmul.f32 %v3411_v27, %v846_v59 }
0x1c95   : > { %v2815_v21 = vpop.permute.xlu1 %2814 }
0x1c96   : > { %v2822_v57 = vsel %vm916_vm3, %v2820_v29, %v2815_v21 }
0x1c97   : > { %3285 = vmatmul.msk.f32.vlgmr.msrb.gmra.mxu0 %vm500_vm1, %v2822_v57 }
0x1c9d   : > { %v816_v62 = vpop.permute.xlu1 %815 }
0x1c9e   : > { %v822_v32 = vmul.f32 %v3412_v19, %v816_v62  ;;  %v2817_v49 = vpop.permute.xlu0 %2816 }
0x1c9f   : > { %v2823_v44 = vsel %vm916_vm3, %v2821_v18, %v2817_v49 }
0x1ca0   : > { %v838_v46 = vadd.f32 %v836_v43, %v822_v32  ;;  %3286 = vmatmul.msk.f32.gmra.mxu0 %vm500_vm1, %v2823_v44 }
0x1ca2   : > { %v854_v47 = vadd.f32 %v852_v45, %v838_v46 }
0x1ca4   : > { %v856_v48 = vadd.f32 %v4711_v8, %v854_v47 }
0x1ca5   : > { %v826_v60 = vpop.permute.xlu1 %825 }
0x1ca6   : > { %859 = vst.msk [vmem:[#allocation2 + $0x78] sm:$0xff] %vm500_vm1, %v856_v48  ;;  %v812_v2 = vpop.permute.xlu0 %811  ;;  %v835_v1 = vmul.f32 %v3410_v23, %v826_v60 }
0x1ca7   : > { %v821_v52 = vmul.f32 %v3412_v19, %v812_v2 }
0x1ca9   : > { %v837_v58 = vadd.f32 %v835_v1, %v821_v52 }
0x1cad   : > { %v842_v63 = vpop.permute.xlu1 %841  ;;  %v2768_v20 = vld [vmem:[#allocation2 + $0x78] sm:$0xff] }
0x1cae   : > { %v851_v0 = vmul.f32 %v3411_v27, %v842_v63  ;;  %v2906_v27 = vpop.permute.xlu2 %2905  ;;  %v2904_v59 = vpop.permute.xlu0 %2903 }
0x1cb0   : > { %v853_v24 = vadd.f32 %v851_v0, %v837_v58 }
0x1cb2   : > { %v855_v26 = vadd.f32 %v4711_v8, %v853_v24 }
0x1cb4   : > { %858 = vst.msk [vmem:[#allocation2 + $0x70] sm:$0xff] %vm500_vm1, %v855_v26 }
0x1cbb   : > { %v4848_v17 = vld [vmem:[#allocation2 + $0x70] sm:$0xff] }
0x1d14   : > { %v2859_v4 = vpop.f32.mrf.mxu0 }
0x1d15   : > { %v2860_v5 = vadd.f32 %v2859_v4, %v4848_v17 }
0x1d17   : > { %v3287_v6 = vmul.f32 -1.442695, %v2860_v5 }
0x1d19   : > { %3497 = vpow2.f32 %v3287_v6 }
0x1d1d   : > { %v2862_v22 = vpop.f32.mrf.mxu0 }
0x1d1e   : > { %v2863_v33 = vadd.f32 %v2862_v22, %v2768_v20 }
0x1d1f   : > { %v3498_v31 = vpop.eup %3497 }
0x1d20   : > { %v2871_v56 = vadd.f32 1.0, %v3498_v31  ;;  %v3288_v7 = vmul.f32 -1.442695, %v2863_v33 }
0x1d22   : > { %3499 = vrcp.f32 %v2871_v56  ;;  %v2884_v37 = vand.u32 2147483648, %v2871_v56  ;;  %vm2878_vm4 = vweird.f32 %v2871_v56  ;;  %v2882_v10 = vand.u32 2147483647, %v2871_v56 }
0x1d23   : > { %3501 = vpow2.f32 %v3288_v7 }
0x1d24   : > { %v2885_v29 = vor.u32 1.1754944e-38, %v2884_v37  ;;  %vm2883_vm7 = vcmp.eq.f32.partialorder %v2882_v10, 8.507059e+37 }
0x1d28   : > { %v3500_v61 = vpop.eup %3499 }
0x1d29   : > { %v3502_v35 = vpop.eup %3501  ;;  %v2874_v8 = vmul.f32 %v3500_v61, %v2871_v56  ;;  %vm2879_vm15 = vweird.f32 %v3500_v61 }
0x1d2a   : > { %v2872_v34 = vadd.f32 1.0, %v3502_v35  ;;  %vm2880_vm5 = vmor %vm2878_vm4, %vm2879_vm15 }
0x1d2b   : > { %v2875_v39 = vsub.f32 1.0, %v2874_v8 }
0x1d2c   : > { %3503 = vrcp.f32 %v2872_v34  ;;  %v2899_v53 = vand.u32 2147483648, %v2872_v34  ;;  %v2897_v51 = vand.u32 2147483647, %v2872_v34  ;;  %vm2893_vm8 = vweird.f32 %v2872_v34 }
0x1d2d   : > { %v2876_v41 = vmul.f32 %v3500_v61, %v2875_v39 }
0x1d2e   : > { %v2900_v23 = vor.u32 1.1754944e-38, %v2899_v53  ;;  %vm2898_vm10 = vcmp.eq.f32.partialorder %v2897_v51, 8.507059e+37 }
0x1d2f   : > { %v2877_v30 = vadd.f32 %v3500_v61, %v2876_v41 }
0x1d31   : > { %v2881_v9 = vsel %vm2880_vm5, %v3500_v61, %v2877_v30 }
0x1d32   : > { %v3504_v50 = vpop.eup %3503  ;;  %v4851_v57 = vsel %vm2883_vm7, %v2885_v29, %v2881_v9 }
0x1d33   : > { %v2889_v54 = vmul.f32 %v3504_v50, %v2872_v34  ;;  %vm2894_vm6 = vweird.f32 %v3504_v50  ;;  %v2909_v18 = vmul.f32 %v2904_v59, %v4851_v57  ;;  %v3027_v5 = vsub.f32 1.0, %v4851_v57 }
0x1d34   : > { %vm2895_vm9 = vmor %vm2893_vm8, %vm2894_vm6 }
0x1d35   : > { %v2890_v42 = vsub.f32 1.0, %v2889_v54  ;;  %v3029_v31 = vmul.f32 %v3027_v5, %v4800_v55 }
0x1d37   : > { %v2891_v25 = vmul.f32 %v3504_v50, %v2890_v42 }
0x1d39   : > { %v2892_v21 = vadd.f32 %v3504_v50, %v2891_v25 }
0x1d3b   : > { %v2896_v19 = vsel %vm2895_vm9, %v3504_v50, %v2892_v21 }
0x1d3c   : > { %v4853_v62 = vsel %vm2898_vm10, %v2900_v23, %v2896_v19 }
0x1d3d   : > { %v2910_v43 = vmul.f32 %v2906_v27, %v4853_v62  ;;  %v3028_v7 = vsub.f32 1.0, %v4853_v62 }
0x1d3f   : > { %v3383_v32 = vpack.i.bf16 %v2909_v18, %v2910_v43  ;;  %v3030_v8 = vmul.f32 %v3028_v7, %v4796_v40 }
0x1d41   : > { %3384 = vrot.lane.b32.xlu1 %v3383_v32, %s3523_s16 }
0x1db3   : > { %v3385_v49 = vpop.permute.xlu1 %3384 }
0x1db4   : > { %v3386_v44 = vunpack.i.l.bf16 %v3385_v49  ;;  %v3387_v45 = vunpack.i.h.bf16 %v3385_v49 }
0x1db6   : > { %2933 = vmatpush.msrb.mxu1 %v3386_v44 }
0x1db8   : > { %2934 = vmatpush.msrb.mxu1 %v3387_v45 }
0x1db9   : > { %3289 = vmatmul.msk.f32.vlgmr.msrb.gmra.mxu1 %vm303_vm0, %v3612_v11 }
0x1dc1   : > { %3290 = vmatmul.msk.f32.gmra.mxu1 %vm303_vm0, %v3618_v12 }
0x1dc9   : > { %3291 = vmatmul.msk.f32.gmra.mxu1 %vm303_vm0, %v3624_v13 }
0x1dd1   : > { %3292 = vmatmul.msk.f32.gmra.mxu1 %vm303_vm0, %v3630_v14 }
0x1dd9   : > { %3293 = vmatmul.msk.f32.gmra.mxu1 %vm303_vm0, %v3636_v15 }
0x1de1   : > { %3294 = vmatmul.msk.f32.gmra.mxu1 %vm303_vm0, %v3642_v16  ;;  %vm1671_vm0 = vcmask 785920  }
0x1e36   : > { %v2936_v46 = vpop.f32.mrf.mxu1 }
0x1e3e   : > { %v2939_v47 = vpop.f32.mrf.mxu1 }
0x1e46   : > { %v2942_v48 = vpop.f32.mrf.mxu1 }
0x1e47   : > { %2956 = vrot.lane.b32.xlu2 %v2942_v48, %s3521_s22 }
0x1e4e   : > { %v2945_v11 = vpop.f32.mrf.mxu1 }
0x1e4f   : > { %2958 = vrot.lane.b32.xlu1 %v2945_v11, %s3521_s22 }
0x1e56   : > { %v2948_v12 = vpop.f32.mrf.mxu1 }
0x1e57   : > { %2990 = vrot.lane.b32.xlu1 %v2768_v20, %s3522_s23  ;;  %2964 = vrot.lane.b32.xlu0 %v2948_v12, %s3522_s23 }
0x1e5e   : > { %v2951_v13 = vpop.f32.mrf.mxu1 }
0x1e5f   : > { %2759 = vrot.lane.b32.xlu1 %v4800_v55, %s3522_s23  ;;  %2988 = vrot.lane.b32.xlu0 %v4848_v17, %s3522_s23 }
0x1e60   : > { %2966 = vrot.lane.b32.xlu2 %v2951_v13, %s3522_s23 }
0x1e67   : > { %1944 = vrot.lane.b32.xlu1 %v4404_v28, %s3523_s16  ;;  %1667 = vrot.lane.b32.xlu0 %v4139_v36, %s3522_s23 }
0x1e68   : > { %1665 = vrot.lane.b32.xlu2 %v4143_v38, %s3522_s23 }
0x1e6f   : > { %1942 = vrot.lane.b32.xlu0 %v4408_v3, %s3523_s16 }
0x1e70   : > { %2761 = vrot.lane.b32.xlu2 %v4796_v40, %s3522_s23 }
0x1ea1   : > { %v2957_v14 = vpop.permute.xlu2 %2956 }
0x1ea2   : > { %v2970_v28 = vsel %vm913_vm2, %v2936_v46, %v2957_v14 }
0x1eba   : > { %v2967_v15 = vpop.permute.xlu2 %2966 }
0x1ec1   : > { %v2959_v16 = vpop.permute.xlu1 %2958 }
0x1ec2   : > { %v1666_v60 = vpop.permute.xlu2 %1665  ;;  %v2971_v1 = vsel %vm913_vm2, %v2939_v47, %v2959_v16 }
0x1ec3   : > { %1672 = vst.msk [vmem:[%s3928_s30] sm:$0xff] %vm1671_vm0, %v1666_v60  ;;  %v2973_v58 = vsel %vm916_vm3, %v2971_v1, %v2967_v15 }
0x1ec9   : > { %v2991_v36 = vpop.permute.xlu1 %2990  ;;  %v2965_v38 = vpop.permute.xlu0 %2964 }
0x1eca   : > { %v2972_v2 = vsel %vm916_vm3, %v2970_v28, %v2965_v38  ;;  %v2762_v3 = vpop.permute.xlu2 %2761 }
0x1ecb   : > { %2766 = vst.msk [vmem:[%s3928_s30 + $0x18] sm:$0xff] %vm1671_vm0, %v2762_v3  ;;  %3295 = vmatmul.msk.f32.vlgmr.msrb.gmra.mxu3 %vm500_vm1, %v2972_v2 }
0x1ed1   : > { %v2760_v52 = vpop.permute.xlu1 %2759  ;;  %v2989_v63 = vpop.permute.xlu0 %2988 }
0x1ed2   : > { %2765 = vst.msk [vmem:[%s3928_s30 + $0x8] sm:$0xff] %vm1671_vm0, %v2760_v52 }
0x1ed3   : > { %3296 = vmatmul.msk.f32.gmra.mxu3 %vm500_vm1, %v2973_v58 }
0x1ed9   : > { %v1945_v0 = vpop.permute.xlu1 %1944  ;;  %v1668_v24 = vpop.permute.xlu0 %1667 }
0x1eda   : > { %1673 = vst.msk [vmem:[%s3928_s30 + $0x10] sm:$0xff] %vm1671_vm0, %v1668_v24 }
0x1edb   : > { %1950 = vst.msk [vmem:[%s3928_s30 + $0x10] sm:$0xff] %vm1948_vm11, %v1945_v0 }
0x1ee1   : > { %v1943_v26 = vpop.permute.xlu0 %1942 }
0x1ee2   : > { %1949 = vst.msk [vmem:[%s3928_s30] sm:$0xff] %vm1948_vm11, %v1943_v26 }
0x1f4e   : > { %v3017_v17 = vpop.f32.mrf.mxu3 }
0x1f4f   : > { %v3018_v4 = vadd.f32 %v3017_v17, %v2989_v63 }
0x1f51   : > { %3505 = vtanh.f32 %v3018_v4 }
0x1f56   : > { %v3020_v6 = vpop.f32.mrf.mxu3 }
0x1f57   : > { %v3506_v20 = vpop.eup %3505  ;;  %v3021_v22 = vadd.f32 %v3020_v6, %v2991_v36 }
0x1f58   : > { %v3025_v33 = vmul.f32 %v3506_v20, %v4851_v57 }
0x1f59   : > { %3507 = vtanh.f32 %v3021_v22 }
0x1f5a   : > { %v3031_v56 = vadd.f32 %v3029_v31, %v3025_v33 }
0x1f5c   : > { %3035 = vrot.lane.b32.xlu2 %v3031_v56, %s3523_s16 }
0x1f5f   : > { %v3508_v61 = vpop.eup %3507 }
0x1f60   : > { %v3026_v35 = vmul.f32 %v3508_v61, %v4853_v62 }
0x1f62   : > { %v3032_v34 = vadd.f32 %v3030_v8, %v3026_v35 }
0x1f64   : > { %3037 = vrot.lane.b32.xlu0 %v3032_v34, %s3523_s16 }
0x1fb6   : > { %v3036_v39 = vpop.permute.xlu2 %3035 }
0x1fb7   : > { %3041 = vst.msk [vmem:[%s3928_s30 + $0x8] sm:$0xff] %vm1948_vm11, %v3036_v39 }
0x1fd6   : > { %v3038_v41 = vpop.permute.xlu0 %3037 }
0x1fd7   : > { %3042 = vst.msk [vmem:[%s3928_s30 + $0x18] sm:$0xff] %vm1948_vm11, %v3038_v41 }
0x1fd8 PF: > { %s17_s24 = sadd.s32 1, %s3517_s24  }
0x1fd9   : > { %p14_p4 = scmp.ge.s32.totalorder %s17_s24, 4  }
0x1fdb   :  { %16 = sbr.rel (!%p14_p4) target bundleno = 1 (0x1), region = 92 }

</bundles_post_ra>
